<compile_context>
chip_gen: v6e
topology: v6e:2x2x1
jax: 0.10.0
libtpu: 0.0.40
codegen_flags: <defaults>
</compile_context>

<pallas_src>
import numpy as np
import jax
import jax.numpy as jnp
from jax.experimental import pallas as pl
from jax.experimental.pallas import tpu as pltpu

EPS = 1e-5                              # BatchNorm2d default eps
_VMEM_LIMIT = 32 * 1024 * 1024          # raise v5e's 16 MiB scoped default; safe on v6e/v7x (64 MiB phys)


def _pad128(c):
    return max(128, ((c + 127) // 128) * 128)


def _next_pow2(x):
    return 1 << max(0, (max(int(x), 1) - 1).bit_length())


# ----------------------- plain-JAX glue (grouping) --------------------------

def square_distance(src, dst):
    dist = -2.0 * jnp.matmul(src, jnp.transpose(dst, (0, 2, 1)))
    dist = dist + jnp.sum(src ** 2, -1)[:, :, None]
    dist = dist + jnp.sum(dst ** 2, -1)[:, None, :]
    return dist


def index_points(points, idx):
    B = points.shape[0]
    batch = jnp.arange(B).reshape((B,) + (1,) * (idx.ndim - 1))
    return points[batch, idx]


def farthest_point_sample(xyz, npoint):
    # TODO(synk): torch seeds `farthest` with torch.randint; use index 0 so the
    # script is deterministic/reproducible.
    B, N, _ = xyz.shape
    batch_idx = jnp.arange(B)

    def body(i, carry):
        distance, farthest, centroids = carry
        centroids = centroids.at[:, i].set(farthest)
        centroid = xyz[batch_idx, farthest, :][:, None, :]
        dist = jnp.sum((xyz - centroid) ** 2, -1)
        distance = jnp.minimum(distance, dist)
        farthest = jnp.argmax(distance, axis=-1).astype(jnp.int32)
        return distance, farthest, centroids

    init = (jnp.full((B, N), 1e10, dtype=xyz.dtype),
            jnp.zeros((B,), jnp.int32),
            jnp.zeros((B, npoint), jnp.int32))
    _, _, centroids = jax.lax.fori_loop(0, npoint, body, init)
    return centroids


def query_ball_point(radius, nsample, xyz, new_xyz):
    B, N, _ = xyz.shape
    S = new_xyz.shape[1]
    sqrdists = square_distance(new_xyz, xyz)
    group_idx = jnp.broadcast_to(jnp.arange(N), (B, S, N))
    group_idx = jnp.where(sqrdists > radius ** 2, N, group_idx)
    group_idx = jnp.sort(group_idx, axis=-1)[:, :, :nsample]
    group_first = jnp.broadcast_to(group_idx[:, :, :1], group_idx.shape)
    group_idx = jnp.where(group_idx == N, group_first, group_idx)
    return group_idx


# ----------------------------- Pallas kernel ---------------------------------

def _make_fused_sa_kernel(*, n, g_pad, n_groups, c_feat, num_layers, inv_count):
    """Fused (conv -> BN(train) -> ReLU) x num_layers -> max over nsample.

    Rows are j-major (row = j * g_pad + g_local); g_pad is a power of two so the
    row-validity mask uses a bitwise AND.  Padded group rows are kept at exact
    zero after every activation, so BN batch statistics are plain column sums
    divided by the true element count (B * npoint * nsample).
    """
    rows = n * g_pad
    need_mask = n_groups < g_pad

    def kernel(*refs):
        out_ref = refs[-1]
        it = iter(refs[:-1])
        x_xyz_ref = next(it)
        x_feat_ref = next(it) if c_feat else None
        w0_xyz_ref = next(it)
        w0_feat_ref = next(it) if c_feat else None

        if need_mask:
            r = jax.lax.broadcasted_iota(jnp.int32, (rows, 1), 0)
            g_loc = jnp.bitwise_and(r, g_pad - 1)
            mask = (g_loc < n_groups).astype(jnp.float32)
        else:
            mask = None

        # ---- conv0: 3 un-padded xyz channels via VPU FMAs (keeps the tiny-K
        # off the MXU and avoids lane-padding 3->128 in HBM); lane-aligned
        # feature channels via a bf16 MXU matmul with f32 accumulation.
        xz = x_xyz_ref[...].astype(jnp.float32)          # (rows, 3)
        w0x = w0_xyz_ref[...]                            # (3, c0_p) f32
        h = xz[:, 0:1] * w0x[0:1, :]
        h = h + xz[:, 1:2] * w0x[1:2, :]
        h = h + xz[:, 2:3] * w0x[2:3, :]
        if c_feat:
            h = h + jnp.dot(x_feat_ref[...], w0_feat_ref[...],
                            preferred_element_type=jnp.float32)
        if mask is not None:
            h = h * mask                                 # padded rows stay exact zero

        a = h
        for li in range(num_layers):
            if li > 0:
                w_ref = next(it)
                h = jnp.dot(a.astype(jnp.bfloat16), w_ref[...],
                            preferred_element_type=jnp.float32)
            gamma = next(it)[...]                        # (1, c_p)
            beta = next(it)[...]                         # (1, c_p)
            # training-mode BatchNorm2d (biased variance); Conv2d bias folded out.
            mean = jnp.sum(h, axis=0, keepdims=True) * inv_count
            var = jnp.maximum(
                jnp.sum(h * h, axis=0, keepdims=True) * inv_count - mean * mean,
                0.0)
            scale = gamma * jax.lax.rsqrt(var + EPS)
            shift = beta - mean * scale
            a = jnp.maximum(h * scale + shift, 0.0)
            if mask is not None and li + 1 < num_layers:
                a = a * mask                             # keep next layer's stats exact

        # ---- max over nsample: n contiguous, sublane-aligned (g_pad, C) slabs.
        acc = a[0:g_pad, :]
        for j in range(1, n):
            acc = jnp.maximum(acc, a[j * g_pad:(j + 1) * g_pad, :])
        out_ref[...] = acc

    return kernel


def _sa_mlp_fused(x_list, params, *, n, g_pad, n_groups, c_feat):
    """Single pallas_call running the full per-SA-layer MLP + max-pool."""
    rows = n * g_pad
    arrays = list(x_list)
    w0 = params[0]                      # (w_xyz, w_feat_or_None, gamma, beta)
    arrays.append(w0[0])
    if c_feat:
        arrays.append(w0[1])
    arrays += [w0[2], w0[3]]
    for (w, gamma, beta) in params[1:]:
        arrays += [w, gamma, beta]

    layer_couts = [p[-2].shape[1] for p in params]
    c_last_p = layer_couts[-1]
    inv_count = 1.0 / float(n_groups * n)

    # VMEM budget sanity check (inputs double-buffered + f32 activation temps).
    # TODO(synk): for very large B*npoint*nsample a multi-tile conv/partial-stats
    # kernel chain would be needed; every shape in this module fits a single tile.
    vmem_est = (2 * sum(int(np.prod(a.shape)) * a.dtype.itemsize for a in arrays)
                + 2 * g_pad * c_last_p * 4 + 4 * rows * max(layer_couts) * 4)
    assert vmem_est < _VMEM_LIMIT, ("fused SA tile too large for VMEM", vmem_est)

    kernel = _make_fused_sa_kernel(n=n, g_pad=g_pad, n_groups=n_groups,
                                   c_feat=c_feat, num_layers=len(params),
                                   inv_count=inv_count)
    # NOTE: grid=(1,) -- the whole batch must share BN statistics, so the fused
    # kernel cannot be sharded across TensorCores (v7x's 2nd TC idles here).
    return pl.pallas_call(
        kernel,
        out_shape=jax.ShapeDtypeStruct((g_pad, c_last_p), jnp.float32),
        grid=(1,),
        in_specs=[pl.BlockSpec(a.shape, lambda i: (0, 0)) for a in arrays],
        out_specs=pl.BlockSpec((g_pad, c_last_p), lambda i: (0, 0)),
        compiler_params=pltpu.CompilerParams(
            dimension_semantics=("arbitrary",),
            vmem_limit_bytes=_VMEM_LIMIT),
    )(*arrays)


# --------------------- set abstraction (wrapper) -----------------------------

def set_abstraction(xyz_bcn, points_bdn, params, mlp_channels,
                    npoint, radius, nsample, group_all):
    # xyz_bcn: [B, 3, N]; points_bdn: [B, D, N] or None  (PyTorch convention)
    xyz = jnp.transpose(xyz_bcn, (0, 2, 1))
    points = None if points_bdn is None else jnp.transpose(points_bdn, (0, 2, 1))
    B, N, _ = xyz.shape

    if group_all:
        S, n = 1, N
        new_xyz = jnp.zeros((B, 1, 3), xyz.dtype)
        # j-major layout built by a tiny transpose of the raw inputs (reference
        # uses un-normalized grouped_xyz here).
        gxyz = jnp.transpose(xyz, (1, 0, 2)).reshape(n, B * S, 3)
        gfeat = (None if points is None
                 else jnp.transpose(points, (1, 0, 2)).reshape(n, B * S, -1))
    else:
        S, n = npoint, nsample
        fps_idx = farthest_point_sample(xyz, npoint)
        new_xyz = index_points(xyz, fps_idx)                     # [B, S, 3]
        idx = query_ball_point(radius, nsample, xyz, new_xyz)    # [B, S, n]
        # Reorder the (tiny) index array so the gather itself writes rows in
        # j-major order -- no big padded-row-matrix transpose afterwards.
        idx_t = jnp.transpose(idx, (2, 0, 1))                    # [n, B, S]
        bidx = jnp.arange(B)[None, :, None]
        gxyz = (xyz[bidx, idx_t] - new_xyz[None, :, :, :]).reshape(n, B * S, 3)
        gfeat = None if points is None else points[bidx, idx_t].reshape(n, B * S, -1)

    G = B * S
    g_pad = max(8, _next_pow2(G))        # pow2 + sublane aligned
    c_feat = 0 if gfeat is None else gfeat.shape[-1]   # 0 / 128 / 256 (lane aligned)
    c_out = mlp_channels[-1]

    # Pack rows j-major with padded groups zero-filled.  xyz kept at its real
    # 3-channel width (f32); features kept lane-aligned in bf16.
    x_xyz = jnp.pad(gxyz, ((0, 0), (0, g_pad - G), (0, 0)))
    x_xyz = x_xyz.reshape(n * g_pad, 3).astype(jnp.float32)
    x_list = [x_xyz]
    if c_feat:
        x_feat = jnp.pad(gfeat, ((0, 0), (0, g_pad - G), (0, 0)))
        x_feat = x_feat.reshape(n * g_pad, c_feat).astype(jnp.bfloat16)
        x_list.append(x_feat)

    feat = _sa_mlp_fused(x_list, params, n=n, g_pad=g_pad,
                         n_groups=G, c_feat=c_feat)              # [g_pad, C_out_p] f32
    feat = feat[:G, :c_out].reshape(B, S, c_out)

    new_xyz_out = jnp.transpose(new_xyz, (0, 2, 1))              # [B, 3, S]
    new_points_out = jnp.transpose(feat, (0, 2, 1))              # [B, C_out, S]
    return new_xyz_out, new_points_out


MLP_SA1 = [64, 64, 128]
MLP_SA2 = [128, 128, 256]
MLP_SA3 = [256, 512, 1024]


def pointnet_plus_forward(x, params_sa1, params_sa2, params_sa3):
    l1_xyz, l1_points = set_abstraction(x, None, params_sa1, MLP_SA1,
                                        npoint=16, radius=0.2, nsample=4,
                                        group_all=False)
    l2_xyz, l2_points = set_abstraction(l1_xyz, l1_points, params_sa2, MLP_SA2,
                                        npoint=4, radius=0.4, nsample=2,
                                        group_all=False)
    l3_xyz, l3_points = set_abstraction(l2_xyz, l2_points, params_sa3, MLP_SA3,
                                        npoint=None, radius=None, nsample=None,
                                        group_all=True)
    return l3_points                                             # [B, 1024, 1]


# ------------------------------ parameters -----------------------------------

def init_sa_params(key, in_channel, mlp):
    """Per-MLP-layer parameters.

    Layer 0: (w_xyz[3, Cout_p] f32, w_feat[Cfeat, Cout_p] bf16 or None,
              gamma[1, Cout_p] f32, beta[1, Cout_p] f32) -- input split into the
              3 un-padded xyz channels and the lane-aligned feature channels.
    Layer >0: (w[Cin_p, Cout_p] bf16, gamma, beta).

    The Conv2d bias is intentionally omitted: a per-channel bias immediately
    followed by training-mode BatchNorm is exactly cancelled by the mean
    subtraction.  Output channels are zero-padded to multiples of 128 and the
    padded gamma entries are 0, so padded channels stay exactly zero.
    """
    c_feat = in_channel - 3
    params = []
    last = in_channel
    for li, out in enumerate(mlp):
        out_p = _pad128(out)
        key, k1 = jax.random.split(key)
        w = jax.random.normal(k1, (last, out), jnp.float32) * (1.0 / np.sqrt(last))
        gamma = jnp.zeros((1, out_p), jnp.float32).at[0, :out].set(1.0)
        beta = jnp.zeros((1, out_p), jnp.float32)
        if li == 0:
            w_xyz = jnp.zeros((3, out_p), jnp.float32).at[:, :out].set(w[:3])
            if c_feat > 0:
                w_feat = (jnp.zeros((c_feat, out_p), jnp.float32)
                          .at[:, :out].set(w[3:]).astype(jnp.bfloat16))
            else:
                w_feat = None
            params.append((w_xyz, w_feat, gamma, beta))
        else:
            last_p = _pad128(last)
            w_p = (jnp.zeros((last_p, out_p), jnp.float32)
                   .at[:last, :out].set(w).astype(jnp.bfloat16))
            params.append((w_p, gamma, beta))
        last = out
    return key, params


if __name__ == "__main__":
    key = jax.random.PRNGKey(0)
    key, kx = jax.random.split(key)
    B, C, N = 2, 3, 32
    x = jax.random.normal(kx, (B, C, N), dtype=jnp.float32)

    key, p_sa1 = init_sa_params(key, 3, MLP_SA1)
    key, p_sa2 = init_sa_params(key, 128 + 3, MLP_SA2)
    key, p_sa3 = init_sa_params(key, 256 + 3, MLP_SA3)

    fwd = jax.jit(pointnet_plus_forward)
    out = jax.block_until_ready(fwd(x, p_sa1, p_sa2, p_sa3))

    assert out.shape == (B, 1024, 1), out.shape
    assert bool(jnp.all(jnp.isfinite(out)))
    print("KERNEL_OK")
</pallas_src>

<mosaic_0001>
module attributes {stable_mosaic.version = 11 : i64} {
  func.func @kernel(%arg0: i32, %arg1: memref<128x3xf32, #tpu.memory_space<vmem>>, %arg2: memref<3x128xf32, #tpu.memory_space<vmem>>, %arg3: memref<1x128xf32, #tpu.memory_space<vmem>>, %arg4: memref<1x128xf32, #tpu.memory_space<vmem>>, %arg5: memref<128x128xbf16, #tpu.memory_space<vmem>>, %arg6: memref<1x128xf32, #tpu.memory_space<vmem>>, %arg7: memref<1x128xf32, #tpu.memory_space<vmem>>, %arg8: memref<128x128xbf16, #tpu.memory_space<vmem>>, %arg9: memref<1x128xf32, #tpu.memory_space<vmem>>, %arg10: memref<1x128xf32, #tpu.memory_space<vmem>>, %arg11: memref<32x128xf32, #tpu.memory_space<vmem>>) attributes {dimension_semantics = [#tpu.dimension_semantics<arbitrary>], iteration_bounds = array<i64: 1>, scalar_prefetch = 0 : i64, scratch_operands = 0 : i64, tpu.core_type = #tpu.core_type<tc>, window_params = [{pipeline_mode = #tpu.pipeline_mode<synchronous>, transform_indices = @transform_0, window_bounds = array<i64: 128, 3>}, {pipeline_mode = #tpu.pipeline_mode<synchronous>, transform_indices = @transform_1, window_bounds = array<i64: 3, 128>}, {pipeline_mode = #tpu.pipeline_mode<synchronous>, transform_indices = @transform_2, window_bounds = array<i64: 1, 128>}, {pipeline_mode = #tpu.pipeline_mode<synchronous>, transform_indices = @transform_3, window_bounds = array<i64: 1, 128>}, {pipeline_mode = #tpu.pipeline_mode<synchronous>, transform_indices = @transform_4, window_bounds = array<i64: 128, 128>}, {pipeline_mode = #tpu.pipeline_mode<synchronous>, transform_indices = @transform_5, window_bounds = array<i64: 1, 128>}, {pipeline_mode = #tpu.pipeline_mode<synchronous>, transform_indices = @transform_6, window_bounds = array<i64: 1, 128>}, {pipeline_mode = #tpu.pipeline_mode<synchronous>, transform_indices = @transform_7, window_bounds = array<i64: 128, 128>}, {pipeline_mode = #tpu.pipeline_mode<synchronous>, transform_indices = @transform_8, window_bounds = array<i64: 1, 128>}, {pipeline_mode = #tpu.pipeline_mode<synchronous>, transform_indices = @transform_9, window_bounds = array<i64: 1, 128>}, {pipeline_mode = #tpu.pipeline_mode<synchronous>, transform_indices = @transform_10, window_bounds = array<i64: 32, 128>}]} {
    %c0 = arith.constant 0 : index
    %c0_0 = arith.constant 0 : index
    %0 = vector.load %arg1[%c0, %c0_0] : memref<128x3xf32, #tpu.memory_space<vmem>>, vector<128x3xf32>
    %c0_1 = arith.constant 0 : index
    %c0_2 = arith.constant 0 : index
    %1 = vector.load %arg2[%c0_1, %c0_2] : memref<3x128xf32, #tpu.memory_space<vmem>>, vector<3x128xf32>
    %2 = vector.extract_strided_slice %0 {offsets = [0, 0], sizes = [128, 1], strides = [1, 1]} : vector<128x3xf32> to vector<128x1xf32>
    %3 = vector.extract_strided_slice %1 {offsets = [0, 0], sizes = [1, 128], strides = [1, 1]} : vector<3x128xf32> to vector<1x128xf32>
    %4 = vector.broadcast %2 : vector<128x1xf32> to vector<128x128xf32>
    %5 = vector.broadcast %3 : vector<1x128xf32> to vector<128x128xf32>
    %6 = arith.mulf %4, %5 : vector<128x128xf32>
    %7 = vector.extract_strided_slice %0 {offsets = [0, 1], sizes = [128, 1], strides = [1, 1]} : vector<128x3xf32> to vector<128x1xf32>
    %8 = vector.extract_strided_slice %1 {offsets = [1, 0], sizes = [1, 128], strides = [1, 1]} : vector<3x128xf32> to vector<1x128xf32>
    %9 = vector.broadcast %7 : vector<128x1xf32> to vector<128x128xf32>
    %10 = vector.broadcast %8 : vector<1x128xf32> to vector<128x128xf32>
    %11 = arith.mulf %9, %10 : vector<128x128xf32>
    %12 = arith.addf %6, %11 : vector<128x128xf32>
    %13 = vector.extract_strided_slice %0 {offsets = [0, 2], sizes = [128, 1], strides = [1, 1]} : vector<128x3xf32> to vector<128x1xf32>
    %14 = vector.extract_strided_slice %1 {offsets = [2, 0], sizes = [1, 128], strides = [1, 1]} : vector<3x128xf32> to vector<1x128xf32>
    %15 = vector.broadcast %13 : vector<128x1xf32> to vector<128x128xf32>
    %16 = vector.broadcast %14 : vector<1x128xf32> to vector<128x128xf32>
    %17 = arith.mulf %15, %16 : vector<128x128xf32>
    %18 = arith.addf %12, %17 : vector<128x128xf32>
    %c0_3 = arith.constant 0 : index
    %c0_4 = arith.constant 0 : index
    %19 = vector.load %arg3[%c0_3, %c0_4] : memref<1x128xf32, #tpu.memory_space<vmem>>, vector<1x128xf32>
    %c0_5 = arith.constant 0 : index
    %c0_6 = arith.constant 0 : index
    %20 = vector.load %arg4[%c0_5, %c0_6] : memref<1x128xf32, #tpu.memory_space<vmem>>, vector<1x128xf32>
    %cst = arith.constant dense<0.000000e+00> : vector<128xf32>
    %21 = vector.multi_reduction <add>, %18, %cst [0] : vector<128x128xf32> to vector<128xf32>
    %22 = vector.shape_cast %21 : vector<128xf32> to vector<1x128xf32>
    %cst_7 = arith.constant 7.812500e-03 : f32
    %23 = vector.broadcast %cst_7 : f32 to vector<1x128xf32>
    %24 = arith.mulf %22, %23 : vector<1x128xf32>
    %25 = arith.mulf %18, %18 : vector<128x128xf32>
    %cst_8 = arith.constant dense<0.000000e+00> : vector<128xf32>
    %26 = vector.multi_reduction <add>, %25, %cst_8 [0] : vector<128x128xf32> to vector<128xf32>
    %27 = vector.shape_cast %26 : vector<128xf32> to vector<1x128xf32>
    %cst_9 = arith.constant 7.812500e-03 : f32
    %28 = vector.broadcast %cst_9 : f32 to vector<1x128xf32>
    %29 = arith.mulf %27, %28 : vector<1x128xf32>
    %30 = arith.mulf %24, %24 : vector<1x128xf32>
    %31 = arith.subf %29, %30 : vector<1x128xf32>
    %cst_10 = arith.constant 0.000000e+00 : f32
    %32 = vector.broadcast %cst_10 : f32 to vector<1x128xf32>
    %33 = arith.maximumf %31, %32 : vector<1x128xf32>
    %cst_11 = arith.constant 9.99999974E-6 : f32
    %34 = vector.broadcast %cst_11 : f32 to vector<1x128xf32>
    %35 = arith.addf %33, %34 : vector<1x128xf32>
    %36 = math.rsqrt %35 : vector<1x128xf32>
    %37 = arith.mulf %19, %36 : vector<1x128xf32>
    %38 = arith.mulf %24, %37 : vector<1x128xf32>
    %39 = arith.subf %20, %38 : vector<1x128xf32>
    %40 = vector.broadcast %37 : vector<1x128xf32> to vector<128x128xf32>
    %41 = arith.mulf %18, %40 : vector<128x128xf32>
    %42 = vector.broadcast %39 : vector<1x128xf32> to vector<128x128xf32>
    %43 = arith.addf %41, %42 : vector<128x128xf32>
    %cst_12 = arith.constant 0.000000e+00 : f32
    %44 = vector.broadcast %cst_12 : f32 to vector<128x128xf32>
    %45 = arith.maximumf %43, %44 : vector<128x128xf32>
    %46 = arith.truncf %45 : vector<128x128xf32> to vector<128x128xbf16>
    %c0_13 = arith.constant 0 : index
    %c0_14 = arith.constant 0 : index
    %47 = vector.load %arg5[%c0_13, %c0_14] : memref<128x128xbf16, #tpu.memory_space<vmem>>, vector<128x128xbf16>
    %cst_15 = arith.constant dense<0.000000e+00> : vector<128x128xf32>
    %48 = tpu.matmul %46, %47, %cst_15 {dimension_numbers = #tpu.dot_dimension_numbers<[1], [0], [0], [1], [0, 0, 1, 1], [], []>} : vector<128x128xbf16>, vector<128x128xbf16>, vector<128x128xf32> -> vector<128x128xf32>
    %c0_16 = arith.constant 0 : index
    %c0_17 = arith.constant 0 : index
    %49 = vector.load %arg6[%c0_16, %c0_17] : memref<1x128xf32, #tpu.memory_space<vmem>>, vector<1x128xf32>
    %c0_18 = arith.constant 0 : index
    %c0_19 = arith.constant 0 : index
    %50 = vector.load %arg7[%c0_18, %c0_19] : memref<1x128xf32, #tpu.memory_space<vmem>>, vector<1x128xf32>
    %cst_20 = arith.constant dense<0.000000e+00> : vector<128xf32>
    %51 = vector.multi_reduction <add>, %48, %cst_20 [0] : vector<128x128xf32> to vector<128xf32>
    %52 = vector.shape_cast %51 : vector<128xf32> to vector<1x128xf32>
    %cst_21 = arith.constant 7.812500e-03 : f32
    %53 = vector.broadcast %cst_21 : f32 to vector<1x128xf32>
    %54 = arith.mulf %52, %53 : vector<1x128xf32>
    %55 = arith.mulf %48, %48 : vector<128x128xf32>
    %cst_22 = arith.constant dense<0.000000e+00> : vector<128xf32>
    %56 = vector.multi_reduction <add>, %55, %cst_22 [0] : vector<128x128xf32> to vector<128xf32>
    %57 = vector.shape_cast %56 : vector<128xf32> to vector<1x128xf32>
    %cst_23 = arith.constant 7.812500e-03 : f32
    %58 = vector.broadcast %cst_23 : f32 to vector<1x128xf32>
    %59 = arith.mulf %57, %58 : vector<1x128xf32>
    %60 = arith.mulf %54, %54 : vector<1x128xf32>
    %61 = arith.subf %59, %60 : vector<1x128xf32>
    %cst_24 = arith.constant 0.000000e+00 : f32
    %62 = vector.broadcast %cst_24 : f32 to vector<1x128xf32>
    %63 = arith.maximumf %61, %62 : vector<1x128xf32>
    %cst_25 = arith.constant 9.99999974E-6 : f32
    %64 = vector.broadcast %cst_25 : f32 to vector<1x128xf32>
    %65 = arith.addf %63, %64 : vector<1x128xf32>
    %66 = math.rsqrt %65 : vector<1x128xf32>
    %67 = arith.mulf %49, %66 : vector<1x128xf32>
    %68 = arith.mulf %54, %67 : vector<1x128xf32>
    %69 = arith.subf %50, %68 : vector<1x128xf32>
    %70 = vector.broadcast %67 : vector<1x128xf32> to vector<128x128xf32>
    %71 = arith.mulf %48, %70 : vector<128x128xf32>
    %72 = vector.broadcast %69 : vector<1x128xf32> to vector<128x128xf32>
    %73 = arith.addf %71, %72 : vector<128x128xf32>
    %cst_26 = arith.constant 0.000000e+00 : f32
    %74 = vector.broadcast %cst_26 : f32 to vector<128x128xf32>
    %75 = arith.maximumf %73, %74 : vector<128x128xf32>
    %76 = arith.truncf %75 : vector<128x128xf32> to vector<128x128xbf16>
    %c0_27 = arith.constant 0 : index
    %c0_28 = arith.constant 0 : index
    %77 = vector.load %arg8[%c0_27, %c0_28] : memref<128x128xbf16, #tpu.memory_space<vmem>>, vector<128x128xbf16>
    %cst_29 = arith.constant dense<0.000000e+00> : vector<128x128xf32>
    %78 = tpu.matmul %76, %77, %cst_29 {dimension_numbers = #tpu.dot_dimension_numbers<[1], [0], [0], [1], [0, 0, 1, 1], [], []>} : vector<128x128xbf16>, vector<128x128xbf16>, vector<128x128xf32> -> vector<128x128xf32>
    %c0_30 = arith.constant 0 : index
    %c0_31 = arith.constant 0 : index
    %79 = vector.load %arg9[%c0_30, %c0_31] : memref<1x128xf32, #tpu.memory_space<vmem>>, vector<1x128xf32>
    %c0_32 = arith.constant 0 : index
    %c0_33 = arith.constant 0 : index
    %80 = vector.load %arg10[%c0_32, %c0_33] : memref<1x128xf32, #tpu.memory_space<vmem>>, vector<1x128xf32>
    %cst_34 = arith.constant dense<0.000000e+00> : vector<128xf32>
    %81 = vector.multi_reduction <add>, %78, %cst_34 [0] : vector<128x128xf32> to vector<128xf32>
    %82 = vector.shape_cast %81 : vector<128xf32> to vector<1x128xf32>
    %cst_35 = arith.constant 7.812500e-03 : f32
    %83 = vector.broadcast %cst_35 : f32 to vector<1x128xf32>
    %84 = arith.mulf %82, %83 : vector<1x128xf32>
    %85 = arith.mulf %78, %78 : vector<128x128xf32>
    %cst_36 = arith.constant dense<0.000000e+00> : vector<128xf32>
    %86 = vector.multi_reduction <add>, %85, %cst_36 [0] : vector<128x128xf32> to vector<128xf32>
    %87 = vector.shape_cast %86 : vector<128xf32> to vector<1x128xf32>
    %cst_37 = arith.constant 7.812500e-03 : f32
    %88 = vector.broadcast %cst_37 : f32 to vector<1x128xf32>
    %89 = arith.mulf %87, %88 : vector<1x128xf32>
    %90 = arith.mulf %84, %84 : vector<1x128xf32>
    %91 = arith.subf %89, %90 : vector<1x128xf32>
    %cst_38 = arith.constant 0.000000e+00 : f32
    %92 = vector.broadcast %cst_38 : f32 to vector<1x128xf32>
    %93 = arith.maximumf %91, %92 : vector<1x128xf32>
    %cst_39 = arith.constant 9.99999974E-6 : f32
    %94 = vector.broadcast %cst_39 : f32 to vector<1x128xf32>
    %95 = arith.addf %93, %94 : vector<1x128xf32>
    %96 = math.rsqrt %95 : vector<1x128xf32>
    %97 = arith.mulf %79, %96 : vector<1x128xf32>
    %98 = arith.mulf %84, %97 : vector<1x128xf32>
    %99 = arith.subf %80, %98 : vector<1x128xf32>
    %100 = vector.broadcast %97 : vector<1x128xf32> to vector<128x128xf32>
    %101 = arith.mulf %78, %100 : vector<128x128xf32>
    %102 = vector.broadcast %99 : vector<1x128xf32> to vector<128x128xf32>
    %103 = arith.addf %101, %102 : vector<128x128xf32>
    %cst_40 = arith.constant 0.000000e+00 : f32
    %104 = vector.broadcast %cst_40 : f32 to vector<128x128xf32>
    %105 = arith.maximumf %103, %104 : vector<128x128xf32>
    %106 = vector.extract_strided_slice %105 {offsets = [0, 0], sizes = [32, 128], strides = [1, 1]} : vector<128x128xf32> to vector<32x128xf32>
    %107 = vector.extract_strided_slice %105 {offsets = [32, 0], sizes = [32, 128], strides = [1, 1]} : vector<128x128xf32> to vector<32x128xf32>
    %108 = arith.maximumf %106, %107 : vector<32x128xf32>
    %109 = vector.extract_strided_slice %105 {offsets = [64, 0], sizes = [32, 128], strides = [1, 1]} : vector<128x128xf32> to vector<32x128xf32>
    %110 = arith.maximumf %108, %109 : vector<32x128xf32>
    %111 = vector.extract_strided_slice %105 {offsets = [96, 0], sizes = [32, 128], strides = [1, 1]} : vector<128x128xf32> to vector<32x128xf32>
    %112 = arith.maximumf %110, %111 : vector<32x128xf32>
    %c0_41 = arith.constant 0 : index
    %c0_42 = arith.constant 0 : index
    %113 = vector.load %arg11[%c0_41, %c0_42] : memref<32x128xf32, #tpu.memory_space<vmem>>, vector<32x128xf32>
    tpu.vector_store %arg11[%c0_41, %c0_42], %112 {strides = array<i32>} : memref<32x128xf32, #tpu.memory_space<vmem>>, vector<32x128xf32>,
    return
  }
  func.func @transform_0(%arg0: i32) -> (i32, i32) {
    %c0_i32 = arith.constant 0 : i32
    %c0_i32_0 = arith.constant 0 : i32
    %c0_i32_1 = arith.constant 0 : i32
    return %c0_i32, %c0_i32_0 : i32, i32
  }
  func.func @transform_1(%arg0: i32) -> (i32, i32) {
    %c0_i32 = arith.constant 0 : i32
    %c0_i32_0 = arith.constant 0 : i32
    %c0_i32_1 = arith.constant 0 : i32
    return %c0_i32, %c0_i32_0 : i32, i32
  }
  func.func @transform_2(%arg0: i32) -> (i32, i32) {
    %c0_i32 = arith.constant 0 : i32
    %c0_i32_0 = arith.constant 0 : i32
    %c0_i32_1 = arith.constant 0 : i32
    return %c0_i32, %c0_i32_0 : i32, i32
  }
  func.func @transform_3(%arg0: i32) -> (i32, i32) {
    %c0_i32 = arith.constant 0 : i32
    %c0_i32_0 = arith.constant 0 : i32
    %c0_i32_1 = arith.constant 0 : i32
    return %c0_i32, %c0_i32_0 : i32, i32
  }
  func.func @transform_4(%arg0: i32) -> (i32, i32) {
    %c0_i32 = arith.constant 0 : i32
    %c0_i32_0 = arith.constant 0 : i32
    %c0_i32_1 = arith.constant 0 : i32
    return %c0_i32, %c0_i32_0 : i32, i32
  }
  func.func @transform_5(%arg0: i32) -> (i32, i32) {
    %c0_i32 = arith.constant 0 : i32
    %c0_i32_0 = arith.constant 0 : i32
    %c0_i32_1 = arith.constant 0 : i32
    return %c0_i32, %c0_i32_0 : i32, i32
  }
  func.func @transform_6(%arg0: i32) -> (i32, i32) {
    %c0_i32 = arith.constant 0 : i32
    %c0_i32_0 = arith.constant 0 : i32
    %c0_i32_1 = arith.constant 0 : i32
    return %c0_i32, %c0_i32_0 : i32, i32
  }
  func.func @transform_7(%arg0: i32) -> (i32, i32) {
    %c0_i32 = arith.constant 0 : i32
    %c0_i32_0 = arith.constant 0 : i32
    %c0_i32_1 = arith.constant 0 : i32
    return %c0_i32, %c0_i32_0 : i32, i32
  }
  func.func @transform_8(%arg0: i32) -> (i32, i32) {
    %c0_i32 = arith.constant 0 : i32
    %c0_i32_0 = arith.constant 0 : i32
    %c0_i32_1 = arith.constant 0 : i32
    return %c0_i32, %c0_i32_0 : i32, i32
  }
  func.func @transform_9(%arg0: i32) -> (i32, i32) {
    %c0_i32 = arith.constant 0 : i32
    %c0_i32_0 = arith.constant 0 : i32
    %c0_i32_1 = arith.constant 0 : i32
    return %c0_i32, %c0_i32_0 : i32, i32
  }
  func.func @transform_10(%arg0: i32) -> (i32, i32) {
    %c0_i32 = arith.constant 0 : i32
    %c0_i32_0 = arith.constant 0 : i32
    %c0_i32_1 = arith.constant 0 : i32
    return %c0_i32, %c0_i32_0 : i32, i32
  }
}

module attributes {stable_mosaic.version = 11 : i64} {
  func.func @kernel(%arg0: i32, %arg1: memref<32x3xf32, #tpu.memory_space<vmem>>, %arg2: memref<32x256xbf16, #tpu.memory_space<vmem>>, %arg3: memref<3x256xf32, #tpu.memory_space<vmem>>, %arg4: memref<256x256xbf16, #tpu.memory_space<vmem>>, %arg5: memref<1x256xf32, #tpu.memory_space<vmem>>, %arg6: memref<1x256xf32, #tpu.memory_space<vmem>>, %arg7: memref<256x512xbf16, #tpu.memory_space<vmem>>, %arg8: memref<1x512xf32, #tpu.memory_space<vmem>>, %arg9: memref<1x512xf32, #tpu.memory_space<vmem>>, %arg10: memref<512x1024xbf16, #tpu.memory_space<vmem>>, %arg11: memref<1x1024xf32, #tpu.memory_space<vmem>>, %arg12: memref<1x1024xf32, #tpu.memory_space<vmem>>, %arg13: memref<8x1024xf32, #tpu.memory_space<vmem>>) attributes {dimension_semantics = [#tpu.dimension_semantics<arbitrary>], iteration_bounds = array<i64: 1>, scalar_prefetch = 0 : i64, scratch_operands = 0 : i64, tpu.core_type = #tpu.core_type<tc>, window_params = [{pipeline_mode = #tpu.pipeline_mode<synchronous>, transform_indices = @transform_0, window_bounds = array<i64: 32, 3>}, {pipeline_mode = #tpu.pipeline_mode<synchronous>, transform_indices = @transform_1, window_bounds = array<i64: 32, 256>}, {pipeline_mode = #tpu.pipeline_mode<synchronous>, transform_indices = @transform_2, window_bounds = array<i64: 3, 256>}, {pipeline_mode = #tpu.pipeline_mode<synchronous>, transform_indices = @transform_3, window_bounds = array<i64: 256, 256>}, {pipeline_mode = #tpu.pipeline_mode<synchronous>, transform_indices = @transform_4, window_bounds = array<i64: 1, 256>}, {pipeline_mode = #tpu.pipeline_mode<synchronous>, transform_indices = @transform_5, window_bounds = array<i64: 1, 256>}, {pipeline_mode = #tpu.pipeline_mode<synchronous>, transform_indices = @transform_6, window_bounds = array<i64: 256, 512>}, {pipeline_mode = #tpu.pipeline_mode<synchronous>, transform_indices = @transform_7, window_bounds = array<i64: 1, 512>}, {pipeline_mode = #tpu.pipeline_mode<synchronous>, transform_indices = @transform_8, window_bounds = array<i64: 1, 512>}, {pipeline_mode = #tpu.pipeline_mode<synchronous>, transform_indices = @transform_9, window_bounds = array<i64: 512, 1024>}, {pipeline_mode = #tpu.pipeline_mode<synchronous>, transform_indices = @transform_10, window_bounds = array<i64: 1, 1024>}, {pipeline_mode = #tpu.pipeline_mode<synchronous>, transform_indices = @transform_11, window_bounds = array<i64: 1, 1024>}, {pipeline_mode = #tpu.pipeline_mode<synchronous>, transform_indices = @transform_12, window_bounds = array<i64: 8, 1024>}]} {
    %0 = tpu.iota {dimensions = array<i32: 0>} : vector<32x1xi32>
    %c7_i32 = arith.constant 7 : i32
    %1 = vector.broadcast %c7_i32 : i32 to vector<32x1xi32>
    %2 = arith.andi %0, %1 : vector<32x1xi32>
    %c2_i32 = arith.constant 2 : i32
    %3 = vector.broadcast %c2_i32 : i32 to vector<32x1xi32>
    %4 = arith.cmpi slt, %2, %3 : vector<32x1xi32>
    %5 = arith.extui %4 : vector<32x1xi1> to vector<32x1xi32>
    %6 = arith.sitofp %5 : vector<32x1xi32> to vector<32x1xf32>
    %c0 = arith.constant 0 : index
    %c0_0 = arith.constant 0 : index
    %7 = vector.load %arg1[%c0, %c0_0] : memref<32x3xf32, #tpu.memory_space<vmem>>, vector<32x3xf32>
    %c0_1 = arith.constant 0 : index
    %c0_2 = arith.constant 0 : index
    %8 = vector.load %arg3[%c0_1, %c0_2] : memref<3x256xf32, #tpu.memory_space<vmem>>, vector<3x256xf32>
    %9 = vector.extract_strided_slice %7 {offsets = [0, 0], sizes = [32, 1], strides = [1, 1]} : vector<32x3xf32> to vector<32x1xf32>
    %10 = vector.extract_strided_slice %8 {offsets = [0, 0], sizes = [1, 256], strides = [1, 1]} : vector<3x256xf32> to vector<1x256xf32>
    %11 = vector.broadcast %9 : vector<32x1xf32> to vector<32x256xf32>
    %12 = vector.broadcast %10 : vector<1x256xf32> to vector<32x256xf32>
    %13 = arith.mulf %11, %12 : vector<32x256xf32>
    %14 = vector.extract_strided_slice %7 {offsets = [0, 1], sizes = [32, 1], strides = [1, 1]} : vector<32x3xf32> to vector<32x1xf32>
    %15 = vector.extract_strided_slice %8 {offsets = [1, 0], sizes = [1, 256], strides = [1, 1]} : vector<3x256xf32> to vector<1x256xf32>
    %16 = vector.broadcast %14 : vector<32x1xf32> to vector<32x256xf32>
    %17 = vector.broadcast %15 : vector<1x256xf32> to vector<32x256xf32>
    %18 = arith.mulf %16, %17 : vector<32x256xf32>
    %19 = arith.addf %13, %18 : vector<32x256xf32>
    %20 = vector.extract_strided_slice %7 {offsets = [0, 2], sizes = [32, 1], strides = [1, 1]} : vector<32x3xf32> to vector<32x1xf32>
    %21 = vector.extract_strided_slice %8 {offsets = [2, 0], sizes = [1, 256], strides = [1, 1]} : vector<3x256xf32> to vector<1x256xf32>
    %22 = vector.broadcast %20 : vector<32x1xf32> to vector<32x256xf32>
    %23 = vector.broadcast %21 : vector<1x256xf32> to vector<32x256xf32>
    %24 = arith.mulf %22, %23 : vector<32x256xf32>
    %25 = arith.addf %19, %24 : vector<32x256xf32>
    %c0_3 = arith.constant 0 : index
    %c0_4 = arith.constant 0 : index
    %26 = vector.load %arg2[%c0_3, %c0_4] : memref<32x256xbf16, #tpu.memory_space<vmem>>, vector<32x256xbf16>
    %c0_5 = arith.constant 0 : index
    %c0_6 = arith.constant 0 : index
    %27 = vector.load %arg4[%c0_5, %c0_6] : memref<256x256xbf16, #tpu.memory_space<vmem>>, vector<256x256xbf16>
    %cst = arith.constant dense<0.000000e+00> : vector<32x256xf32>
    %28 = tpu.matmul %26, %27, %cst {dimension_numbers = #tpu.dot_dimension_numbers<[1], [0], [0], [1], [0, 0, 1, 1], [], []>} : vector<32x256xbf16>, vector<256x256xbf16>, vector<32x256xf32> -> vector<32x256xf32>
    %29 = arith.addf %25, %28 : vector<32x256xf32>
    %30 = vector.broadcast %6 : vector<32x1xf32> to vector<32x256xf32>
    %31 = arith.mulf %29, %30 : vector<32x256xf32>
    %c0_7 = arith.constant 0 : index
    %c0_8 = arith.constant 0 : index
    %32 = vector.load %arg5[%c0_7, %c0_8] : memref<1x256xf32, #tpu.memory_space<vmem>>, vector<1x256xf32>
    %c0_9 = arith.constant 0 : index
    %c0_10 = arith.constant 0 : index
    %33 = vector.load %arg6[%c0_9, %c0_10] : memref<1x256xf32, #tpu.memory_space<vmem>>, vector<1x256xf32>
    %cst_11 = arith.constant dense<0.000000e+00> : vector<256xf32>
    %34 = vector.multi_reduction <add>, %31, %cst_11 [0] : vector<32x256xf32> to vector<256xf32>
    %35 = vector.shape_cast %34 : vector<256xf32> to vector<1x256xf32>
    %cst_12 = arith.constant 1.250000e-01 : f32
    %36 = vector.broadcast %cst_12 : f32 to vector<1x256xf32>
    %37 = arith.mulf %35, %36 : vector<1x256xf32>
    %38 = arith.mulf %31, %31 : vector<32x256xf32>
    %cst_13 = arith.constant dense<0.000000e+00> : vector<256xf32>
    %39 = vector.multi_reduction <add>, %38, %cst_13 [0] : vector<32x256xf32> to vector<256xf32>
    %40 = vector.shape_cast %39 : vector<256xf32> to vector<1x256xf32>
    %cst_14 = arith.constant 1.250000e-01 : f32
    %41 = vector.broadcast %cst_14 : f32 to vector<1x256xf32>
    %42 = arith.mulf %40, %41 : vector<1x256xf32>
    %43 = arith.mulf %37, %37 : vector<1x256xf32>
    %44 = arith.subf %42, %43 : vector<1x256xf32>
    %cst_15 = arith.constant 0.000000e+00 : f32
    %45 = vector.broadcast %cst_15 : f32 to vector<1x256xf32>
    %46 = arith.maximumf %44, %45 : vector<1x256xf32>
    %cst_16 = arith.constant 9.99999974E-6 : f32
    %47 = vector.broadcast %cst_16 : f32 to vector<1x256xf32>
    %48 = arith.addf %46, %47 : vector<1x256xf32>
    %49 = math.rsqrt %48 : vector<1x256xf32>
    %50 = arith.mulf %32, %49 : vector<1x256xf32>
    %51 = arith.mulf %37, %50 : vector<1x256xf32>
    %52 = arith.subf %33, %51 : vector<1x256xf32>
    %53 = vector.broadcast %50 : vector<1x256xf32> to vector<32x256xf32>
    %54 = arith.mulf %31, %53 : vector<32x256xf32>
    %55 = vector.broadcast %52 : vector<1x256xf32> to vector<32x256xf32>
    %56 = arith.addf %54, %55 : vector<32x256xf32>
    %cst_17 = arith.constant 0.000000e+00 : f32
    %57 = vector.broadcast %cst_17 : f32 to vector<32x256xf32>
    %58 = arith.maximumf %56, %57 : vector<32x256xf32>
    %59 = vector.broadcast %6 : vector<32x1xf32> to vector<32x256xf32>
    %60 = arith.mulf %58, %59 : vector<32x256xf32>
    %61 = arith.truncf %60 : vector<32x256xf32> to vector<32x256xbf16>
    %c0_18 = arith.constant 0 : index
    %c0_19 = arith.constant 0 : index
    %62 = vector.load %arg7[%c0_18, %c0_19] : memref<256x512xbf16, #tpu.memory_space<vmem>>, vector<256x512xbf16>
    %cst_20 = arith.constant dense<0.000000e+00> : vector<32x512xf32>
    %63 = tpu.matmul %61, %62, %cst_20 {dimension_numbers = #tpu.dot_dimension_numbers<[1], [0], [0], [1], [0, 0, 1, 1], [], []>} : vector<32x256xbf16>, vector<256x512xbf16>, vector<32x512xf32> -> vector<32x512xf32>
    %c0_21 = arith.constant 0 : index
    %c0_22 = arith.constant 0 : index
    %64 = vector.load %arg8[%c0_21, %c0_22] : memref<1x512xf32, #tpu.memory_space<vmem>>, vector<1x512xf32>
    %c0_23 = arith.constant 0 : index
    %c0_24 = arith.constant 0 : index
    %65 = vector.load %arg9[%c0_23, %c0_24] : memref<1x512xf32, #tpu.memory_space<vmem>>, vector<1x512xf32>
    %cst_25 = arith.constant dense<0.000000e+00> : vector<512xf32>
    %66 = vector.multi_reduction <add>, %63, %cst_25 [0] : vector<32x512xf32> to vector<512xf32>
    %67 = vector.shape_cast %66 : vector<512xf32> to vector<1x512xf32>
    %cst_26 = arith.constant 1.250000e-01 : f32
    %68 = vector.broadcast %cst_26 : f32 to vector<1x512xf32>
    %69 = arith.mulf %67, %68 : vector<1x512xf32>
    %70 = arith.mulf %63, %63 : vector<32x512xf32>
    %cst_27 = arith.constant dense<0.000000e+00> : vector<512xf32>
    %71 = vector.multi_reduction <add>, %70, %cst_27 [0] : vector<32x512xf32> to vector<512xf32>
    %72 = vector.shape_cast %71 : vector<512xf32> to vector<1x512xf32>
    %cst_28 = arith.constant 1.250000e-01 : f32
    %73 = vector.broadcast %cst_28 : f32 to vector<1x512xf32>
    %74 = arith.mulf %72, %73 : vector<1x512xf32>
    %75 = arith.mulf %69, %69 : vector<1x512xf32>
    %76 = arith.subf %74, %75 : vector<1x512xf32>
    %cst_29 = arith.constant 0.000000e+00 : f32
    %77 = vector.broadcast %cst_29 : f32 to vector<1x512xf32>
    %78 = arith.maximumf %76, %77 : vector<1x512xf32>
    %cst_30 = arith.constant 9.99999974E-6 : f32
    %79 = vector.broadcast %cst_30 : f32 to vector<1x512xf32>
    %80 = arith.addf %78, %79 : vector<1x512xf32>
    %81 = math.rsqrt %80 : vector<1x512xf32>
    %82 = arith.mulf %64, %81 : vector<1x512xf32>
    %83 = arith.mulf %69, %82 : vector<1x512xf32>
    %84 = arith.subf %65, %83 : vector<1x512xf32>
    %85 = vector.broadcast %82 : vector<1x512xf32> to vector<32x512xf32>
    %86 = arith.mulf %63, %85 : vector<32x512xf32>
    %87 = vector.broadcast %84 : vector<1x512xf32> to vector<32x512xf32>
    %88 = arith.addf %86, %87 : vector<32x512xf32>
    %cst_31 = arith.constant 0.000000e+00 : f32
    %89 = vector.broadcast %cst_31 : f32 to vector<32x512xf32>
    %90 = arith.maximumf %88, %89 : vector<32x512xf32>
    %91 = vector.broadcast %6 : vector<32x1xf32> to vector<32x512xf32>
    %92 = arith.mulf %90, %91 : vector<32x512xf32>
    %93 = arith.truncf %92 : vector<32x512xf32> to vector<32x512xbf16>
    %c0_32 = arith.constant 0 : index
    %c0_33 = arith.constant 0 : index
    %94 = vector.load %arg10[%c0_32, %c0_33] : memref<512x1024xbf16, #tpu.memory_space<vmem>>, vector<512x1024xbf16>
    %cst_34 = arith.constant dense<0.000000e+00> : vector<32x1024xf32>
    %95 = tpu.matmul %93, %94, %cst_34 {dimension_numbers = #tpu.dot_dimension_numbers<[1], [0], [0], [1], [0, 0, 1, 1], [], []>} : vector<32x512xbf16>, vector<512x1024xbf16>, vector<32x1024xf32> -> vector<32x1024xf32>
    %c0_35 = arith.constant 0 : index
    %c0_36 = arith.constant 0 : index
    %96 = vector.load %arg11[%c0_35, %c0_36] : memref<1x1024xf32, #tpu.memory_space<vmem>>, vector<1x1024xf32>
    %c0_37 = arith.constant 0 : index
    %c0_38 = arith.constant 0 : index
    %97 = vector.load %arg12[%c0_37, %c0_38] : memref<1x1024xf32, #tpu.memory_space<vmem>>, vector<1x1024xf32>
    %cst_39 = arith.constant dense<0.000000e+00> : vector<1024xf32>
    %98 = vector.multi_reduction <add>, %95, %cst_39 [0] : vector<32x1024xf32> to vector<1024xf32>
    %99 = vector.shape_cast %98 : vector<1024xf32> to vector<1x1024xf32>
    %cst_40 = arith.constant 1.250000e-01 : f32
    %100 = vector.broadcast %cst_40 : f32 to vector<1x1024xf32>
    %101 = arith.mulf %99, %100 : vector<1x1024xf32>
    %102 = arith.mulf %95, %95 : vector<32x1024xf32>
    %cst_41 = arith.constant dense<0.000000e+00> : vector<1024xf32>
    %103 = vector.multi_reduction <add>, %102, %cst_41 [0] : vector<32x1024xf32> to vector<1024xf32>
    %104 = vector.shape_cast %103 : vector<1024xf32> to vector<1x1024xf32>
    %cst_42 = arith.constant 1.250000e-01 : f32
    %105 = vector.broadcast %cst_42 : f32 to vector<1x1024xf32>
    %106 = arith.mulf %104, %105 : vector<1x1024xf32>
    %107 = arith.mulf %101, %101 : vector<1x1024xf32>
    %108 = arith.subf %106, %107 : vector<1x1024xf32>
    %cst_43 = arith.constant 0.000000e+00 : f32
    %109 = vector.broadcast %cst_43 : f32 to vector<1x1024xf32>
    %110 = arith.maximumf %108, %109 : vector<1x1024xf32>
    %cst_44 = arith.constant 9.99999974E-6 : f32
    %111 = vector.broadcast %cst_44 : f32 to vector<1x1024xf32>
    %112 = arith.addf %110, %111 : vector<1x1024xf32>
    %113 = math.rsqrt %112 : vector<1x1024xf32>
    %114 = arith.mulf %96, %113 : vector<1x1024xf32>
    %115 = arith.mulf %101, %114 : vector<1x1024xf32>
    %116 = arith.subf %97, %115 : vector<1x1024xf32>
    %117 = vector.broadcast %114 : vector<1x1024xf32> to vector<32x1024xf32>
    %118 = arith.mulf %95, %117 : vector<32x1024xf32>
    %119 = vector.broadcast %116 : vector<1x1024xf32> to vector<32x1024xf32>
    %120 = arith.addf %118, %119 : vector<32x1024xf32>
    %cst_45 = arith.constant 0.000000e+00 : f32
    %121 = vector.broadcast %cst_45 : f32 to vector<32x1024xf32>
    %122 = arith.maximumf %120, %121 : vector<32x1024xf32>
    %123 = vector.extract_strided_slice %122 {offsets = [0, 0], sizes = [8, 1024], strides = [1, 1]} : vector<32x1024xf32> to vector<8x1024xf32>
    %124 = vector.extract_strided_slice %122 {offsets = [8, 0], sizes = [8, 1024], strides = [1, 1]} : vector<32x1024xf32> to vector<8x1024xf32>
    %125 = arith.maximumf %123, %124 : vector<8x1024xf32>
    %126 = vector.extract_strided_slice %122 {offsets = [16, 0], sizes = [8, 1024], strides = [1, 1]} : vector<32x1024xf32> to vector<8x1024xf32>
    %127 = arith.maximumf %125, %126 : vector<8x1024xf32>
    %128 = vector.extract_strided_slice %122 {offsets = [24, 0], sizes = [8, 1024], strides = [1, 1]} : vector<32x1024xf32> to vector<8x1024xf32>
    %129 = arith.maximumf %127, %128 : vector<8x1024xf32>
    %c0_46 = arith.constant 0 : index
    %c0_47 = arith.constant 0 : index
    %130 = vector.load %arg13[%c0_46, %c0_47] : memref<8x1024xf32, #tpu.memory_space<vmem>>, vector<8x1024xf32>
    tpu.vector_store %arg13[%c0_46, %c0_47], %129 {strides = array<i32>} : memref<8x1024xf32, #tpu.memory_space<vmem>>, vector<8x1024xf32>,
    return
  }
  func.func @transform_0(%arg0: i32) -> (i32, i32) {
    %c0_i32 = arith.constant 0 : i32
    %c0_i32_0 = arith.constant 0 : i32
    %c0_i32_1 = arith.constant 0 : i32
    return %c0_i32, %c0_i32_0 : i32, i32
  }
  func.func @transform_1(%arg0: i32) -> (i32, i32) {
    %c0_i32 = arith.constant 0 : i32
    %c0_i32_0 = arith.constant 0 : i32
    %c0_i32_1 = arith.constant 0 : i32
    return %c0_i32, %c0_i32_0 : i32, i32
  }
  func.func @transform_2(%arg0: i32) -> (i32, i32) {
    %c0_i32 = arith.constant 0 : i32
    %c0_i32_0 = arith.constant 0 : i32
    %c0_i32_1 = arith.constant 0 : i32
    return %c0_i32, %c0_i32_0 : i32, i32
  }
  func.func @transform_3(%arg0: i32) -> (i32, i32) {
    %c0_i32 = arith.constant 0 : i32
    %c0_i32_0 = arith.constant 0 : i32
    %c0_i32_1 = arith.constant 0 : i32
    return %c0_i32, %c0_i32_0 : i32, i32
  }
  func.func @transform_4(%arg0: i32) -> (i32, i32) {
    %c0_i32 = arith.constant 0 : i32
    %c0_i32_0 = arith.constant 0 : i32
    %c0_i32_1 = arith.constant 0 : i32
    return %c0_i32, %c0_i32_0 : i32, i32
  }
  func.func @transform_5(%arg0: i32) -> (i32, i32) {
    %c0_i32 = arith.constant 0 : i32
    %c0_i32_0 = arith.constant 0 : i32
    %c0_i32_1 = arith.constant 0 : i32
    return %c0_i32, %c0_i32_0 : i32, i32
  }
  func.func @transform_6(%arg0: i32) -> (i32, i32) {
    %c0_i32 = arith.constant 0 : i32
    %c0_i32_0 = arith.constant 0 : i32
    %c0_i32_1 = arith.constant 0 : i32
    return %c0_i32, %c0_i32_0 : i32, i32
  }
  func.func @transform_7(%arg0: i32) -> (i32, i32) {
    %c0_i32 = arith.constant 0 : i32
    %c0_i32_0 = arith.constant 0 : i32
    %c0_i32_1 = arith.constant 0 : i32
    return %c0_i32, %c0_i32_0 : i32, i32
  }
  func.func @transform_8(%arg0: i32) -> (i32, i32) {
    %c0_i32 = arith.constant 0 : i32
    %c0_i32_0 = arith.constant 0 : i32
    %c0_i32_1 = arith.constant 0 : i32
    return %c0_i32, %c0_i32_0 : i32, i32
  }
  func.func @transform_9(%arg0: i32) -> (i32, i32) {
    %c0_i32 = arith.constant 0 : i32
    %c0_i32_0 = arith.constant 0 : i32
    %c0_i32_1 = arith.constant 0 : i32
    return %c0_i32, %c0_i32_0 : i32, i32
  }
  func.func @transform_10(%arg0: i32) -> (i32, i32) {
    %c0_i32 = arith.constant 0 : i32
    %c0_i32_0 = arith.constant 0 : i32
    %c0_i32_1 = arith.constant 0 : i32
    return %c0_i32, %c0_i32_0 : i32, i32
  }
  func.func @transform_11(%arg0: i32) -> (i32, i32) {
    %c0_i32 = arith.constant 0 : i32
    %c0_i32_0 = arith.constant 0 : i32
    %c0_i32_1 = arith.constant 0 : i32
    return %c0_i32, %c0_i32_0 : i32, i32
  }
  func.func @transform_12(%arg0: i32) -> (i32, i32) {
    %c0_i32 = arith.constant 0 : i32
    %c0_i32_0 = arith.constant 0 : i32
    %c0_i32_1 = arith.constant 0 : i32
    return %c0_i32, %c0_i32_0 : i32, i32
  }
}

module attributes {stable_mosaic.version = 11 : i64} {
  func.func @kernel(%arg0: i32, %arg1: memref<16x3xf32, #tpu.memory_space<vmem>>, %arg2: memref<16x128xbf16, #tpu.memory_space<vmem>>, %arg3: memref<3x128xf32, #tpu.memory_space<vmem>>, %arg4: memref<128x128xbf16, #tpu.memory_space<vmem>>, %arg5: memref<1x128xf32, #tpu.memory_space<vmem>>, %arg6: memref<1x128xf32, #tpu.memory_space<vmem>>, %arg7: memref<128x128xbf16, #tpu.memory_space<vmem>>, %arg8: memref<1x128xf32, #tpu.memory_space<vmem>>, %arg9: memref<1x128xf32, #tpu.memory_space<vmem>>, %arg10: memref<128x256xbf16, #tpu.memory_space<vmem>>, %arg11: memref<1x256xf32, #tpu.memory_space<vmem>>, %arg12: memref<1x256xf32, #tpu.memory_space<vmem>>, %arg13: memref<8x256xf32, #tpu.memory_space<vmem>>) attributes {dimension_semantics = [#tpu.dimension_semantics<arbitrary>], iteration_bounds = array<i64: 1>, scalar_prefetch = 0 : i64, scratch_operands = 0 : i64, tpu.core_type = #tpu.core_type<tc>, window_params = [{pipeline_mode = #tpu.pipeline_mode<synchronous>, transform_indices = @transform_0, window_bounds = array<i64: 16, 3>}, {pipeline_mode = #tpu.pipeline_mode<synchronous>, transform_indices = @transform_1, window_bounds = array<i64: 16, 128>}, {pipeline_mode = #tpu.pipeline_mode<synchronous>, transform_indices = @transform_2, window_bounds = array<i64: 3, 128>}, {pipeline_mode = #tpu.pipeline_mode<synchronous>, transform_indices = @transform_3, window_bounds = array<i64: 128, 128>}, {pipeline_mode = #tpu.pipeline_mode<synchronous>, transform_indices = @transform_4, window_bounds = array<i64: 1, 128>}, {pipeline_mode = #tpu.pipeline_mode<synchronous>, transform_indices = @transform_5, window_bounds = array<i64: 1, 128>}, {pipeline_mode = #tpu.pipeline_mode<synchronous>, transform_indices = @transform_6, window_bounds = array<i64: 128, 128>}, {pipeline_mode = #tpu.pipeline_mode<synchronous>, transform_indices = @transform_7, window_bounds = array<i64: 1, 128>}, {pipeline_mode = #tpu.pipeline_mode<synchronous>, transform_indices = @transform_8, window_bounds = array<i64: 1, 128>}, {pipeline_mode = #tpu.pipeline_mode<synchronous>, transform_indices = @transform_9, window_bounds = array<i64: 128, 256>}, {pipeline_mode = #tpu.pipeline_mode<synchronous>, transform_indices = @transform_10, window_bounds = array<i64: 1, 256>}, {pipeline_mode = #tpu.pipeline_mode<synchronous>, transform_indices = @transform_11, window_bounds = array<i64: 1, 256>}, {pipeline_mode = #tpu.pipeline_mode<synchronous>, transform_indices = @transform_12, window_bounds = array<i64: 8, 256>}]} {
    %c0 = arith.constant 0 : index
    %c0_0 = arith.constant 0 : index
    %0 = vector.load %arg1[%c0, %c0_0] : memref<16x3xf32, #tpu.memory_space<vmem>>, vector<16x3xf32>
    %c0_1 = arith.constant 0 : index
    %c0_2 = arith.constant 0 : index
    %1 = vector.load %arg3[%c0_1, %c0_2] : memref<3x128xf32, #tpu.memory_space<vmem>>, vector<3x128xf32>
    %2 = vector.extract_strided_slice %0 {offsets = [0, 0], sizes = [16, 1], strides = [1, 1]} : vector<16x3xf32> to vector<16x1xf32>
    %3 = vector.extract_strided_slice %1 {offsets = [0, 0], sizes = [1, 128], strides = [1, 1]} : vector<3x128xf32> to vector<1x128xf32>
    %4 = vector.broadcast %2 : vector<16x1xf32> to vector<16x128xf32>
    %5 = vector.broadcast %3 : vector<1x128xf32> to vector<16x128xf32>
    %6 = arith.mulf %4, %5 : vector<16x128xf32>
    %7 = vector.extract_strided_slice %0 {offsets = [0, 1], sizes = [16, 1], strides = [1, 1]} : vector<16x3xf32> to vector<16x1xf32>
    %8 = vector.extract_strided_slice %1 {offsets = [1, 0], sizes = [1, 128], strides = [1, 1]} : vector<3x128xf32> to vector<1x128xf32>
    %9 = vector.broadcast %7 : vector<16x1xf32> to vector<16x128xf32>
    %10 = vector.broadcast %8 : vector<1x128xf32> to vector<16x128xf32>
    %11 = arith.mulf %9, %10 : vector<16x128xf32>
    %12 = arith.addf %6, %11 : vector<16x128xf32>
    %13 = vector.extract_strided_slice %0 {offsets = [0, 2], sizes = [16, 1], strides = [1, 1]} : vector<16x3xf32> to vector<16x1xf32>
    %14 = vector.extract_strided_slice %1 {offsets = [2, 0], sizes = [1, 128], strides = [1, 1]} : vector<3x128xf32> to vector<1x128xf32>
    %15 = vector.broadcast %13 : vector<16x1xf32> to vector<16x128xf32>
    %16 = vector.broadcast %14 : vector<1x128xf32> to vector<16x128xf32>
    %17 = arith.mulf %15, %16 : vector<16x128xf32>
    %18 = arith.addf %12, %17 : vector<16x128xf32>
    %c0_3 = arith.constant 0 : index
    %c0_4 = arith.constant 0 : index
    %19 = vector.load %arg2[%c0_3, %c0_4] : memref<16x128xbf16, #tpu.memory_space<vmem>>, vector<16x128xbf16>
    %c0_5 = arith.constant 0 : index
    %c0_6 = arith.constant 0 : index
    %20 = vector.load %arg4[%c0_5, %c0_6] : memref<128x128xbf16, #tpu.memory_space<vmem>>, vector<128x128xbf16>
    %cst = arith.constant dense<0.000000e+00> : vector<16x128xf32>
    %21 = tpu.matmul %19, %20, %cst {dimension_numbers = #tpu.dot_dimension_numbers<[1], [0], [0], [1], [0, 0, 1, 1], [], []>} : vector<16x128xbf16>, vector<128x128xbf16>, vector<16x128xf32> -> vector<16x128xf32>
    %22 = arith.addf %18, %21 : vector<16x128xf32>
    %c0_7 = arith.constant 0 : index
    %c0_8 = arith.constant 0 : index
    %23 = vector.load %arg5[%c0_7, %c0_8] : memref<1x128xf32, #tpu.memory_space<vmem>>, vector<1x128xf32>
    %c0_9 = arith.constant 0 : index
    %c0_10 = arith.constant 0 : index
    %24 = vector.load %arg6[%c0_9, %c0_10] : memref<1x128xf32, #tpu.memory_space<vmem>>, vector<1x128xf32>
    %cst_11 = arith.constant dense<0.000000e+00> : vector<128xf32>
    %25 = vector.multi_reduction <add>, %22, %cst_11 [0] : vector<16x128xf32> to vector<128xf32>
    %26 = vector.shape_cast %25 : vector<128xf32> to vector<1x128xf32>
    %cst_12 = arith.constant 6.250000e-02 : f32
    %27 = vector.broadcast %cst_12 : f32 to vector<1x128xf32>
    %28 = arith.mulf %26, %27 : vector<1x128xf32>
    %29 = arith.mulf %22, %22 : vector<16x128xf32>
    %cst_13 = arith.constant dense<0.000000e+00> : vector<128xf32>
    %30 = vector.multi_reduction <add>, %29, %cst_13 [0] : vector<16x128xf32> to vector<128xf32>
    %31 = vector.shape_cast %30 : vector<128xf32> to vector<1x128xf32>
    %cst_14 = arith.constant 6.250000e-02 : f32
    %32 = vector.broadcast %cst_14 : f32 to vector<1x128xf32>
    %33 = arith.mulf %31, %32 : vector<1x128xf32>
    %34 = arith.mulf %28, %28 : vector<1x128xf32>
    %35 = arith.subf %33, %34 : vector<1x128xf32>
    %cst_15 = arith.constant 0.000000e+00 : f32
    %36 = vector.broadcast %cst_15 : f32 to vector<1x128xf32>
    %37 = arith.maximumf %35, %36 : vector<1x128xf32>
    %cst_16 = arith.constant 9.99999974E-6 : f32
    %38 = vector.broadcast %cst_16 : f32 to vector<1x128xf32>
    %39 = arith.addf %37, %38 : vector<1x128xf32>
    %40 = math.rsqrt %39 : vector<1x128xf32>
    %41 = arith.mulf %23, %40 : vector<1x128xf32>
    %42 = arith.mulf %28, %41 : vector<1x128xf32>
    %43 = arith.subf %24, %42 : vector<1x128xf32>
    %44 = vector.broadcast %41 : vector<1x128xf32> to vector<16x128xf32>
    %45 = arith.mulf %22, %44 : vector<16x128xf32>
    %46 = vector.broadcast %43 : vector<1x128xf32> to vector<16x128xf32>
    %47 = arith.addf %45, %46 : vector<16x128xf32>
    %cst_17 = arith.constant 0.000000e+00 : f32
    %48 = vector.broadcast %cst_17 : f32 to vector<16x128xf32>
    %49 = arith.maximumf %47, %48 : vector<16x128xf32>
    %50 = arith.truncf %49 : vector<16x128xf32> to vector<16x128xbf16>
    %c0_18 = arith.constant 0 : index
    %c0_19 = arith.constant 0 : index
    %51 = vector.load %arg7[%c0_18, %c0_19] : memref<128x128xbf16, #tpu.memory_space<vmem>>, vector<128x128xbf16>
    %cst_20 = arith.constant dense<0.000000e+00> : vector<16x128xf32>
    %52 = tpu.matmul %50, %51, %cst_20 {dimension_numbers = #tpu.dot_dimension_numbers<[1], [0], [0], [1], [0, 0, 1, 1], [], []>} : vector<16x128xbf16>, vector<128x128xbf16>, vector<16x128xf32> -> vector<16x128xf32>
    %c0_21 = arith.constant 0 : index
    %c0_22 = arith.constant 0 : index
    %53 = vector.load %arg8[%c0_21, %c0_22] : memref<1x128xf32, #tpu.memory_space<vmem>>, vector<1x128xf32>
    %c0_23 = arith.constant 0 : index
    %c0_24 = arith.constant 0 : index
    %54 = vector.load %arg9[%c0_23, %c0_24] : memref<1x128xf32, #tpu.memory_space<vmem>>, vector<1x128xf32>
    %cst_25 = arith.constant dense<0.000000e+00> : vector<128xf32>
    %55 = vector.multi_reduction <add>, %52, %cst_25 [0] : vector<16x128xf32> to vector<128xf32>
    %56 = vector.shape_cast %55 : vector<128xf32> to vector<1x128xf32>
    %cst_26 = arith.constant 6.250000e-02 : f32
    %57 = vector.broadcast %cst_26 : f32 to vector<1x128xf32>
    %58 = arith.mulf %56, %57 : vector<1x128xf32>
    %59 = arith.mulf %52, %52 : vector<16x128xf32>
    %cst_27 = arith.constant dense<0.000000e+00> : vector<128xf32>
    %60 = vector.multi_reduction <add>, %59, %cst_27 [0] : vector<16x128xf32> to vector<128xf32>
    %61 = vector.shape_cast %60 : vector<128xf32> to vector<1x128xf32>
    %cst_28 = arith.constant 6.250000e-02 : f32
    %62 = vector.broadcast %cst_28 : f32 to vector<1x128xf32>
    %63 = arith.mulf %61, %62 : vector<1x128xf32>
    %64 = arith.mulf %58, %58 : vector<1x128xf32>
    %65 = arith.subf %63, %64 : vector<1x128xf32>
    %cst_29 = arith.constant 0.000000e+00 : f32
    %66 = vector.broadcast %cst_29 : f32 to vector<1x128xf32>
    %67 = arith.maximumf %65, %66 : vector<1x128xf32>
    %cst_30 = arith.constant 9.99999974E-6 : f32
    %68 = vector.broadcast %cst_30 : f32 to vector<1x128xf32>
    %69 = arith.addf %67, %68 : vector<1x128xf32>
    %70 = math.rsqrt %69 : vector<1x128xf32>
    %71 = arith.mulf %53, %70 : vector<1x128xf32>
    %72 = arith.mulf %58, %71 : vector<1x128xf32>
    %73 = arith.subf %54, %72 : vector<1x128xf32>
    %74 = vector.broadcast %71 : vector<1x128xf32> to vector<16x128xf32>
    %75 = arith.mulf %52, %74 : vector<16x128xf32>
    %76 = vector.broadcast %73 : vector<1x128xf32> to vector<16x128xf32>
    %77 = arith.addf %75, %76 : vector<16x128xf32>
    %cst_31 = arith.constant 0.000000e+00 : f32
    %78 = vector.broadcast %cst_31 : f32 to vector<16x128xf32>
    %79 = arith.maximumf %77, %78 : vector<16x128xf32>
    %80 = arith.truncf %79 : vector<16x128xf32> to vector<16x128xbf16>
    %c0_32 = arith.constant 0 : index
    %c0_33 = arith.constant 0 : index
    %81 = vector.load %arg10[%c0_32, %c0_33] : memref<128x256xbf16, #tpu.memory_space<vmem>>, vector<128x256xbf16>
    %cst_34 = arith.constant dense<0.000000e+00> : vector<16x256xf32>
    %82 = tpu.matmul %80, %81, %cst_34 {dimension_numbers = #tpu.dot_dimension_numbers<[1], [0], [0], [1], [0, 0, 1, 1], [], []>} : vector<16x128xbf16>, vector<128x256xbf16>, vector<16x256xf32> -> vector<16x256xf32>
    %c0_35 = arith.constant 0 : index
    %c0_36 = arith.constant 0 : index
    %83 = vector.load %arg11[%c0_35, %c0_36] : memref<1x256xf32, #tpu.memory_space<vmem>>, vector<1x256xf32>
    %c0_37 = arith.constant 0 : index
    %c0_38 = arith.constant 0 : index
    %84 = vector.load %arg12[%c0_37, %c0_38] : memref<1x256xf32, #tpu.memory_space<vmem>>, vector<1x256xf32>
    %cst_39 = arith.constant dense<0.000000e+00> : vector<256xf32>
    %85 = vector.multi_reduction <add>, %82, %cst_39 [0] : vector<16x256xf32> to vector<256xf32>
    %86 = vector.shape_cast %85 : vector<256xf32> to vector<1x256xf32>
    %cst_40 = arith.constant 6.250000e-02 : f32
    %87 = vector.broadcast %cst_40 : f32 to vector<1x256xf32>
    %88 = arith.mulf %86, %87 : vector<1x256xf32>
    %89 = arith.mulf %82, %82 : vector<16x256xf32>
    %cst_41 = arith.constant dense<0.000000e+00> : vector<256xf32>
    %90 = vector.multi_reduction <add>, %89, %cst_41 [0] : vector<16x256xf32> to vector<256xf32>
    %91 = vector.shape_cast %90 : vector<256xf32> to vector<1x256xf32>
    %cst_42 = arith.constant 6.250000e-02 : f32
    %92 = vector.broadcast %cst_42 : f32 to vector<1x256xf32>
    %93 = arith.mulf %91, %92 : vector<1x256xf32>
    %94 = arith.mulf %88, %88 : vector<1x256xf32>
    %95 = arith.subf %93, %94 : vector<1x256xf32>
    %cst_43 = arith.constant 0.000000e+00 : f32
    %96 = vector.broadcast %cst_43 : f32 to vector<1x256xf32>
    %97 = arith.maximumf %95, %96 : vector<1x256xf32>
    %cst_44 = arith.constant 9.99999974E-6 : f32
    %98 = vector.broadcast %cst_44 : f32 to vector<1x256xf32>
    %99 = arith.addf %97, %98 : vector<1x256xf32>
    %100 = math.rsqrt %99 : vector<1x256xf32>
    %101 = arith.mulf %83, %100 : vector<1x256xf32>
    %102 = arith.mulf %88, %101 : vector<1x256xf32>
    %103 = arith.subf %84, %102 : vector<1x256xf32>
    %104 = vector.broadcast %101 : vector<1x256xf32> to vector<16x256xf32>
    %105 = arith.mulf %82, %104 : vector<16x256xf32>
    %106 = vector.broadcast %103 : vector<1x256xf32> to vector<16x256xf32>
    %107 = arith.addf %105, %106 : vector<16x256xf32>
    %cst_45 = arith.constant 0.000000e+00 : f32
    %108 = vector.broadcast %cst_45 : f32 to vector<16x256xf32>
    %109 = arith.maximumf %107, %108 : vector<16x256xf32>
    %110 = vector.extract_strided_slice %109 {offsets = [0, 0], sizes = [8, 256], strides = [1, 1]} : vector<16x256xf32> to vector<8x256xf32>
    %111 = vector.extract_strided_slice %109 {offsets = [8, 0], sizes = [8, 256], strides = [1, 1]} : vector<16x256xf32> to vector<8x256xf32>
    %112 = arith.maximumf %110, %111 : vector<8x256xf32>
    %c0_46 = arith.constant 0 : index
    %c0_47 = arith.constant 0 : index
    %113 = vector.load %arg13[%c0_46, %c0_47] : memref<8x256xf32, #tpu.memory_space<vmem>>, vector<8x256xf32>
    tpu.vector_store %arg13[%c0_46, %c0_47], %112 {strides = array<i32>} : memref<8x256xf32, #tpu.memory_space<vmem>>, vector<8x256xf32>,
    return
  }
  func.func @transform_0(%arg0: i32) -> (i32, i32) {
    %c0_i32 = arith.constant 0 : i32
    %c0_i32_0 = arith.constant 0 : i32
    %c0_i32_1 = arith.constant 0 : i32
    return %c0_i32, %c0_i32_0 : i32, i32
  }
  func.func @transform_1(%arg0: i32) -> (i32, i32) {
    %c0_i32 = arith.constant 0 : i32
    %c0_i32_0 = arith.constant 0 : i32
    %c0_i32_1 = arith.constant 0 : i32
    return %c0_i32, %c0_i32_0 : i32, i32
  }
  func.func @transform_2(%arg0: i32) -> (i32, i32) {
    %c0_i32 = arith.constant 0 : i32
    %c0_i32_0 = arith.constant 0 : i32
    %c0_i32_1 = arith.constant 0 : i32
    return %c0_i32, %c0_i32_0 : i32, i32
  }
  func.func @transform_3(%arg0: i32) -> (i32, i32) {
    %c0_i32 = arith.constant 0 : i32
    %c0_i32_0 = arith.constant 0 : i32
    %c0_i32_1 = arith.constant 0 : i32
    return %c0_i32, %c0_i32_0 : i32, i32
  }
  func.func @transform_4(%arg0: i32) -> (i32, i32) {
    %c0_i32 = arith.constant 0 : i32
    %c0_i32_0 = arith.constant 0 : i32
    %c0_i32_1 = arith.constant 0 : i32
    return %c0_i32, %c0_i32_0 : i32, i32
  }
  func.func @transform_5(%arg0: i32) -> (i32, i32) {
    %c0_i32 = arith.constant 0 : i32
    %c0_i32_0 = arith.constant 0 : i32
    %c0_i32_1 = arith.constant 0 : i32
    return %c0_i32, %c0_i32_0 : i32, i32
  }
  func.func @transform_6(%arg0: i32) -> (i32, i32) {
    %c0_i32 = arith.constant 0 : i32
    %c0_i32_0 = arith.constant 0 : i32
    %c0_i32_1 = arith.constant 0 : i32
    return %c0_i32, %c0_i32_0 : i32, i32
  }
  func.func @transform_7(%arg0: i32) -> (i32, i32) {
    %c0_i32 = arith.constant 0 : i32
    %c0_i32_0 = arith.constant 0 : i32
    %c0_i32_1 = arith.constant 0 : i32
    return %c0_i32, %c0_i32_0 : i32, i32
  }
  func.func @transform_8(%arg0: i32) -> (i32, i32) {
    %c0_i32 = arith.constant 0 : i32
    %c0_i32_0 = arith.constant 0 : i32
    %c0_i32_1 = arith.constant 0 : i32
    return %c0_i32, %c0_i32_0 : i32, i32
  }
  func.func @transform_9(%arg0: i32) -> (i32, i32) {
    %c0_i32 = arith.constant 0 : i32
    %c0_i32_0 = arith.constant 0 : i32
    %c0_i32_1 = arith.constant 0 : i32
    return %c0_i32, %c0_i32_0 : i32, i32
  }
  func.func @transform_10(%arg0: i32) -> (i32, i32) {
    %c0_i32 = arith.constant 0 : i32
    %c0_i32_0 = arith.constant 0 : i32
    %c0_i32_1 = arith.constant 0 : i32
    return %c0_i32, %c0_i32_0 : i32, i32
  }
  func.func @transform_11(%arg0: i32) -> (i32, i32) {
    %c0_i32 = arith.constant 0 : i32
    %c0_i32_0 = arith.constant 0 : i32
    %c0_i32_1 = arith.constant 0 : i32
    return %c0_i32, %c0_i32_0 : i32, i32
  }
  func.func @transform_12(%arg0: i32) -> (i32, i32) {
    %c0_i32 = arith.constant 0 : i32
    %c0_i32_0 = arith.constant 0 : i32
    %c0_i32_1 = arith.constant 0 : i32
    return %c0_i32, %c0_i32_0 : i32, i32
  }
}

</mosaic_0001>

<bundles_post_ra>
// kernel: custom-call.14
= control target key start
LH: loop header
LB: loop body
LE: loop exit
PB: predicated region body
PF: predicated region fallthrough
CT: control target
= control target key end

     0   :  { %s6_s0 = inlined_call_operand.vmem [shape: f32[2,32], index: 0, kind: output, shape index: {}]  }

// kernel: custom-call.15
= control target key start
LH: loop header
LB: loop body
LE: loop exit
PB: predicated region body
PF: predicated region fallthrough
CT: control target
= control target key end

     0   :  { %s6_s0 = inlined_call_operand.vmem [shape: f32[2,16], index: 0, kind: output, shape index: {}]  }

// kernel: pointnet_plus_forward.3
= control target key start
LH: loop header
LB: loop body
LE: loop exit
PB: predicated region body
PF: predicated region fallthrough
CT: control target
= control target key end

     0   :  { %v1268_v0 = vmov 2   ;;  %v1269_v1 = vmov 1   ;;  %v1270_v10 = vmov 0   ;;  %v133_v38 = vlaneseq  ;;  %s1872_s0 = inlined_call_operand.vmem [shape: f32[128,3], index: 0, kind: input, shape index: {}]   ;;  %s1873_s4 = inlined_call_operand.vmem [shape: bf16[128,128], index: 4, kind: input, shape index: {}]   ;;  %s1874_s1 = inlined_call_operand.vmem [shape: f32[3,128], index: 1, kind: input, shape index: {}]   ;;  %s1875_s2 = inlined_call_operand.vmem [shape: f32[1,128], index: 2, kind: input, shape index: {}]   ;;  %s1876_s3 = inlined_call_operand.vmem [shape: f32[1,128], index: 3, kind: input, shape index: {}]   ;;  %s1877_s7 = inlined_call_operand.vmem [shape: bf16[128,128], index: 7, kind: input, shape index: {}]   ;;  %s1878_s5 = inlined_call_operand.vmem [shape: f32[1,128], index: 5, kind: input, shape index: {}]   ;;  %s1879_s6 = inlined_call_operand.vmem [shape: f32[1,128], index: 6, kind: input, shape index: {}]   ;;  %s1880_s8 = inlined_call_operand.vmem [shape: f32[1,128], index: 8, kind: input, shape index: {}]   ;;  %s1881_s9 = inlined_call_operand.vmem [shape: f32[1,128], index: 9, kind: input, shape index: {}]   ;;  %s1882_s10 = inlined_call_operand.vmem [shape: f32[32,128], index: 10, kind: output, shape index: {}]  }
   0x1   :  { %1217 = vset.pattern.permute.xlu0 %v1268_v0  ;;  %1216 = vset.pattern.permute.xlu1 %v1269_v1  ;;  %v36_v2 = vld [vmem:[%s1872_s0] sm:$0xff]  ;;  %v41_v3 = vld [vmem:[%s1872_s0 + $0x28] sm:$0xff]  ;;  %v42_v5 = vld [vmem:[%s1872_s0 + $0x30] sm:$0xff] }
   0x2   :  { %254 = vperm.xlu0 %1217, %v36_v2   ;;  %154 = vperm.xlu1 %1216, %v36_v2   ;;  %v37_v4 = vld [vmem:[%s1872_s0 + $0x8] sm:$0xff]  ;;  %v38_v6 = vld [vmem:[%s1872_s0 + $0x10] sm:$0xff]  ;;  %v47_v8 = vld [vmem:[%s1872_s0 + $0x58] sm:$0xff]  ;;  %v134_v42 = vshrl.u32 %v133_v38, 7 }
   0x3   :  { %v46_v7 = vld [vmem:[%s1872_s0 + $0x50] sm:$0xff]  ;;  %v39_v9 = vld [vmem:[%s1872_s0 + $0x18] sm:$0xff]  ;;  %v40_v11 = vld [vmem:[%s1872_s0 + $0x20] sm:$0xff] }
   0x4   :  { %v44_v12 = vld [vmem:[%s1872_s0 + $0x40] sm:$0xff]  ;;  %v45_v13 = vld [vmem:[%s1872_s0 + $0x48] sm:$0xff]  ;;  %v50_v15 = vld [vmem:[%s1872_s0 + $0x70] sm:$0xff]  ;;  %v1450_v46 = vsub.s32 0, %v134_v42  ;;  %v219_v47 = vsub.s32 1, %v134_v42  ;;  %v319_v48 = vsub.s32 2, %v134_v42 }
   0x5   :  { %v49_v14 = vld [vmem:[%s1872_s0 + $0x68] sm:$0xff]  ;;  %v43_v16 = vld [vmem:[%s1872_s0 + $0x38] sm:$0xff]  ;;  %v48_v18 = vld [vmem:[%s1872_s0 + $0x60] sm:$0xff] }
   0x6   :  { %274 = vperm.xlu0 %1217, %v41_v3   ;;  %158 = vperm.xlu1 %1216, %v37_v4   ;;  %v51_v17 = vld [vmem:[%s1872_s0 + $0x78] sm:$0xff]  ;;  %v1247_v37 = vld [vmem:[%s1873_s4 + $0x30] sm:$0xff]   ;;  %v1248_v41 = vld [vmem:[%s1873_s4 + $0x28] sm:$0xff]  }
   0x7   :  { %v1246_v34 = vld [vmem:[%s1873_s4 + $0x38] sm:$0xff]   ;;  %v1249_v45 = vld [vmem:[%s1873_s4 + $0x20] sm:$0xff]   ;;  %v1251_v59 = vld [vmem:[%s1873_s4 + $0x10] sm:$0xff]  }
   0x8   :  { %1149 = vmatprep.subr.bf16.mxu0 %v1246_v34  ;;  %v52_v49 = vld [vmem:[%s1874_s1] sm:$0x7]  ;;  %v1250_v51 = vld [vmem:[%s1873_s4 + $0x18] sm:$0xff]  }
   0x9   :  { %1150 = vmatpush3.bf16.msra.mxu0 %v1246_v34  ;;  %v1460_v53 = vrot.slane %v52_v49, %v219_v47  ;;  %v1462_v54 = vrot.slane %v52_v49, %v319_v48  ;;  %v1465_v55 = vrot.slane %v52_v49, %v1450_v46 }
   0xa   :  { %278 = vperm.xlu0 %1217, %v42_v5   ;;  %162 = vperm.xlu1 %1216, %v38_v6  }
   0xb   :  { %1151 = vmatprep.subr.bf16.mxu0 %v1247_v37 }
   0xd   :  { %1152 = vmatpush3.bf16.msra.mxu0 %v1247_v37 }
   0xe   :  { %294 = vperm.xlu0 %1217, %v46_v7   ;;  %1218 = vset.pattern.permute.xlu1 %v1268_v0 }
   0xf   :  { %258 = vperm.xlu1 %1218, %v37_v4   ;;  %1153 = vmatprep.subr.bf16.mxu0 %v1248_v41 }
  0x11   :  { %1154 = vmatpush3.bf16.msra.mxu0 %v1248_v41 }
  0x12   :  { %298 = vperm.xlu0 %1217, %v47_v8   ;;  %1155 = vmatprep.subr.bf16.mxu0 %v1249_v45 }
  0x13   :  { %1219 = vset.pattern.permute.xlu1 %v1270_v10 }
  0x14   :  { %70 = vperm.xlu1 %1219, %v39_v9  }
  0x15   :  { %1156 = vmatpush3.bf16.msra.mxu0 %v1249_v45 }
  0x16   :  { %1237 = vset.pattern.permute.xlu0 %v1269_v1  ;;  %1157 = vmatprep.subr.bf16.mxu0 %v1250_v51 }
  0x17   :  { %166 = vperm.xlu0 %1237, %v39_v9  }
  0x18   :  { %1220 = vset.pattern.permute.xlu1 %v1268_v0 }
  0x19   :  { %262 = vperm.xlu1 %1220, %v38_v6   ;;  %1158 = vmatpush3.bf16.msra.mxu0 %v1250_v51 }
  0x1a   :  { %1159 = vmatprep.subr.bf16.mxu0 %v1251_v59 }
  0x1b   :  { %170 = vperm.xlu0 %1237, %v40_v11  }
  0x1d   :  { %1221 = vset.pattern.permute.xlu1 %v1270_v10  ;;  %1160 = vmatpush3.bf16.msra.mxu0 %v1251_v59 }
  0x1e   :  { %75 = vperm.xlu1 %1221, %v40_v11  }
  0x1f   :  { %186 = vperm.xlu0 %1237, %v44_v12  }
  0x22   :  { %1222 = vset.pattern.permute.xlu1 %v1268_v0 }
  0x23   :  { %190 = vperm.xlu0 %1237, %v45_v13   ;;  %266 = vperm.xlu1 %1222, %v39_v9  }
  0x27   :  { %206 = vperm.xlu0 %1237, %v49_v14   ;;  %1223 = vset.pattern.permute.xlu1 %v1269_v1 }
  0x28   :  { %174 = vperm.xlu1 %1223, %v41_v3  }
  0x2b   :  { %210 = vperm.xlu0 %1237, %v50_v15  }
  0x2c   :  { %1224 = vset.pattern.permute.xlu1 %v1268_v0 }
  0x2d   :  { %270 = vperm.xlu1 %1224, %v40_v11  }
  0x2f   :  { %1241 = vset.pattern.permute.xlu0 %v1270_v10 }
  0x30   :  { %55 = vperm.xlu0 %1241, %v36_v2  }
  0x31   :  { %1225 = vset.pattern.permute.xlu1 %v1269_v1 }
  0x32   :  { %178 = vperm.xlu1 %1225, %v42_v5  }
  0x34   :  { %60 = vperm.xlu0 %1241, %v37_v4   ;;  %v1253_v4 = vld [vmem:[%s1873_s4] sm:$0xff]  }
  0x36   :  { %1226 = vset.pattern.permute.xlu1 %v1270_v10 }
  0x37   :  { %90 = vperm.xlu1 %1226, %v43_v16  }
  0x38   :  { %65 = vperm.xlu0 %1241, %v38_v6  }
  0x3b   :  { %1227 = vset.pattern.permute.xlu1 %v1269_v1 }
  0x3c   :  { %80 = vperm.xlu0 %1241, %v41_v3   ;;  %182 = vperm.xlu1 %1227, %v43_v16   ;;  %v1252_v3 = vld [vmem:[%s1873_s4 + $0x8] sm:$0xff]  }
  0x3d   :  { %1161 = vmatprep.subr.bf16.mxu0 %v1252_v3 }
  0x3e   :  { %1162 = vmatpush3.bf16.msra.mxu0 %v1252_v3 }
  0x3f   :  { %1163 = vmatprep.subr.bf16.mxu0 %v1253_v4 }
  0x40   :  { %85 = vperm.xlu0 %1241, %v42_v5   ;;  %1228 = vset.pattern.permute.xlu1 %v1270_v10 }
  0x41   :  { %95 = vperm.xlu1 %1228, %v44_v12  }
  0x42   :  { %1164 = vmatpush3.bf16.msra.mxu0 %v1253_v4 }
  0x44   :  { %105 = vperm.xlu0 %1241, %v46_v7  }
  0x45   :  { %1229 = vset.pattern.permute.xlu1 %v1268_v0 }
  0x46   :  { %282 = vperm.xlu1 %1229, %v43_v16  }
  0x48   :  { %110 = vperm.xlu0 %1241, %v47_v8  }
  0x4a   :  { %1230 = vset.pattern.permute.xlu1 %v1270_v10 }
  0x4b   :  { %100 = vperm.xlu1 %1230, %v45_v13  }
  0x4c   :  { %130 = vperm.xlu0 %1241, %v51_v17  }
  0x4f   :  { %1231 = vset.pattern.permute.xlu1 %v1268_v0 }
  0x50   :  { %286 = vperm.xlu1 %1231, %v44_v12   ;;  %1245 = vset.pattern.permute.xlu0 %v1268_v0 }
  0x51   :  { %314 = vperm.xlu0 %1245, %v51_v17  }
  0x54   :  { %1232 = vset.pattern.permute.xlu1 %v1269_v1 }
  0x55   :  { %194 = vperm.xlu1 %1232, %v46_v7  }
  0x59   :  { %1233 = vset.pattern.permute.xlu1 %v1268_v0 }
  0x5a   :  { %290 = vperm.xlu1 %1233, %v45_v13  }
  0x5e   :  { %1234 = vset.pattern.permute.xlu1 %v1269_v1 }
  0x5f   :  { %198 = vperm.xlu1 %1234, %v47_v8  }
  0x63   :  { %1235 = vset.pattern.permute.xlu1 %v1270_v10 }
  0x64   :  { %115 = vperm.xlu1 %1235, %v48_v18  }
  0x68   :  { %1236 = vset.pattern.permute.xlu1 %v1269_v1 }
  0x69   :  { %202 = vperm.xlu1 %1236, %v48_v18  }
  0x6d   :  { %1238 = vset.pattern.permute.xlu1 %v1270_v10 }
  0x6e   :  { %120 = vperm.xlu1 %1238, %v49_v14  }
  0x72   :  { %1239 = vset.pattern.permute.xlu1 %v1268_v0 }
  0x73   :  { %302 = vperm.xlu1 %1239, %v48_v18  }
  0x77   :  { %1240 = vset.pattern.permute.xlu1 %v1270_v10 }
  0x78   :  { %125 = vperm.xlu1 %1240, %v50_v15  }
  0x7c   :  { %1242 = vset.pattern.permute.xlu1 %v1268_v0 }
  0x7d   :  { %306 = vperm.xlu1 %1242, %v49_v14   ;;  %v1402_v19 = vpop.permute.xlu1 %154  ;;  %v1404_v20 = vpop.permute.xlu0 %254 }
  0x7e   :  { %v221_v16 = vmul.f32 %v1460_v53, %v1402_v19 }
  0x81   :  { %1243 = vset.pattern.permute.xlu1 %v1269_v1  ;;  %v159_v21 = vpop.permute.xlu1 %158  ;;  %v1407_v22 = vpop.permute.xlu0 %274 }
  0x82   :  { %214 = vperm.xlu1 %1243, %v51_v17   ;;  %v222_v57 = vmul.f32 %v1460_v53, %v159_v21  ;;  %v321_v17 = vmul.f32 %v1462_v54, %v1404_v20 }
  0x85   :  { %v163_v23 = vpop.permute.xlu1 %162  ;;  %v1409_v24 = vpop.permute.xlu0 %278 }
  0x86   :  { %1244 = vset.pattern.permute.xlu1 %v1268_v0  ;;  %v223_v0 = vmul.f32 %v1460_v53, %v163_v23 }
  0x87   :  { %310 = vperm.xlu1 %1244, %v50_v15  }
  0x89   :  { %v1412_v25 = vpop.permute.xlu0 %294 }
  0x8a   :  { %v259_v26 = vpop.permute.xlu1 %258 }
  0x8b   :  { %v322_v60 = vmul.f32 %v1462_v54, %v259_v26 }
  0x8d   :  { %v1414_v27 = vpop.permute.xlu0 %298 }
  0x8f   :  { %v1416_v28 = vpop.permute.xlu1 %70 }
  0x90   :  { %v140_v34 = vmul.f32 %v1465_v55, %v1416_v28 }
  0x92   :  { %v1418_v29 = vpop.permute.xlu0 %166 }
  0x93   :  { %v224_v23 = vmul.f32 %v1460_v53, %v1418_v29 }
  0x94   :  { %v263_v30 = vpop.permute.xlu1 %262 }
  0x95   :  { %v323_v5 = vmul.f32 %v1462_v54, %v263_v30  ;;  %v240_v20 = vadd.f32 %v224_v23, %v140_v34 }
  0x96   :  { %v1420_v31 = vpop.permute.xlu0 %170 }
  0x97   :  { %v225_v41 = vmul.f32 %v1460_v53, %v1420_v31 }
  0x99   :  { %v1422_v32 = vpop.permute.xlu1 %75 }
  0x9a   :  { %v1424_v33 = vpop.permute.xlu0 %186  ;;  %v141_v29 = vmul.f32 %v1465_v55, %v1422_v32 }
  0x9c   :  { %v241_v51 = vadd.f32 %v225_v41, %v141_v29 }
  0x9e   :  { %v1429_v35 = vpop.permute.xlu1 %266  ;;  %v1431_v36 = vpop.permute.xlu0 %190 }
  0x9f   :  { %v324_v37 = vmul.f32 %v1462_v54, %v1429_v35 }
  0xa1   :  { %v1519_v47 = vadd.f32 %v324_v37, %v240_v20 }
  0xa2   :  { %v1436_v39 = vpop.permute.xlu0 %206 }
  0xa3   :  { %v1438_v40 = vpop.permute.xlu1 %174  ;;  %v380_v59 = vmul.f32 %v1519_v47, %v1519_v47 }
  0xa6   :  { %v1443_v43 = vpop.permute.xlu0 %210 }
  0xa8   :  { %v1445_v44 = vpop.permute.xlu1 %270 }
  0xa9   :  { %v325_v48 = vmul.f32 %v1462_v54, %v1445_v44 }
  0xab   :  { %v56_v50 = vpop.permute.xlu0 %55 }
  0xac   :  { %v137_v14 = vmul.f32 %v1465_v55, %v56_v50 }
  0xad   :  { %v1458_v52 = vpop.permute.xlu1 %178 }
  0xae   :  { %v237_v18 = vadd.f32 %v221_v16, %v137_v14  ;;  %v227_v44 = vmul.f32 %v1460_v53, %v1458_v52  ;;  %v229_v14 = vmul.f32 %v1460_v53, %v1424_v33 }
  0xaf   :  { %v61_v56 = vpop.permute.xlu0 %60 }
  0xb0   :  { %v138_v58 = vmul.f32 %v1465_v55, %v61_v56  ;;  %v1499_v30 = vadd.f32 %v321_v17, %v237_v18  ;;  %v226_v56 = vmul.f32 %v1460_v53, %v1438_v40 }
  0xb2   :  { %v238_v61 = vadd.f32 %v222_v57, %v138_v58  ;;  %v1473_v62 = vpop.permute.xlu1 %90  ;;  %v377_v42 = vmul.f32 %v1499_v30, %v1499_v30 }
  0xb3   :  { %v66_v63 = vpop.permute.xlu0 %65 }
  0xb4   :  { %v1476_v1 = vadd.f32 %v322_v60, %v238_v61  ;;  %v139_v2 = vmul.f32 %v1465_v55, %v66_v63  ;;  %v1530_v60 = vadd.f32 %v325_v48, %v241_v51 }
  0xb6   :  { %v239_v6 = vadd.f32 %v223_v0, %v139_v2  ;;  %v378_v19 = vmul.f32 %v1476_v1, %v1476_v1  ;;  %v355_v35 = vadd.f32 %v1476_v1, %v1499_v30  ;;  %v326_v0 = vmul.f32 %v1462_v54, %v1407_v22 }
  0xb7   :  { %v183_v7 = vpop.permute.xlu1 %182  ;;  %v81_v26 = vpop.permute.xlu0 %80  ;;  %v381_v52 = vmul.f32 %v1530_v60, %v1530_v60  ;;  %v144_v22 = vmul.f32 %v1465_v55, %v1473_v62 }
  0xb8   :  { %v1486_v8 = vadd.f32 %v323_v5, %v239_v6  ;;  %v393_v49 = vadd.f32 %v378_v19, %v377_v42  ;;  %v142_v31 = vmul.f32 %v1465_v55, %v81_v26  ;;  %v228_v4 = vmul.f32 %v1460_v53, %v183_v7 }
  0xb9   :  { %v327_v6 = vmul.f32 %v1462_v54, %v1409_v24  ;;  %v230_v24 = vmul.f32 %v1460_v53, %v1431_v36 }
  0xba   :  { %v379_v28 = vmul.f32 %v1486_v8, %v1486_v8  ;;  %v356_v32 = vadd.f32 %v355_v35, %v1486_v8  ;;  %v242_v61 = vadd.f32 %v226_v56, %v142_v31  ;;  %v244_v33 = vadd.f32 %v228_v4, %v144_v22 }
  0xbb   :  { %v86_v45 = vpop.permute.xlu0 %85 }
  0xbc   :  { %v96_v9 = vpop.permute.xlu1 %95  ;;  %v394_v57 = vadd.f32 %v393_v49, %v379_v28  ;;  %v143_v58 = vmul.f32 %v1465_v55, %v86_v45  ;;  %v357_v63 = vadd.f32 %v356_v32, %v1519_v47  ;;  %v1544_v16 = vadd.f32 %v326_v0, %v242_v61 }
  0xbd   :  { %v145_v18 = vmul.f32 %v1465_v55, %v96_v9 }
  0xbe   :  { %v395_v2 = vadd.f32 %v394_v57, %v380_v59  ;;  %v243_v3 = vadd.f32 %v227_v44, %v143_v58  ;;  %v358_v17 = vadd.f32 %v357_v63, %v1530_v60  ;;  %v382_v62 = vmul.f32 %v1544_v16, %v1544_v16 }
  0xbf   :  { %v106_v5 = vpop.permute.xlu0 %105  ;;  %v245_v41 = vadd.f32 %v229_v14, %v145_v18  ;;  %v332_v44 = vmul.f32 %v1462_v54, %v1414_v27  ;;  %v234_v14 = vmul.f32 %v1460_v53, %v1436_v39 }
  0xc0   :  { %v396_v23 = vadd.f32 %v395_v2, %v381_v52  ;;  %v1551_v26 = vadd.f32 %v327_v6, %v243_v3  ;;  %v359_v9 = vadd.f32 %v358_v17, %v1544_v16 }
  0xc1   :  { %v283_v10 = vpop.permute.xlu1 %282 }
  0xc2   :  { %v328_v7 = vmul.f32 %v1462_v54, %v283_v10  ;;  %v397_v42 = vadd.f32 %v396_v23, %v382_v62  ;;  %v383_v36 = vmul.f32 %v1551_v26, %v1551_v26  ;;  %v360_v32 = vadd.f32 %v359_v9, %v1551_v26 }
  0xc3   :  { %v111_v19 = vpop.permute.xlu0 %110  ;;  %v235_v62 = vmul.f32 %v1460_v53, %v1443_v43 }
  0xc4   :  { %v1560_v10 = vadd.f32 %v328_v7, %v244_v33  ;;  %v398_v51 = vadd.f32 %v397_v42, %v383_v36 }
  0xc6   :  { %v101_v11 = vpop.permute.xlu1 %100  ;;  %v361_v59 = vadd.f32 %v360_v32, %v1560_v10 }
  0xc7   :  { %v146_v34 = vmul.f32 %v1465_v55, %v101_v11  ;;  %v147_v11 = vmul.f32 %v1465_v55, %v106_v5  ;;  %v131_v27 = vpop.permute.xlu0 %130 }
  0xc9   :  { %v246_v28 = vadd.f32 %v230_v24, %v146_v34 }
  0xcb   :  { %v287_v12 = vpop.permute.xlu1 %286 }
  0xcc   :  { %v329_v37 = vmul.f32 %v1462_v54, %v287_v12  ;;  %v148_v12 = vmul.f32 %v1465_v55, %v111_v19  ;;  %v315_v34 = vpop.permute.xlu0 %314 }
  0xcd   :  { %v336_v36 = vmul.f32 %v1462_v54, %v315_v34 }
  0xce   :  { %v1567_v35 = vadd.f32 %v329_v37, %v245_v41  ;;  %v152_v37 = vmul.f32 %v1465_v55, %v131_v27 }
  0xd0   :  { %v1488_v13 = vpop.permute.xlu1 %194  ;;  %v385_v56 = vmul.f32 %v1567_v35, %v1567_v35  ;;  %v362_v2 = vadd.f32 %v361_v59, %v1567_v35 }
  0xd1   :  { %v231_v45 = vmul.f32 %v1460_v53, %v1488_v13 }
  0xd3   :  { %v247_v57 = vadd.f32 %v231_v45, %v147_v11 }
  0xd5   :  { %v291_v15 = vpop.permute.xlu1 %290 }
  0xd6   :  { %v330_v29 = vmul.f32 %v1462_v54, %v291_v15  ;;  %v384_v15 = vmul.f32 %v1560_v10, %v1560_v10 }
  0xd8   :  { %v1575_v31 = vadd.f32 %v330_v29, %v246_v28  ;;  %v399_v61 = vadd.f32 %v398_v51, %v384_v15 }
  0xda   :  { %v1495_v21 = vpop.permute.xlu1 %198  ;;  %v386_v63 = vmul.f32 %v1575_v31, %v1575_v31  ;;  %v400_v5 = vadd.f32 %v399_v61, %v385_v56  ;;  %v363_v52 = vadd.f32 %v362_v2, %v1575_v31 }
  0xdb   :  { %v232_v48 = vmul.f32 %v1460_v53, %v1495_v21  ;;  %v331_v21 = vmul.f32 %v1462_v54, %v1412_v25 }
  0xdc   :  { %v401_v18 = vadd.f32 %v400_v5, %v386_v63 }
  0xdd   :  { %v248_v58 = vadd.f32 %v232_v48, %v148_v12  ;;  %v1593_v6 = vadd.f32 %v331_v21, %v247_v57 }
  0xdf   :  { %v1507_v38 = vpop.permute.xlu1 %115  ;;  %v1595_v25 = vadd.f32 %v332_v44, %v248_v58  ;;  %v387_v23 = vmul.f32 %v1593_v6, %v1593_v6  ;;  %v364_v39 = vadd.f32 %v363_v52, %v1593_v6 }
  0xe0   :  { %v149_v3 = vmul.f32 %v1465_v55, %v1507_v38 }
  0xe1   :  { %v388_v24 = vmul.f32 %v1595_v25, %v1595_v25  ;;  %v402_v9 = vadd.f32 %v401_v18, %v387_v23  ;;  %v365_v41 = vadd.f32 %v364_v39, %v1595_v25 }
  0xe3   :  { %v403_v11 = vadd.f32 %v402_v9, %v388_v24 }
  0xe4   :  { %v203_v50 = vpop.permute.xlu1 %202 }
  0xe5   :  { %v233_v13 = vmul.f32 %v1460_v53, %v203_v50 }
  0xe7   :  { %v249_v22 = vadd.f32 %v233_v13, %v149_v3 }
  0xe9   :  { %v121_v40 = vpop.permute.xlu1 %120 }
  0xea   :  { %v150_v4 = vmul.f32 %v1465_v55, %v121_v40 }
  0xec   :  { %v250_v38 = vadd.f32 %v234_v14, %v150_v4 }
  0xee   :  { %v303_v20 = vpop.permute.xlu1 %302 }
  0xef   :  { %v333_v50 = vmul.f32 %v1462_v54, %v303_v20 }
  0xf1   :  { %v1601_v7 = vadd.f32 %v333_v50, %v249_v22 }
  0xf3   :  { %v126_v49 = vpop.permute.xlu1 %125  ;;  %v389_v29 = vmul.f32 %v1601_v7, %v1601_v7  ;;  %v366_v28 = vadd.f32 %v365_v41, %v1601_v7 }
  0xf4   :  { %v151_v19 = vmul.f32 %v1465_v55, %v126_v49 }
  0xf5   :  { %v404_v43 = vadd.f32 %v403_v11, %v389_v29 }
  0xf6   :  { %v251_v45 = vadd.f32 %v235_v62, %v151_v19 }
  0xf8   :  { %v307_v0 = vpop.permute.xlu1 %306 }
  0xf9   :  { %v334_v17 = vmul.f32 %v1462_v54, %v307_v0 }
  0xfb   :  { %v1611_v20 = vadd.f32 %v334_v17, %v250_v38 }
  0xfd   :  { %v215_v40 = vpop.permute.xlu1 %214  ;;  %v390_v55 = vmul.f32 %v1611_v20, %v1611_v20 }
  0xfe   :  { %v236_v33 = vmul.f32 %v1460_v53, %v215_v40  ;;  %v367_v53 = vadd.f32 %v366_v28, %v1611_v20  ;;  %v353_v40 = vld [vmem:[%s1875_s2] sm:$0x1] }
  0xff   :  { %v405_v32 = vadd.f32 %v404_v43, %v390_v55 }
 0x100   :  { %v252_v42 = vadd.f32 %v236_v33, %v152_v37  ;;  %v354_v33 = vld [vmem:[%s1876_s3] sm:$0x1] }
 0x102   :  { %v311_v12 = vpop.permute.xlu1 %310  ;;  %v1624_v49 = vadd.f32 %v336_v36, %v252_v42 }
 0x103   :  { %v335_v48 = vmul.f32 %v1462_v54, %v311_v12 }
 0x104   :  { %v392_v57 = vmul.f32 %v1624_v49, %v1624_v49 }
 0x105   :  { %v351_v15 = vadd.f32 %v335_v48, %v251_v45 }
 0x107   :  { %v368_v51 = vadd.f32 %v367_v53, %v351_v15  ;;  %v391_v56 = vmul.f32 %v351_v15, %v351_v15 }
 0x109   :  { %v369_v58 = vadd.f32 %v368_v51, %v1624_v49  ;;  %v406_v59 = vadd.f32 %v405_v32, %v391_v56 }
 0x10b   :  { %v370_v13 = vrot.slane %v369_v58, 4  ;;  %v407_v21 = vadd.f32 %v406_v59, %v392_v57 }
 0x10d   :  { %v371_v44 = vadd.f32 %v370_v13, %v369_v58  ;;  %v408_v61 = vrot.slane %v407_v21, 4 }
 0x10f   :  { %v372_v54 = vrot.slane %v371_v44, 2  ;;  %v409_v63 = vadd.f32 %v408_v61, %v407_v21 }
 0x111   :  { %v373_v0 = vadd.f32 %v372_v54, %v371_v44  ;;  %v410_v2 = vrot.slane %v409_v63, 2 }
 0x113   :  { %v374_v3 = vrot.slane %v373_v0, 1  ;;  %v411_v4 = vadd.f32 %v410_v2, %v409_v63 }
 0x115   :  { %v375_v50 = vadd.f32 %v374_v3, %v373_v0  ;;  %v412_v5 = vrot.slane %v411_v4, 1 }
 0x117   :  { %v376_v27 = vmul.f32 0.0078125, %v375_v50  ;;  %v413_v14 = vadd.f32 %v412_v5, %v411_v4 }
 0x119   :  { %v414_v52 = vmul.f32 0.0078125, %v413_v14  ;;  %v415_v22 = vmul.f32 %v376_v27, %v376_v27 }
 0x11b   :  { %v416_v17 = vsub.f32 %v414_v52, %v415_v22 }
 0x11d   :  { %v417_v18 = vmax.f32 %v416_v17, 0.0 }
 0x11f   :  { %v418_v38 = vadd.f32 1e-05, %v417_v18 }
 0x121   :  { %1262 = vrsqrt.f32 %v418_v38 }
 0x12e   :  { %v1263_v23 = vpop.eup %1262 }
 0x12f   :  { %v420_v24 = vmul.f32 %v1263_v23, %v353_v40 }
 0x131   :  { %v421_v34 = vmul.f32 %v420_v24, %v376_v27  ;;  %v427_v39 = vrot.slane %v420_v24, %v1450_v46 }
 0x133   :  { %v422_v37 = vsub.f32 %v354_v33, %v421_v34  ;;  %v429_v19 = vmul.f32 %v427_v39, %v1499_v30  ;;  %v430_v9 = vmul.f32 %v427_v39, %v1476_v1  ;;  %v431_v41 = vmul.f32 %v427_v39, %v1486_v8  ;;  %v1256_v33 = vld [vmem:[%s1877_s7 + $0x28] sm:$0xff]   ;;  %v1257_v34 = vld [vmem:[%s1877_s7 + $0x20] sm:$0xff]  }
 0x134   :  { %v432_v29 = vmul.f32 %v427_v39, %v1519_v47  ;;  %v433_v42 = vmul.f32 %v427_v39, %v1530_v60  ;;  %v434_v36 = vmul.f32 %v427_v39, %v1544_v16  ;;  %v435_v8 = vmul.f32 %v427_v39, %v1551_v26 }
 0x135   :  { %v449_v62 = vrot.slane %v422_v37, %v1450_v46  ;;  %v436_v47 = vmul.f32 %v427_v39, %v1560_v10  ;;  %v437_v16 = vmul.f32 %v427_v39, %v1567_v35  ;;  %v438_v57 = vmul.f32 %v427_v39, %v1575_v31  ;;  %v1259_v37 = vld [vmem:[%s1877_s7 + $0x10] sm:$0xff]  }
 0x136   :  { %v443_v58 = vmul.f32 %v427_v39, %v351_v15  ;;  %v444_v54 = vmul.f32 %v427_v39, %v1624_v49  ;;  %v439_v31 = vmul.f32 %v427_v39, %v1593_v6  ;;  %v440_v15 = vmul.f32 %v427_v39, %v1595_v25 }
 0x137   :  { %v451_v11 = vadd.f32 %v449_v62, %v429_v19  ;;  %v452_v12 = vadd.f32 %v449_v62, %v430_v9  ;;  %v453_v28 = vadd.f32 %v449_v62, %v431_v41  ;;  %v454_v45 = vadd.f32 %v449_v62, %v432_v29  ;;  %v1260_v19 = vld [vmem:[%s1877_s7 + $0x8] sm:$0xff]  }
 0x138   :  { %v455_v55 = vadd.f32 %v449_v62, %v433_v42  ;;  %v456_v48 = vadd.f32 %v449_v62, %v434_v36  ;;  %v457_v59 = vadd.f32 %v449_v62, %v435_v8  ;;  %v458_v13 = vadd.f32 %v449_v62, %v436_v47 }
 0x139   :  { %v467_v43 = vmax.f32 %v451_v11, 0.0  ;;  %v468_v30 = vmax.f32 %v452_v12, 0.0  ;;  %v469_v53 = vmax.f32 %v453_v28, 0.0  ;;  %v470_v32 = vmax.f32 %v454_v45, 0.0 }
 0x13a   :  { %v471_v51 = vmax.f32 %v455_v55, 0.0  ;;  %v472_v1 = vmax.f32 %v456_v48, 0.0  ;;  %v459_v44 = vadd.f32 %v449_v62, %v437_v16  ;;  %v460_v61 = vadd.f32 %v449_v62, %v438_v57 }
 0x13b   :  { %v483_v56 = vpack.c.bf16 %v468_v30, %v467_v43  ;;  %v484_v60 = vpack.c.bf16 %v470_v32, %v469_v53  ;;  %v465_v63 = vadd.f32 %v449_v62, %v443_v58  ;;  %v473_v26 = vmax.f32 %v457_v59, 0.0 }
 0x13c   :  { %v485_v21 = vpack.c.bf16 %v472_v1, %v471_v51  ;;  %v474_v10 = vmax.f32 %v458_v13, 0.0  ;;  %v466_v0 = vadd.f32 %v449_v62, %v444_v54  ;;  %v475_v3 = vmax.f32 %v459_v44, 0.0 }
 0x13d   :  { %1165 = vmatprep.mubr.bf16.mxu0 %v483_v56  ;;  %v481_v2 = vmax.f32 %v465_v63, 0.0  ;;  %v476_v35 = vmax.f32 %v460_v61, 0.0  ;;  %v441_v50 = vmul.f32 %v427_v39, %v1601_v7  ;;  %v442_v5 = vmul.f32 %v427_v39, %v1611_v20  ;;  %v1254_v7 = vld [vmem:[%s1877_s7 + $0x38] sm:$0xff]   ;;  %v1255_v20 = vld [vmem:[%s1877_s7 + $0x30] sm:$0xff]  }
 0x13e   :  { %1166 = vmatmul.mubr.bf16.vlgmr.msra.gmra.mxu0 %v484_v60  ;;  %v482_v4 = vmax.f32 %v466_v0, 0.0  ;;  %v486_v27 = vpack.c.bf16 %v474_v10, %v473_v26  ;;  %v461_v14 = vadd.f32 %v449_v62, %v439_v31  ;;  %v462_v49 = vadd.f32 %v449_v62, %v440_v15  ;;  %1181 = vmatprep.subr.bf16.mxu1 %v1254_v7  ;;  %v1258_v39 = vld [vmem:[%s1877_s7 + $0x18] sm:$0xff]  }
 0x13f   :  { %1169 = vmatprep.mubr.bf16.mxu0 %v485_v21  ;;  %v487_v22 = vpack.c.bf16 %v476_v35, %v475_v3  ;;  %v463_v17 = vadd.f32 %v449_v62, %v441_v50  ;;  %v464_v18 = vadd.f32 %v449_v62, %v442_v5  ;;  %1182 = vmatpush3.bf16.msra.mxu1 %v1254_v7  ;;  %v1261_v62 = vld [vmem:[%s1877_s7] sm:$0xff]  }
 0x140   :  { %v490_v52 = vpack.c.bf16 %v482_v4, %v481_v2  ;;  %v477_v38 = vmax.f32 %v461_v14, 0.0  ;;  %v478_v40 = vmax.f32 %v462_v49, 0.0  ;;  %1183 = vmatprep.subr.bf16.mxu1 %v1255_v20 }
 0x141   :  { %v479_v23 = vmax.f32 %v463_v17, 0.0  ;;  %v480_v6 = vmax.f32 %v464_v18, 0.0 }
 0x142   :  { %v488_v24 = vpack.c.bf16 %v478_v40, %v477_v38 }
 0x143   :  { %v489_v25 = vpack.c.bf16 %v480_v6, %v479_v23  ;;  %1184 = vmatpush3.bf16.msra.mxu1 %v1255_v20 }
 0x144   :  { %1185 = vmatprep.subr.bf16.mxu1 %v1256_v33 }
 0x146   :  { %1170 = vmatmul.mubr.bf16.gmra.mxu0 %v486_v27 }
 0x147   :  { %1173 = vmatprep.mubr.bf16.mxu0 %v487_v22  ;;  %1186 = vmatpush3.bf16.msra.mxu1 %v1256_v33 }
 0x148   :  { %1187 = vmatprep.subr.bf16.mxu1 %v1257_v34 }
 0x14b   :  { %1188 = vmatpush3.bf16.msra.mxu1 %v1257_v34 }
 0x14c   :  { %1189 = vmatprep.subr.bf16.mxu1 %v1258_v39 }
 0x14e   :  { %1174 = vmatmul.mubr.bf16.gmra.mxu0 %v488_v24 }
 0x14f   :  { %1177 = vmatprep.mubr.bf16.mxu0 %v489_v25  ;;  %1190 = vmatpush3.bf16.msra.mxu1 %v1258_v39 }
 0x150   :  { %1191 = vmatprep.subr.bf16.mxu1 %v1259_v37 }
 0x153   :  { %1192 = vmatpush3.bf16.msra.mxu1 %v1259_v37 }
 0x154   :  { %1193 = vmatprep.subr.bf16.mxu1 %v1260_v19 }
 0x156   :  { %1178 = vmatmul.mubr.bf16.gmra.mxu0 %v490_v52 }
 0x157   :  { %1194 = vmatpush3.bf16.msra.mxu1 %v1260_v19 }
 0x158   :  { %1195 = vmatprep.subr.bf16.mxu1 %v1261_v62 }
 0x15b   :  { %1196 = vmatpush3.bf16.msra.mxu1 %v1261_v62 }
 0x1fe   :  { %v1676_v9 = vpop.f32.mrf.mxu0 }
 0x1ff   :  { %v678_v45 = vmul.f32 %v1676_v9, %v1676_v9 }
 0x200   :  { %v1678_v41 = vpop.f32.mrf.mxu0 }
 0x201   :  { %v676_v36 = vmul.f32 %v1678_v41, %v1678_v41 }
 0x202   :  { %v1680_v29 = vpop.f32.mrf.mxu0 }
 0x203   :  { %v679_v30 = vmul.f32 %v1680_v29, %v1680_v29 }
 0x204   :  { %v1682_v42 = vpop.f32.mrf.mxu0 }
 0x205   :  { %v654_v11 = vadd.f32 %v1682_v42, %v1678_v41  ;;  %v677_v12 = vmul.f32 %v1682_v42, %v1682_v42 }
 0x206   :  { %v1690_v28 = vpop.f32.mrf.mxu0 }
 0x207   :  { %v655_v55 = vadd.f32 %v1676_v9, %v654_v11  ;;  %v692_v48 = vadd.f32 %v677_v12, %v676_v36  ;;  %v682_v59 = vmul.f32 %v1690_v28, %v1690_v28 }
 0x208   :  { %v1695_v43 = vpop.f32.mrf.mxu0 }
 0x209   :  { %v693_v53 = vadd.f32 %v692_v48, %v678_v45  ;;  %v656_v32 = vadd.f32 %v1680_v29, %v655_v55  ;;  %v680_v8 = vmul.f32 %v1695_v43, %v1695_v43 }
 0x20a   :  { %v1700_v51 = vpop.f32.mrf.mxu0 }
 0x20b   :  { %v657_v1 = vadd.f32 %v656_v32, %v1695_v43  ;;  %v694_v47 = vadd.f32 %v693_v53, %v679_v30  ;;  %v683_v61 = vmul.f32 %v1700_v51, %v1700_v51 }
 0x20c   :  { %v1705_v56 = vpop.f32.mrf.mxu0 }
 0x20d   :  { %v695_v60 = vadd.f32 %v694_v47, %v680_v8  ;;  %v658_v16 = vadd.f32 %v657_v1, %v1705_v56  ;;  %v681_v57 = vmul.f32 %v1705_v56, %v1705_v56 }
 0x20e   :  { %v1710_v58 = vpop.f32.mrf.mxu0 }
 0x20f   :  { %v659_v13 = vadd.f32 %v1690_v28, %v658_v16  ;;  %v696_v21 = vadd.f32 %v695_v60, %v681_v57  ;;  %v686_v50 = vmul.f32 %v1710_v58, %v1710_v58 }
 0x210   :  { %v1715_v44 = vpop.f32.mrf.mxu0 }
 0x211   :  { %v697_v54 = vadd.f32 %v696_v21, %v682_v59  ;;  %v660_v63 = vadd.f32 %v1700_v51, %v659_v13  ;;  %v684_v0 = vmul.f32 %v1715_v44, %v1715_v44  ;;  %v652_v21 = vld [vmem:[%s1878_s5] sm:$0x1] }
 0x212   :  { %v1720_v26 = vpop.f32.mrf.mxu0 }
 0x213   :  { %v661_v10 = vadd.f32 %v660_v63, %v1715_v44  ;;  %v698_v2 = vadd.f32 %v697_v54, %v683_v61  ;;  %v687_v49 = vmul.f32 %v1720_v26, %v1720_v26  ;;  %v653_v63 = vld [vmem:[%s1879_s6] sm:$0x1] }
 0x214   :  { %v1725_v3 = vpop.f32.mrf.mxu0 }
 0x215   :  { %v699_v35 = vadd.f32 %v698_v2, %v684_v0  ;;  %v662_v31 = vadd.f32 %v661_v10, %v1725_v3  ;;  %v685_v15 = vmul.f32 %v1725_v3, %v1725_v3 }
 0x216   :  { %v1730_v4 = vpop.f32.mrf.mxu0 }
 0x217   :  { %v663_v5 = vadd.f32 %v1710_v58, %v662_v31  ;;  %v700_v27 = vadd.f32 %v699_v35, %v685_v15  ;;  %v690_v7 = vmul.f32 %v1730_v4, %v1730_v4 }
 0x218   :  { %v1735_v14 = vpop.f32.mrf.mxu0 }
 0x219   :  { %v701_v52 = vadd.f32 %v700_v27, %v686_v50  ;;  %v664_v22 = vadd.f32 %v1720_v26, %v663_v5  ;;  %v688_v38 = vmul.f32 %v1735_v14, %v1735_v14 }
 0x21a   :  { %v1740_v17 = vpop.f32.mrf.mxu0 }
 0x21b   :  { %v665_v18 = vadd.f32 %v664_v22, %v1735_v14  ;;  %v702_v40 = vadd.f32 %v701_v52, %v687_v49  ;;  %v691_v34 = vmul.f32 %v1740_v17, %v1740_v17 }
 0x21c   :  { %v640_v23 = vpop.f32.mrf.mxu0 }
 0x21d   :  { %v703_v6 = vadd.f32 %v702_v40, %v688_v38  ;;  %v666_v24 = vadd.f32 %v665_v18, %v640_v23  ;;  %v689_v25 = vmul.f32 %v640_v23, %v640_v23 }
 0x21f   :  { %v667_v20 = vadd.f32 %v1730_v4, %v666_v24  ;;  %v704_v33 = vadd.f32 %v703_v6, %v689_v25 }
 0x221   :  { %v668_v39 = vadd.f32 %v1740_v17, %v667_v20  ;;  %v705_v37 = vadd.f32 %v704_v33, %v690_v7 }
 0x223   :  { %v669_v19 = vrot.slane %v668_v39, 4  ;;  %v706_v62 = vadd.f32 %v705_v37, %v691_v34 }
 0x225   :  { %v670_v36 = vadd.f32 %v669_v19, %v668_v39  ;;  %v707_v11 = vrot.slane %v706_v62, 4 }
 0x227   :  { %v671_v12 = vrot.slane %v670_v36, 2  ;;  %v708_v45 = vadd.f32 %v707_v11, %v706_v62 }
 0x229   :  { %v672_v55 = vadd.f32 %v671_v12, %v670_v36  ;;  %v709_v48 = vrot.slane %v708_v45, 2 }
 0x22b   :  { %v673_v30 = vrot.slane %v672_v55, 1  ;;  %v710_v53 = vadd.f32 %v709_v48, %v708_v45 }
 0x22d   :  { %v674_v32 = vadd.f32 %v673_v30, %v672_v55  ;;  %v711_v1 = vrot.slane %v710_v53, 1 }
 0x22f   :  { %v675_v8 = vmul.f32 0.0078125, %v674_v32  ;;  %v712_v47 = vadd.f32 %v711_v1, %v710_v53 }
 0x231   :  { %v713_v60 = vmul.f32 0.0078125, %v712_v47  ;;  %v714_v16 = vmul.f32 %v675_v8, %v675_v8 }
 0x233   :  { %v715_v57 = vsub.f32 %v713_v60, %v714_v16 }
 0x235   :  { %v716_v59 = vmax.f32 %v715_v57, 0.0 }
 0x237   :  { %v717_v13 = vadd.f32 1e-05, %v716_v59 }
 0x239   :  { %1264 = vrsqrt.f32 %v717_v13 }
 0x246   :  { %v1265_v61 = vpop.eup %1264 }
 0x247   :  { %v719_v54 = vmul.f32 %v1265_v61, %v652_v21 }
 0x249   :  { %v720_v10 = vmul.f32 %v719_v54, %v675_v8  ;;  %v726_v0 = vrot.slane %v719_v54, %v1450_v46 }
 0x24b   :  { %v721_v2 = vsub.f32 %v653_v63, %v720_v10  ;;  %v741_v35 = vmul.f32 %v726_v0, %v640_v23  ;;  %v728_v31 = vmul.f32 %v726_v0, %v1678_v41  ;;  %v729_v15 = vmul.f32 %v726_v0, %v1682_v42 }
 0x24c   :  { %v730_v50 = vmul.f32 %v1676_v9, %v726_v0  ;;  %v731_v5 = vmul.f32 %v1680_v29, %v726_v0  ;;  %v732_v49 = vmul.f32 %v726_v0, %v1695_v43  ;;  %v733_v52 = vmul.f32 %v726_v0, %v1705_v56 }
 0x24d   :  { %v748_v27 = vrot.slane %v721_v2, %v1450_v46  ;;  %v734_v22 = vmul.f32 %v1690_v28, %v726_v0  ;;  %v735_v18 = vmul.f32 %v1700_v51, %v726_v0  ;;  %v736_v38 = vmul.f32 %v726_v0, %v1715_v44 }
 0x24e   :  { %v737_v41 = vmul.f32 %v726_v0, %v1725_v3  ;;  %v738_v42 = vmul.f32 %v1710_v58, %v726_v0  ;;  %v739_v43 = vmul.f32 %v1720_v26, %v726_v0  ;;  %v740_v51 = vmul.f32 %v726_v0, %v1735_v14 }
 0x24f   :  { %v763_v40 = vadd.f32 %v748_v27, %v741_v35  ;;  %v750_v9 = vadd.f32 %v748_v27, %v728_v31  ;;  %v751_v23 = vadd.f32 %v748_v27, %v729_v15  ;;  %v752_v29 = vadd.f32 %v748_v27, %v730_v50 }
 0x250   :  { %v753_v6 = vadd.f32 %v748_v27, %v731_v5  ;;  %v754_v24 = vadd.f32 %v748_v27, %v732_v49  ;;  %v755_v25 = vadd.f32 %v748_v27, %v733_v52  ;;  %v756_v3 = vadd.f32 %v748_v27, %v734_v22 }
 0x251   :  { %v766_v56 = vmax.f32 %v750_v9, 0.0  ;;  %v767_v7 = vmax.f32 %v751_v23, 0.0  ;;  %v768_v28 = vmax.f32 %v752_v29, 0.0  ;;  %v779_v34 = vmax.f32 %v763_v40, 0.0 }
 0x252   :  { %v769_v20 = vmax.f32 %v753_v6, 0.0  ;;  %v770_v44 = vmax.f32 %v754_v24, 0.0  ;;  %v771_v33 = vmax.f32 %v755_v25, 0.0  ;;  %v758_v39 = vadd.f32 %v748_v27, %v736_v38 }
 0x253   :  { %v782_v58 = vpack.c.bf16 %v767_v7, %v766_v56  ;;  %v759_v37 = vadd.f32 %v748_v27, %v737_v41  ;;  %v757_v36 = vadd.f32 %v748_v27, %v735_v18  ;;  %v760_v11 = vadd.f32 %v748_v27, %v738_v42 }
 0x254   :  { %v783_v19 = vpack.c.bf16 %v769_v20, %v768_v28  ;;  %v784_v62 = vpack.c.bf16 %v771_v33, %v770_v44  ;;  %v774_v12 = vmax.f32 %v758_v39, 0.0  ;;  %v761_v45 = vadd.f32 %v748_v27, %v739_v43 }
 0x255   :  { %1197 = vmatprep.mubr.bf16.mxu1 %v782_v58  ;;  %v775_v26 = vmax.f32 %v759_v37, 0.0  ;;  %v762_v55 = vadd.f32 %v748_v27, %v740_v51  ;;  %v776_v48 = vmax.f32 %v760_v11, 0.0  ;;  %v742_v14 = vmul.f32 %v1730_v4, %v726_v0 }
 0x256   :  { %1198 = vmatmul.mubr.bf16.vlgmr.msra.gmra.mxu1 %v783_v19  ;;  %v743_v30 = vmul.f32 %v1740_v17, %v726_v0  ;;  %v777_v32 = vmax.f32 %v761_v45, 0.0  ;;  %v772_v8 = vmax.f32 %v756_v3, 0.0  ;;  %v773_v47 = vmax.f32 %v757_v36, 0.0 }
 0x257   :  { %1201 = vmatprep.mubr.bf16.mxu1 %v784_v62  ;;  %v786_v53 = vpack.c.bf16 %v775_v26, %v774_v12  ;;  %v778_v1 = vmax.f32 %v762_v55, 0.0  ;;  %v764_v60 = vadd.f32 %v748_v27, %v742_v14 }
 0x258   :  { %v765_v16 = vadd.f32 %v748_v27, %v743_v30  ;;  %v787_v57 = vpack.c.bf16 %v777_v32, %v776_v48  ;;  %v785_v61 = vpack.c.bf16 %v773_v47, %v772_v8 }
 0x259   :  { %v788_v59 = vpack.c.bf16 %v779_v34, %v778_v1  ;;  %v780_v13 = vmax.f32 %v764_v60, 0.0 }
 0x25a   :  { %v781_v21 = vmax.f32 %v765_v16, 0.0 }
 0x25c   :  { %v789_v54 = vpack.c.bf16 %v781_v21, %v780_v13 }
 0x25e   :  { %1202 = vmatmul.mubr.bf16.gmra.mxu1 %v785_v61 }
 0x25f   :  { %1205 = vmatprep.mubr.bf16.mxu1 %v786_v53 }
 0x266   :  { %1206 = vmatmul.mubr.bf16.gmra.mxu1 %v787_v57 }
 0x267   :  { %1209 = vmatprep.mubr.bf16.mxu1 %v788_v59 }
 0x26e   :  { %1210 = vmatmul.mubr.bf16.gmra.mxu1 %v789_v54 }
 0x316   :  { %v1774_v4 = vpop.f32.mrf.mxu1 }
 0x317   :  { %v977_v15 = vmul.f32 %v1774_v4, %v1774_v4 }
 0x318   :  { %v1776_v17 = vpop.f32.mrf.mxu1 }
 0x319   :  { %v975_v0 = vmul.f32 %v1776_v17, %v1776_v17 }
 0x31a   :  { %v1778_v63 = vpop.f32.mrf.mxu1 }
 0x31b   :  { %v978_v49 = vmul.f32 %v1778_v63, %v1778_v63 }
 0x31c   :  { %v1780_v10 = vpop.f32.mrf.mxu1 }
 0x31d   :  { %v953_v2 = vadd.f32 %v1780_v10, %v1776_v17  ;;  %v976_v35 = vmul.f32 %v1780_v10, %v1780_v10 }
 0x31e   :  { %v1788_v31 = vpop.f32.mrf.mxu1 }
 0x31f   :  { %v954_v50 = vadd.f32 %v1774_v4, %v953_v2  ;;  %v991_v5 = vadd.f32 %v976_v35, %v975_v0  ;;  %v981_v24 = vmul.f32 %v1788_v31, %v1788_v31 }
 0x320   :  { %v1793_v27 = vpop.f32.mrf.mxu1 }
 0x321   :  { %v992_v52 = vadd.f32 %v991_v5, %v977_v15  ;;  %v955_v22 = vadd.f32 %v1778_v63, %v954_v50  ;;  %v979_v41 = vmul.f32 %v1793_v27, %v1793_v27 }
 0x322   :  { %v1798_v18 = vpop.f32.mrf.mxu1 }
 0x323   :  { %v956_v38 = vadd.f32 %v955_v22, %v1793_v27  ;;  %v993_v42 = vadd.f32 %v992_v52, %v978_v49  ;;  %v982_v7 = vmul.f32 %v1798_v18, %v1798_v18 }
 0x324   :  { %v1803_v40 = vpop.f32.mrf.mxu1 }
 0x325   :  { %v994_v9 = vadd.f32 %v993_v42, %v979_v41  ;;  %v957_v23 = vadd.f32 %v956_v38, %v1803_v40  ;;  %v980_v29 = vmul.f32 %v1803_v40, %v1803_v40 }
 0x326   :  { %v1808_v6 = vpop.f32.mrf.mxu1 }
 0x327   :  { %v958_v25 = vadd.f32 %v1788_v31, %v957_v23  ;;  %v995_v43 = vadd.f32 %v994_v9, %v980_v29  ;;  %v985_v62 = vmul.f32 %v1808_v6, %v1808_v6 }
 0x328   :  { %v1813_v56 = vpop.f32.mrf.mxu1 }
 0x329   :  { %v996_v28 = vadd.f32 %v995_v43, %v981_v24  ;;  %v959_v51 = vadd.f32 %v1798_v18, %v958_v25  ;;  %v983_v33 = vmul.f32 %v1813_v56, %v1813_v56  ;;  %v951_v43 = vld [vmem:[%s1880_s8] sm:$0x1] }
 0x32a   :  { %v1818_v20 = vpop.f32.mrf.mxu1 }
 0x32b   :  { %v960_v44 = vadd.f32 %v959_v51, %v1813_v56  ;;  %v997_v3 = vadd.f32 %v996_v28, %v982_v7  ;;  %v986_v26 = vmul.f32 %v1818_v20, %v1818_v20  ;;  %v952_v51 = vld [vmem:[%s1881_s9] sm:$0x1] }
 0x32c   :  { %v1823_v34 = vpop.f32.mrf.mxu1 }
 0x32d   :  { %v998_v58 = vadd.f32 %v997_v3, %v983_v33  ;;  %v961_v39 = vadd.f32 %v960_v44, %v1823_v34  ;;  %v984_v37 = vmul.f32 %v1823_v34, %v1823_v34 }
 0x32e   :  { %v1828_v19 = vpop.f32.mrf.mxu1 }
 0x32f   :  { %v962_v36 = vadd.f32 %v1808_v6, %v961_v39  ;;  %v999_v11 = vadd.f32 %v998_v58, %v984_v37  ;;  %v989_v60 = vmul.f32 %v1828_v19, %v1828_v19 }
 0x330   :  { %v936_v12 = vpop.f32.mrf.mxu1 }
 0x331   :  { %v1000_v45 = vadd.f32 %v999_v11, %v985_v62  ;;  %v963_v55 = vadd.f32 %v1818_v20, %v962_v36  ;;  %v987_v30 = vmul.f32 %v936_v12, %v936_v12 }
 0x332   :  { %v1212_v48 = vpop.f32.mrf.mxu1 }
 0x333   :  { %v964_v14 = vadd.f32 %v963_v55, %v936_v12  ;;  %v1001_v53 = vadd.f32 %v1000_v45, %v986_v26  ;;  %v990_v59 = vmul.f32 %v1212_v48, %v1212_v48 }
 0x334   :  { %v939_v32 = vpop.f32.mrf.mxu1 }
 0x335   :  { %v1002_v1 = vadd.f32 %v1001_v53, %v987_v30  ;;  %v965_v8 = vadd.f32 %v964_v14, %v939_v32  ;;  %v988_v47 = vmul.f32 %v939_v32, %v939_v32 }
 0x337   :  { %v966_v16 = vadd.f32 %v1828_v19, %v965_v8  ;;  %v1003_v57 = vadd.f32 %v1002_v1, %v988_v47 }
 0x339   :  { %v967_v13 = vadd.f32 %v1212_v48, %v966_v16  ;;  %v1004_v21 = vadd.f32 %v1003_v57, %v989_v60 }
 0x33b   :  { %v968_v61 = vrot.slane %v967_v13, 4  ;;  %v1005_v54 = vadd.f32 %v1004_v21, %v990_v59 }
 0x33d   :  { %v969_v0 = vadd.f32 %v968_v61, %v967_v13  ;;  %v1006_v2 = vrot.slane %v1005_v54, 4 }
 0x33f   :  { %v970_v35 = vrot.slane %v969_v0, 2  ;;  %v1007_v15 = vadd.f32 %v1006_v2, %v1005_v54 }
 0x341   :  { %v971_v50 = vadd.f32 %v970_v35, %v969_v0  ;;  %v1008_v5 = vrot.slane %v1007_v15, 2 }
 0x343   :  { %v972_v49 = vrot.slane %v971_v50, 1  ;;  %v1009_v52 = vadd.f32 %v1008_v5, %v1007_v15 }
 0x345   :  { %v973_v22 = vadd.f32 %v972_v49, %v971_v50  ;;  %v1010_v38 = vrot.slane %v1009_v52, 1 }
 0x347   :  { %v974_v41 = vmul.f32 0.0078125, %v973_v22  ;;  %v1011_v42 = vadd.f32 %v1010_v38, %v1009_v52 }
 0x349   :  { %v1012_v9 = vmul.f32 0.0078125, %v1011_v42  ;;  %v1013_v23 = vmul.f32 %v974_v41, %v974_v41 }
 0x34b   :  { %v1014_v29 = vsub.f32 %v1012_v9, %v1013_v23 }
 0x34d   :  { %v1015_v24 = vmax.f32 %v1014_v29, 0.0 }
 0x34f   :  { %v1016_v25 = vadd.f32 1e-05, %v1015_v24 }
 0x351   :  { %1266 = vrsqrt.f32 %v1016_v25 }
 0x35e   :  { %v1267_v7 = vpop.eup %1266 }
 0x35f   :  { %v1018_v28 = vmul.f32 %v1267_v7, %v951_v43 }
 0x361   :  { %v1019_v44 = vmul.f32 %v1018_v28, %v974_v41  ;;  %v1025_v33 = vrot.slane %v1018_v28, %v1450_v46 }
 0x363   :  { %v1020_v3 = vsub.f32 %v952_v51, %v1019_v44  ;;  %v1027_v58 = vmul.f32 %v1025_v33, %v1776_v17  ;;  %v1028_v39 = vmul.f32 %v1025_v33, %v1780_v10  ;;  %v1029_v37 = vmul.f32 %v1774_v4, %v1025_v33 }
 0x364   :  { %v1030_v62 = vmul.f32 %v1778_v63, %v1025_v33  ;;  %v1031_v36 = vmul.f32 %v1025_v33, %v1793_v27  ;;  %v1032_v11 = vmul.f32 %v1025_v33, %v1803_v40  ;;  %v1033_v26 = vmul.f32 %v1788_v31, %v1025_v33 }
 0x365   :  { %v1034_v45 = vmul.f32 %v1798_v18, %v1025_v33  ;;  %v1035_v55 = vmul.f32 %v1025_v33, %v1813_v56  ;;  %v1036_v14 = vmul.f32 %v1025_v33, %v1823_v34  ;;  %v1037_v17 = vmul.f32 %v1808_v6, %v1025_v33 }
 0x366   :  { %v1038_v10 = vmul.f32 %v1818_v20, %v1025_v33  ;;  %v1047_v4 = vrot.slane %v1020_v3, %v1450_v46  ;;  %v1039_v30 = vmul.f32 %v1025_v33, %v936_v12  ;;  %v1040_v63 = vmul.f32 %v1025_v33, %v939_v32 }
 0x367   :  { %v1041_v27 = vmul.f32 %v1828_v19, %v1025_v33  ;;  %v1042_v53 = vmul.f32 %v1212_v48, %v1025_v33 }
 0x368   :  { %v1049_v40 = vadd.f32 %v1047_v4, %v1027_v58  ;;  %v1050_v1 = vadd.f32 %v1047_v4, %v1028_v39  ;;  %v1051_v31 = vadd.f32 %v1047_v4, %v1029_v37  ;;  %v1052_v8 = vadd.f32 %v1047_v4, %v1030_v62 }
 0x369   :  { %v1053_v18 = vadd.f32 %v1047_v4, %v1031_v36  ;;  %v1054_v47 = vadd.f32 %v1047_v4, %v1032_v11  ;;  %v1055_v56 = vadd.f32 %v1047_v4, %v1033_v26  ;;  %v1056_v60 = vadd.f32 %v1047_v4, %v1034_v45 }
 0x36a   :  { %v1057_v34 = vadd.f32 %v1047_v4, %v1035_v55  ;;  %v1058_v16 = vadd.f32 %v1047_v4, %v1036_v14  ;;  %v1059_v6 = vadd.f32 %v1047_v4, %v1037_v17  ;;  %v1060_v57 = vadd.f32 %v1047_v4, %v1038_v10 }
 0x36b   :  { %v1061_v20 = vadd.f32 %v1047_v4, %v1039_v30  ;;  %v1062_v59 = vadd.f32 %v1047_v4, %v1040_v63  ;;  %v1063_v46 = vadd.f32 %v1047_v4, %v1041_v27  ;;  %v1064_v12 = vadd.f32 %v1047_v4, %v1042_v53 }
 0x36c   :  { %v1065_v32 = vmax.f32 %v1049_v40, 0.0  ;;  %v1066_v13 = vmax.f32 %v1050_v1, 0.0  ;;  %v1067_v19 = vmax.f32 %v1051_v31, 0.0  ;;  %v1068_v48 = vmax.f32 %v1052_v8, 0.0 }
 0x36d   :  { %v1069_v21 = vmax.f32 %v1053_v18, 0.0  ;;  %v1070_v61 = vmax.f32 %v1054_v47, 0.0  ;;  %v1071_v54 = vmax.f32 %v1055_v56, 0.0  ;;  %v1072_v0 = vmax.f32 %v1056_v60, 0.0 }
 0x36e   :  { %v1073_v2 = vmax.f32 %v1057_v34, 0.0  ;;  %v1074_v35 = vmax.f32 %v1058_v16, 0.0  ;;  %v1075_v15 = vmax.f32 %v1059_v6, 0.0  ;;  %v1076_v50 = vmax.f32 %v1060_v57, 0.0 }
 0x36f   :  { %v1081_v5 = vmax.f32 %v1065_v32, %v1069_v21  ;;  %v1082_v49 = vmax.f32 %v1066_v13, %v1070_v61  ;;  %v1083_v52 = vmax.f32 %v1067_v19, %v1071_v54  ;;  %v1084_v22 = vmax.f32 %v1068_v48, %v1072_v0 }
 0x370   :  { %v1077_v38 = vmax.f32 %v1061_v20, 0.0  ;;  %v1078_v41 = vmax.f32 %v1062_v59, 0.0  ;;  %v1079_v42 = vmax.f32 %v1063_v46, 0.0  ;;  %v1080_v9 = vmax.f32 %v1064_v12, 0.0 }
 0x371   :  { %v1085_v23 = vmax.f32 %v1081_v5, %v1073_v2  ;;  %v1086_v29 = vmax.f32 %v1082_v49, %v1074_v35  ;;  %v1087_v24 = vmax.f32 %v1083_v52, %v1075_v15  ;;  %v1088_v25 = vmax.f32 %v1084_v22, %v1076_v50 }
 0x373   :  { %v1089_v43 = vmax.f32 %v1085_v23, %v1077_v38  ;;  %v1090_v7 = vmax.f32 %v1086_v29, %v1078_v41  ;;  %v1091_v28 = vmax.f32 %v1087_v24, %v1079_v42  ;;  %v1092_v51 = vmax.f32 %v1088_v25, %v1080_v9 }
 0x375   :  { %1093 = vst [vmem:[%s1882_s10] sm:$0xff] %v1089_v43  ;;  %1094 = vst [vmem:[%s1882_s10 + $0x8] sm:$0xff] %v1090_v7 }
 0x376   :  { %1095 = vst [vmem:[%s1882_s10 + $0x10] sm:$0xff] %v1091_v28  ;;  %1096 = vst [vmem:[%s1882_s10 + $0x18] sm:$0xff] %v1092_v51 }

// kernel: pointnet_plus_forward.4
= control target key start
LH: loop header
LB: loop body
LE: loop exit
PB: predicated region body
PF: predicated region fallthrough
CT: control target
= control target key end

     0   :  { %v826_v0 = vmov 0.0   ;;  %vm827_vm0 = vmmov 0   ;;  %v828_v2 = vmov 1   ;;  %v829_v3 = vmov 0   ;;  %s1091_s3 = inlined_call_operand.vmem [shape: bf16[128,128], index: 3, kind: input, shape index: {}]   ;;  %s1092_s0 = inlined_call_operand.vmem [shape: f32[16,3], index: 0, kind: input, shape index: {}]   ;;  %s1093_s1 = inlined_call_operand.vmem [shape: bf16[16,128], index: 1, kind: input, shape index: {}]   ;;  %s1094_s6 = inlined_call_operand.vmem [shape: bf16[128,128], index: 6, kind: input, shape index: {}]   ;;  %s1095_s2 = inlined_call_operand.vmem [shape: f32[3,128], index: 2, kind: input, shape index: {}]   ;;  %s1096_s4 = inlined_call_operand.vmem [shape: f32[1,128], index: 4, kind: input, shape index: {}]   ;;  %s1097_s5 = inlined_call_operand.vmem [shape: f32[1,128], index: 5, kind: input, shape index: {}]   ;;  %s1098_s9 = inlined_call_operand.vmem [shape: bf16[128,256], index: 9, kind: input, shape index: {}]   ;;  %s1099_s7 = inlined_call_operand.vmem [shape: f32[1,128], index: 7, kind: input, shape index: {}]   ;;  %s1100_s8 = inlined_call_operand.vmem [shape: f32[1,128], index: 8, kind: input, shape index: {}]   ;;  %s1101_s10 = inlined_call_operand.vmem [shape: f32[1,256], index: 10, kind: input, shape index: {}]   ;;  %s1102_s11 = inlined_call_operand.vmem [shape: f32[1,256], index: 11, kind: input, shape index: {}]   ;;  %s1103_s12 = inlined_call_operand.vmem [shape: f32[8,256], index: 12, kind: output, shape index: {}]  }
   0x1   :  { %727 = vmatprep.subr.bf16.mxu0 %v826_v0  ;;  %v777_v1 = vld [vmem:[%s1091_s3 + $0x38] sm:$0xff]   ;;  %743 = vmatprep.mubr.msk.bf16.mxu0 %vm827_vm0, %v826_v0  ;;  %v778_v4 = vld [vmem:[%s1091_s3 + $0x30] sm:$0xff]   ;;  %v779_v5 = vld [vmem:[%s1091_s3 + $0x28] sm:$0xff]   ;;  %v830_v11 = vmov 2   ;;  %v55_v23 = vlaneseq }
   0x2   :  { %774 = vset.pattern.permute.xlu1 %v828_v2  ;;  %773 = vset.pattern.permute.xlu0 %v829_v3  ;;  %v42_v6 = vld [vmem:[%s1092_s0] sm:$0xff]  ;;  %v43_v8 = vld [vmem:[%s1092_s0 + $0x8] sm:$0xff]  ;;  %v781_v9 = vld [vmem:[%s1091_s3 + $0x18] sm:$0xff]  }
   0x3   :  { %728 = vmatpush3.bf16.msra.mxu0 %v777_v1  ;;  %747 = vmatprep.subr.bf16.mxu1 %v826_v0  ;;  %v780_v7 = vld [vmem:[%s1091_s3 + $0x20] sm:$0xff]   ;;  %v782_v10 = vld [vmem:[%s1091_s3 + $0x10] sm:$0xff]   ;;  %v783_v12 = vld [vmem:[%s1091_s3 + $0x8] sm:$0xff]   ;;  %v972_v24 = vshrl.u32 %v55_v23, 7 }
   0x4   :  { %729 = vmatprep.subr.bf16.mxu0 %v826_v0  ;;  %763 = vmatprep.mubr.msk.bf16.mxu1 %vm827_vm0, %v826_v0  ;;  %v784_v13 = vld [vmem:[%s1091_s3] sm:$0xff]   ;;  %v786_v15 = vld [vmem:[%s1094_s6 + $0x38] sm:$0xff]   ;;  %v787_v16 = vld [vmem:[%s1094_s6 + $0x30] sm:$0xff]  }
   0x5   :  { %62 = vperm.xlu1 %774, %v42_v6   ;;  %47 = vperm.xlu0 %773, %v42_v6   ;;  %v785_v14 = vld [vmem:[%s1093_s1] sm:$0xff]   ;;  %v788_v17 = vld [vmem:[%s1094_s6 + $0x28] sm:$0xff]   ;;  %v790_v19 = vld [vmem:[%s1094_s6 + $0x18] sm:$0xff]   ;;  %v975_v27 = vsub.s32 0, %v972_v24  ;;  %v978_v28 = vsub.s32 1, %v972_v24  ;;  %v87_v33 = vsub.s32 2, %v972_v24 }
   0x6   :  { %748 = vmatpush3.bf16.msra.mxu1 %v786_v15  ;;  %v789_v18 = vld [vmem:[%s1094_s6 + $0x20] sm:$0xff]   ;;  %v791_v20 = vld [vmem:[%s1094_s6 + $0x10] sm:$0xff]   ;;  %v792_v21 = vld [vmem:[%s1094_s6 + $0x8] sm:$0xff]  }
   0x7   :  { %730 = vmatpush3.bf16.msra.mxu0 %v778_v4  ;;  %749 = vmatprep.subr.bf16.mxu1 %v826_v0  ;;  %v793_v22 = vld [vmem:[%s1094_s6] sm:$0xff]  }
   0x8   :  { %731 = vmatprep.subr.bf16.mxu0 %v826_v0  ;;  %v44_v29 = vld [vmem:[%s1095_s2] sm:$0x7] }
   0x9   :  { %66 = vperm.xlu1 %774, %v43_v8   ;;  %52 = vperm.xlu0 %773, %v43_v8   ;;  %v72_v31 = vrot.slane %v44_v29, %v978_v28  ;;  %v58_v32 = vrot.slane %v44_v29, %v975_v27  ;;  %v88_v37 = vrot.slane %v44_v29, %v87_v33  ;;  %v209_v15 = vld [vmem:[%s1097_s5] sm:$0x1] }
   0xa   :  { %750 = vmatpush3.bf16.msra.mxu1 %v787_v16  ;;  %v797_v33 = vld [vmem:[%s1098_s9 + $0x60] ss:$8 sps:$4 sm:$0xff]  }
   0xb   :  { %732 = vmatpush3.bf16.msra.mxu0 %v779_v5  ;;  %751 = vmatprep.subr.bf16.mxu1 %v826_v0 }
   0xc   :  { %733 = vmatprep.subr.bf16.mxu0 %v826_v0 }
   0xd   :  { %776 = vset.pattern.permute.xlu1 %v830_v11  ;;  %775 = vset.pattern.permute.xlu0 %v830_v11 }
   0xe   :  { %82 = vperm.xlu1 %776, %v43_v8   ;;  %78 = vperm.xlu0 %775, %v42_v6  }
   0xf   :  { %734 = vmatpush3.bf16.msra.mxu0 %v780_v7  ;;  %752 = vmatpush3.bf16.msra.mxu1 %v788_v17 }
  0x10   :  { %735 = vmatprep.subr.bf16.mxu0 %v826_v0  ;;  %753 = vmatprep.subr.bf16.mxu1 %v826_v0 }
  0x13   :  { %736 = vmatpush3.bf16.msra.mxu0 %v781_v9  ;;  %754 = vmatpush3.bf16.msra.mxu1 %v789_v18 }
  0x14   :  { %737 = vmatprep.subr.bf16.mxu0 %v826_v0  ;;  %755 = vmatprep.subr.bf16.mxu1 %v826_v0 }
  0x17   :  { %738 = vmatpush3.bf16.msra.mxu0 %v782_v10  ;;  %756 = vmatpush3.bf16.msra.mxu1 %v790_v19 }
  0x18   :  { %739 = vmatprep.subr.bf16.mxu0 %v826_v0  ;;  %757 = vmatprep.subr.bf16.mxu1 %v826_v0 }
  0x1b   :  { %740 = vmatpush3.bf16.msra.mxu0 %v783_v12  ;;  %758 = vmatpush3.bf16.msra.mxu1 %v791_v20  ;;  %v208_v12 = vld [vmem:[%s1096_s4] sm:$0x1] }
  0x1c   :  { %741 = vmatprep.subr.bf16.mxu0 %v826_v0  ;;  %759 = vmatprep.subr.bf16.mxu1 %v826_v0 }
  0x1f   :  { %742 = vmatpush3.bf16.msra.mxu0 %v784_v13  ;;  %760 = vmatpush3.bf16.msra.mxu1 %v792_v21 }
  0x20   :  { %761 = vmatprep.subr.bf16.mxu1 %v826_v0 }
  0x22   :  { %744 = vmatmul.mubr.bf16.vlgmr.msra.gmra.mxu0 %v785_v14 }
  0x23   :  { %535 = vmatprep.mubr.bf16.mxu0 %v829_v3  ;;  %762 = vmatpush3.bf16.msra.mxu1 %v793_v22 }
  0x80   :  { %v48_v25 = vpop.permute.xlu0 %47  ;;  %v63_v26 = vpop.permute.xlu1 %62 }
  0x81   :  { %v73_v35 = vmul.f32 %v72_v31, %v63_v26  ;;  %v59_v36 = vmul.f32 %v58_v32, %v48_v25 }
  0x83   :  { %v75_v42 = vadd.f32 %v73_v35, %v59_v36  ;;  %v800_v35 = vld [vmem:[%s1098_s9 + $0x50] ss:$8 sps:$4 sm:$0xff]   ;;  %v805_v36 = vld [vmem:[%s1098_s9 + $0x44] ss:$8 sps:$4 sm:$0xff]  }
  0x84   :  { %v53_v30 = vpop.permute.xlu0 %52  ;;  %v67_v34 = vpop.permute.xlu1 %66 }
  0x85   :  { %v74_v39 = vmul.f32 %v72_v31, %v67_v34  ;;  %v60_v40 = vmul.f32 %v58_v32, %v53_v30  ;;  %v796_v30 = vld [vmem:[%s1098_s9 + $0x74] ss:$8 sps:$4 sm:$0xff]   ;;  %v794_v31 = vld [vmem:[%s1098_s9 + $0x70] ss:$8 sps:$4 sm:$0xff]   ;;  %v799_v32 = vld [vmem:[%s1098_s9 + $0x64] ss:$8 sps:$4 sm:$0xff]  }
  0x86   :  { %503 = vmatprep.subr.bf16.mxu0 %v796_v30  ;;  %v802_v34 = vld [vmem:[%s1098_s9 + $0x54] ss:$8 sps:$4 sm:$0xff]  }
  0x87   :  { %v76_v44 = vadd.f32 %v74_v39, %v60_v40  ;;  %504 = vmatpush1.bf16.msra.mxu0 %v794_v31  ;;  %v806_v39 = vld [vmem:[%s1098_s9 + $0x30] ss:$8 sps:$4 sm:$0xff]   ;;  %v811_v40 = vld [vmem:[%s1098_s9 + $0x24] ss:$8 sps:$4 sm:$0xff]  }
  0x88   :  { %505 = vmatprep.subr.bf16.mxu0 %v799_v32 }
  0x89   :  { %v79_v38 = vpop.permute.xlu0 %78  ;;  %v83_v41 = vpop.permute.xlu1 %82 }
  0x8a   :  { %v89_v43 = vmul.f32 %v88_v37, %v79_v38  ;;  %v90_v45 = vmul.f32 %v88_v37, %v83_v41  ;;  %v803_v37 = vld [vmem:[%s1098_s9 + $0x40] ss:$8 sps:$4 sm:$0xff]   ;;  %v808_v38 = vld [vmem:[%s1098_s9 + $0x34] ss:$8 sps:$4 sm:$0xff]  }
  0x8b   :  { %506 = vmatpush1.bf16.msra.mxu0 %v797_v33  ;;  %v809_v41 = vld [vmem:[%s1098_s9 + $0x20] ss:$8 sps:$4 sm:$0xff]  }
  0x8c   :  { %v91_v47 = vadd.f32 %v89_v43, %v75_v42  ;;  %v92_v50 = vadd.f32 %v90_v45, %v76_v44  ;;  %507 = vmatprep.subr.bf16.mxu0 %v802_v34  ;;  %v814_v42 = vld [vmem:[%s1098_s9 + $0x14] ss:$8 sps:$4 sm:$0xff]   ;;  %v812_v43 = vld [vmem:[%s1098_s9 + $0x10] ss:$8 sps:$4 sm:$0xff]   ;;  %v817_v44 = vld [vmem:[%s1098_s9 + $0x4] ss:$8 sps:$4 sm:$0xff]  }
  0x8d   :  { %v815_v45 = vld [vmem:[%s1098_s9] ss:$8 sps:$4 sm:$0xff]  }
  0x8f   :  { %508 = vmatpush1.bf16.msra.mxu0 %v800_v35 }
  0x90   :  { %509 = vmatprep.subr.bf16.mxu0 %v805_v36 }
  0x93   :  { %510 = vmatpush1.bf16.msra.mxu0 %v803_v37 }
  0x94   :  { %511 = vmatprep.subr.bf16.mxu0 %v808_v38 }
  0x97   :  { %512 = vmatpush1.bf16.msra.mxu0 %v806_v39 }
  0x98   :  { %513 = vmatprep.subr.bf16.mxu0 %v811_v40 }
  0x9b   :  { %514 = vmatpush1.bf16.msra.mxu0 %v809_v41 }
  0x9c   :  { %515 = vmatprep.subr.bf16.mxu0 %v814_v42 }
  0x9f   :  { %516 = vmatpush1.bf16.msra.mxu0 %v812_v43 }
  0xa0   :  { %517 = vmatprep.subr.bf16.mxu0 %v817_v44 }
  0xa3   :  { %518 = vmatpush1.bf16.msra.mxu0 %v815_v45 }
  0xe2   :  { %v199_v46 = vpop.f32.mrf.mxu0 }
  0xe3   :  { %v206_v49 = vadd.f32 %v199_v46, %v91_v47 }
  0xe4   :  { %v745_v48 = vpop.f32.mrf.mxu0 }
  0xe5   :  { %v218_v54 = vmul.f32 %v206_v49, %v206_v49 }
  0xe6   :  { %v202_v51 = vpop.f32.mrf.mxu0 }
  0xe7   :  { %v207_v52 = vadd.f32 %v202_v51, %v92_v50 }
  0xe8   :  { %v746_v53 = vpop.f32.mrf.mxu0 }
  0xe9   :  { %v210_v55 = vadd.f32 %v207_v52, %v206_v49  ;;  %v219_v56 = vmul.f32 %v207_v52, %v207_v52 }
  0xeb   :  { %v211_v57 = vrot.slane %v210_v55, 4  ;;  %v220_v58 = vadd.f32 %v219_v56, %v218_v54 }
  0xed   :  { %v212_v59 = vadd.f32 %v211_v57, %v210_v55  ;;  %v221_v60 = vrot.slane %v220_v58, 4 }
  0xef   :  { %v213_v61 = vrot.slane %v212_v59, 2  ;;  %v222_v62 = vadd.f32 %v221_v60, %v220_v58 }
  0xf1   :  { %v214_v63 = vadd.f32 %v213_v61, %v212_v59  ;;  %v223_v0 = vrot.slane %v222_v62, 2 }
  0xf3   :  { %v215_v1 = vrot.slane %v214_v63, 1  ;;  %v224_v2 = vadd.f32 %v223_v0, %v222_v62 }
  0xf5   :  { %v216_v3 = vadd.f32 %v215_v1, %v214_v63  ;;  %v225_v4 = vrot.slane %v224_v2, 1 }
  0xf7   :  { %v217_v5 = vmul.f32 0.0625, %v216_v3  ;;  %v226_v6 = vadd.f32 %v225_v4, %v224_v2 }
  0xf9   :  { %v227_v7 = vmul.f32 0.0625, %v226_v6  ;;  %v228_v8 = vmul.f32 %v217_v5, %v217_v5 }
  0xfb   :  { %v229_v9 = vsub.f32 %v227_v7, %v228_v8  ;;  %v360_v8 = vld [vmem:[%s1099_s7] sm:$0x1] }
  0xfd   :  { %v230_v10 = vmax.f32 %v229_v9, 0.0 }
  0xff   :  { %v231_v11 = vadd.f32 1e-05, %v230_v10 }
 0x101   :  { %818 = vrsqrt.f32 %v231_v11  ;;  %v361_v11 = vld [vmem:[%s1100_s8] sm:$0x1] }
 0x10e   :  { %v819_v13 = vpop.eup %818 }
 0x10f   :  { %v233_v14 = vmul.f32 %v819_v13, %v208_v12 }
 0x111   :  { %v234_v16 = vmul.f32 %v233_v14, %v217_v5  ;;  %v240_v17 = vrot.slane %v233_v14, %v975_v27 }
 0x113   :  { %v235_v18 = vsub.f32 %v209_v15, %v234_v16  ;;  %v243_v19 = vmul.f32 %v240_v17, %v207_v52  ;;  %v242_v20 = vmul.f32 %v240_v17, %v206_v49 }
 0x115   :  { %v248_v21 = vrot.slane %v235_v18, %v975_v27 }
 0x117   :  { %v250_v22 = vadd.f32 %v248_v21, %v242_v20  ;;  %v251_v23 = vadd.f32 %v248_v21, %v243_v19 }
 0x119   :  { %v252_v25 = vmax.f32 %v250_v22, 0.0  ;;  %v253_v26 = vmax.f32 %v251_v23, 0.0 }
 0x11b   :  { %v254_v29 = vpack.c.bf16 %v253_v26, %v252_v25 }
 0x11d   :  { %764 = vmatmul.mubr.bf16.vlgmr.msra.gmra.mxu1 %v254_v29 }
 0x1dd   :  { %v353_v46 = vpop.f32.mrf.mxu1 }
 0x1de   :  { %v370_v49 = vmul.f32 %v353_v46, %v353_v46 }
 0x1df   :  { %v765_v47 = vpop.f32.mrf.mxu1 }
 0x1e1   :  { %v356_v48 = vpop.f32.mrf.mxu1 }
 0x1e2   :  { %v362_v50 = vadd.f32 %v356_v48, %v353_v46  ;;  %v371_v51 = vmul.f32 %v356_v48, %v356_v48 }
 0x1e3   :  { %v766_v52 = vpop.f32.mrf.mxu1 }
 0x1e4   :  { %v363_v53 = vrot.slane %v362_v50, 4  ;;  %v372_v54 = vadd.f32 %v371_v51, %v370_v49 }
 0x1e6   :  { %v364_v55 = vadd.f32 %v363_v53, %v362_v50  ;;  %v373_v56 = vrot.slane %v372_v54, 4 }
 0x1e8   :  { %v365_v57 = vrot.slane %v364_v55, 2  ;;  %v374_v58 = vadd.f32 %v373_v56, %v372_v54 }
 0x1ea   :  { %v366_v59 = vadd.f32 %v365_v57, %v364_v55  ;;  %v375_v60 = vrot.slane %v374_v58, 2 }
 0x1ec   :  { %v367_v61 = vrot.slane %v366_v59, 1  ;;  %v376_v62 = vadd.f32 %v375_v60, %v374_v58 }
 0x1ee   :  { %v368_v63 = vadd.f32 %v367_v61, %v366_v59  ;;  %v377_v0 = vrot.slane %v376_v62, 1 }
 0x1f0   :  { %v369_v1 = vmul.f32 0.0625, %v368_v63  ;;  %v378_v2 = vadd.f32 %v377_v0, %v376_v62 }
 0x1f2   :  { %v379_v3 = vmul.f32 0.0625, %v378_v2  ;;  %v380_v4 = vmul.f32 %v369_v1, %v369_v1 }
 0x1f4   :  { %v381_v5 = vsub.f32 %v379_v3, %v380_v4 }
 0x1f6   :  { %v382_v6 = vmax.f32 %v381_v5, 0.0 }
 0x1f8   :  { %v383_v7 = vadd.f32 1e-05, %v382_v6 }
 0x1fa   :  { %820 = vrsqrt.f32 %v383_v7 }
 0x207   :  { %v821_v9 = vpop.eup %820 }
 0x208   :  { %v385_v10 = vmul.f32 %v821_v9, %v360_v8 }
 0x20a   :  { %v386_v12 = vmul.f32 %v385_v10, %v369_v1  ;;  %v392_v13 = vrot.slane %v385_v10, %v975_v27  ;;  %v831_v10 = vmov 1966171168  }
 0x20c   :  { %v387_v14 = vsub.f32 %v361_v11, %v386_v12  ;;  %v394_v15 = vmul.f32 %v392_v13, %v353_v46  ;;  %v395_v16 = vmul.f32 %v392_v13, %v356_v48  ;;  %v598_v11 = vunpack.c.l.s4 %v831_v10 }
 0x20e   :  { %v400_v17 = vrot.slane %v387_v14, %v975_v27  ;;  %v599_v12 = vunpack.c.0.s8 %v598_v11 }
 0x210   :  { %v402_v18 = vadd.f32 %v400_v17, %v394_v15  ;;  %v403_v19 = vadd.f32 %v400_v17, %v395_v16  ;;  %v602_v14 = vsub.s32 %v599_v12, %v972_v24  ;;  %v547_v24 = vld [vmem:[%s1102_s11] sm:$0x3] }
 0x212   :  { %v405_v20 = vmax.f32 %v403_v19, 0.0  ;;  %v404_v21 = vmax.f32 %v402_v18, 0.0  ;;  %v546_v18 = vld [vmem:[%s1101_s10] sm:$0x3] }
 0x214   :  { %v406_v22 = vpack.c.bf16 %v405_v20, %v404_v21 }
 0x216   :  { %536 = vmatmul.mubr.bf16.vlgmr.msra.gmra.mxu0 %v406_v22 }
 0x2d6   :  { %v1050_v23 = vpop.f32.mrf.mxu0 }
 0x2d7   :  { %v564_v29 = vmul.f32 %v1050_v23, %v1050_v23 }
 0x2d8   :  { %v1052_v25 = vpop.f32.mrf.mxu0 }
 0x2d9   :  { %v565_v32 = vmul.f32 %v1052_v25, %v1052_v25 }
 0x2da   :  { %v1054_v26 = vpop.f32.mrf.mxu0 }
 0x2db   :  { %v548_v30 = vadd.f32 %v1054_v26, %v1050_v23  ;;  %v566_v31 = vmul.f32 %v1054_v26, %v1054_v26 }
 0x2dc   :  { %v1064_v33 = vpop.f32.mrf.mxu0 }
 0x2dd   :  { %v549_v34 = vrot.slane %v548_v30, 4  ;;  %v568_v35 = vadd.f32 %v566_v31, %v564_v29  ;;  %v555_v36 = vadd.f32 %v1064_v33, %v1052_v25  ;;  %v567_v37 = vmul.f32 %v1064_v33, %v1064_v33 }
 0x2df   :  { %v550_v38 = vadd.f32 %v549_v34, %v548_v30  ;;  %v569_v39 = vrot.slane %v568_v35, 4  ;;  %v556_v40 = vrot.slane %v555_v36, 4  ;;  %v575_v41 = vadd.f32 %v567_v37, %v565_v32 }
 0x2e1   :  { %v551_v42 = vrot.slane %v550_v38, 2  ;;  %v570_v43 = vadd.f32 %v569_v39, %v568_v35  ;;  %v557_v44 = vadd.f32 %v556_v40, %v555_v36  ;;  %v576_v45 = vrot.slane %v575_v41, 4 }
 0x2e3   :  { %v552_v46 = vadd.f32 %v551_v42, %v550_v38  ;;  %v571_v47 = vrot.slane %v570_v43, 2  ;;  %v558_v48 = vrot.slane %v557_v44, 2  ;;  %v577_v49 = vadd.f32 %v576_v45, %v575_v41 }
 0x2e5   :  { %v553_v50 = vrot.slane %v552_v46, 1  ;;  %v572_v51 = vadd.f32 %v571_v47, %v570_v43  ;;  %v559_v52 = vadd.f32 %v558_v48, %v557_v44  ;;  %v578_v53 = vrot.slane %v577_v49, 2 }
 0x2e7   :  { %v554_v54 = vadd.f32 %v553_v50, %v552_v46  ;;  %v573_v55 = vrot.slane %v572_v51, 1  ;;  %v560_v56 = vrot.slane %v559_v52, 1  ;;  %v579_v57 = vadd.f32 %v578_v53, %v577_v49 }
 0x2e9   :  { %v562_v58 = vmul.f32 0.0625, %v554_v54  ;;  %v574_v59 = vadd.f32 %v573_v55, %v572_v51  ;;  %v561_v60 = vadd.f32 %v560_v56, %v559_v52  ;;  %v580_v61 = vrot.slane %v579_v57, 1 }
 0x2eb   :  { %v582_v62 = vmul.f32 0.0625, %v574_v59  ;;  %v584_v63 = vmul.f32 %v562_v58, %v562_v58  ;;  %v563_v0 = vmul.f32 0.0625, %v561_v60  ;;  %v581_v1 = vadd.f32 %v580_v61, %v579_v57 }
 0x2ed   :  { %v586_v2 = vsub.f32 %v582_v62, %v584_v63  ;;  %v583_v3 = vmul.f32 0.0625, %v581_v1  ;;  %v585_v4 = vmul.f32 %v563_v0, %v563_v0 }
 0x2ef   :  { %v588_v5 = vmax.f32 %v586_v2, 0.0  ;;  %v587_v6 = vsub.f32 %v583_v3, %v585_v4 }
 0x2f1   :  { %v590_v7 = vadd.f32 1e-05, %v588_v5  ;;  %v589_v8 = vmax.f32 %v587_v6, 0.0 }
 0x2f3   :  { %v591_v9 = vadd.f32 1e-05, %v589_v8  ;;  %822 = vrsqrt.f32 %v590_v7 }
 0x2f5   :  { %824 = vrsqrt.f32 %v591_v9 }
 0x300   :  { %v823_v13 = vpop.eup %822 }
 0x302   :  { %v825_v15 = vpop.eup %824 }
 0x303   :  { %v596_v16 = vcombine.low %v823_v13, %v825_v15 }
 0x305   :  { %v603_v17 = vrot.slane %v596_v16, %v602_v14 }
 0x307   :  { %v610_v19 = vrot.slane %v603_v17, %v602_v14 }
 0x309   :  { %v612_v20 = vmul.f32 %v610_v19, %v546_v18 }
 0x30b   :  { %v617_v21 = vrot.slane %v612_v20, %v975_v27  ;;  %v621_v22 = vrot.slane %v612_v20, %v978_v28 }
 0x30d   :  { %v624_v29 = vmul.f32 %v617_v21, %v562_v58  ;;  %v625_v30 = vmul.f32 %v621_v22, %v563_v0  ;;  %v645_v36 = vmul.f32 %v617_v21, %v1050_v23  ;;  %v646_v37 = vmul.f32 %v621_v22, %v1052_v25 }
 0x30e   :  { %v647_v38 = vmul.f32 %v617_v21, %v1054_v26  ;;  %v648_v39 = vmul.f32 %v621_v22, %v1064_v33 }
 0x30f   :  { %v628_v31 = vcombine.low %v624_v29, %v625_v30 }
 0x311   :  { %v635_v32 = vrot.slane %v628_v31, %v602_v14 }
 0x313   :  { %v642_v34 = vrot.slane %v635_v32, %v602_v14 }
 0x315   :  { %v644_v35 = vsub.f32 %v547_v24, %v642_v34 }
 0x317   :  { %v653_v40 = vrot.slane %v644_v35, %v975_v27  ;;  %v657_v41 = vrot.slane %v644_v35, %v978_v28 }
 0x319   :  { %v660_v42 = vadd.f32 %v653_v40, %v645_v36  ;;  %v661_v43 = vadd.f32 %v657_v41, %v646_v37  ;;  %v662_v44 = vadd.f32 %v653_v40, %v647_v38  ;;  %v663_v45 = vadd.f32 %v657_v41, %v648_v39 }
 0x31b   :  { %v664_v46 = vmax.f32 %v660_v42, 0.0  ;;  %v665_v47 = vmax.f32 %v661_v43, 0.0  ;;  %v666_v48 = vmax.f32 %v662_v44, 0.0  ;;  %v667_v49 = vmax.f32 %v663_v45, 0.0 }
 0x31d   :  { %v668_v50 = vmax.f32 %v664_v46, %v666_v48  ;;  %v669_v23 = vmax.f32 %v665_v47, %v667_v49 }
 0x31f   :  { %670 = vst [vmem:[%s1103_s12] sm:$0xff] %v668_v50  ;;  %671 = vst [vmem:[%s1103_s12 + $0x8] sm:$0xff] %v669_v23 }

// kernel: pointnet_plus_forward.5
= control target key start
LH: loop header
LB: loop body
LE: loop exit
PB: predicated region body
PF: predicated region fallthrough
CT: control target
= control target key end

     0   :  { %v4560_v1 = vmov 1   ;;  %v4561_v2 = vmov 0   ;;  %v4562_v27 = vmov 2   ;;  %s6548_s3 = inlined_call_operand.vmem [shape: bf16[256,256], index: 3, kind: input, shape index: {}]   ;;  %s6549_s1 = inlined_call_operand.vmem [shape: bf16[32,256], index: 1, kind: input, shape index: {}]   ;;  %s6550_s0 = inlined_call_operand.vmem [shape: f32[32,3], index: 0, kind: input, shape index: {}]   ;;  %s6551_s6 = inlined_call_operand.vmem [shape: bf16[256,512], index: 6, kind: input, shape index: {}]   ;;  %s6552_s2 = inlined_call_operand.vmem [shape: f32[3,256], index: 2, kind: input, shape index: {}]   ;;  %s6553_s4 = inlined_call_operand.vmem [shape: f32[1,256], index: 4, kind: input, shape index: {}]   ;;  %s6554_s5 = inlined_call_operand.vmem [shape: f32[1,256], index: 5, kind: input, shape index: {}]   ;;  %s6555_s9 = inlined_call_operand.vmem [shape: bf16[512,1024], index: 9, kind: input, shape index: {}]   ;;  %s6556_s7 = inlined_call_operand.vmem [shape: f32[1,512], index: 7, kind: input, shape index: {}]   ;;  %s6557_s8 = inlined_call_operand.vmem [shape: f32[1,512], index: 8, kind: input, shape index: {}]   ;;  %s6558_s10 = inlined_call_operand.vmem [shape: f32[1,1024], index: 10, kind: input, shape index: {}]   ;;  %s6559_s11 = inlined_call_operand.vmem [shape: f32[1,1024], index: 11, kind: input, shape index: {}]   ;;  %s6560_s12 = inlined_call_operand.vmem [shape: f32[8,1024], index: 12, kind: output, shape index: {}]  }
   0x1   :  { %v4382_v0 = vld [vmem:[%s6548_s3 + $0x74] ss:$8 sps:$4 sm:$0xff]   ;;  %4375 = vset.pattern.permute.xlu1 %v4560_v1  ;;  %4374 = vset.pattern.permute.xlu0 %v4561_v2  ;;  %v4384_v3 = vld [vmem:[%s6548_s3 + $0x70] ss:$8 sps:$4 sm:$0xff]   ;;  %v4385_v4 = vld [vmem:[%s6548_s3 + $0x64] ss:$8 sps:$4 sm:$0xff]  }
   0x2   :  { %430 = vmatprep.subr.bf16.mxu0 %v4382_v0  ;;  %v4387_v5 = vld [vmem:[%s6548_s3 + $0x60] ss:$8 sps:$4 sm:$0xff]   ;;  %v4388_v6 = vld [vmem:[%s6548_s3 + $0x54] ss:$8 sps:$4 sm:$0xff]   ;;  %v4390_v7 = vld [vmem:[%s6548_s3 + $0x50] ss:$8 sps:$4 sm:$0xff]  }
   0x3   :  { %431 = vmatpush1.bf16.msra.mxu0 %v4384_v3  ;;  %v4391_v8 = vld [vmem:[%s6548_s3 + $0x44] ss:$8 sps:$4 sm:$0xff]   ;;  %v4393_v9 = vld [vmem:[%s6548_s3 + $0x40] ss:$8 sps:$4 sm:$0xff]   ;;  %v4394_v10 = vld [vmem:[%s6548_s3 + $0x34] ss:$8 sps:$4 sm:$0xff]  }
   0x4   :  { %432 = vmatprep.subr.bf16.mxu0 %v4385_v4  ;;  %v4396_v11 = vld [vmem:[%s6548_s3 + $0x30] ss:$8 sps:$4 sm:$0xff]   ;;  %v4397_v12 = vld [vmem:[%s6548_s3 + $0x24] ss:$8 sps:$4 sm:$0xff]   ;;  %v4399_v13 = vld [vmem:[%s6548_s3 + $0x20] ss:$8 sps:$4 sm:$0xff]  }
   0x5   :  { %v4400_v14 = vld [vmem:[%s6548_s3 + $0x14] ss:$8 sps:$4 sm:$0xff]   ;;  %v4432_v15 = vld [vmem:[%s6549_s1 + $0x4] ss:$8 sps:$4 sm:$0xff]   ;;  %v4402_v16 = vld [vmem:[%s6548_s3 + $0x10] ss:$8 sps:$4 sm:$0xff]  }
   0x6   :  { %v4403_v17 = vld [vmem:[%s6548_s3 + $0x4] ss:$8 sps:$4 sm:$0xff]   ;;  %462 = vmatprep.mubr.bf16.mxu0 %v4432_v15  ;;  %v4405_v20 = vld [vmem:[%s6548_s3] ss:$8 sps:$4 sm:$0xff]   ;;  %v4406_v21 = vld [vmem:[%s6548_s3 + $0xf4] ss:$8 sps:$4 sm:$0xff]  }
   0x7   :  { %433 = vmatpush1.bf16.msra.mxu0 %v4387_v5  ;;  %v62_v18 = vld [vmem:[%s6550_s0] sm:$0xff]  ;;  %v63_v19 = vld [vmem:[%s6550_s0 + $0x8] sm:$0xff]  ;;  %v64_v22 = vld [vmem:[%s6550_s0 + $0x10] sm:$0xff] }
   0x8   :  { %434 = vmatprep.subr.bf16.mxu0 %v4388_v6  ;;  %115 = vperm.xlu1 %4375, %v62_v18   ;;  %v4408_v23 = vld [vmem:[%s6548_s3 + $0xf0] ss:$8 sps:$4 sm:$0xff]   ;;  %v4409_v24 = vld [vmem:[%s6548_s3 + $0xe4] ss:$8 sps:$4 sm:$0xff]   ;;  %v4411_v25 = vld [vmem:[%s6548_s3 + $0xe0] ss:$8 sps:$4 sm:$0xff]  }
   0x9   :  { %69 = vperm.xlu0 %4374, %v62_v18   ;;  %v4412_v26 = vld [vmem:[%s6548_s3 + $0xd4] ss:$8 sps:$4 sm:$0xff]   ;;  %v4414_v28 = vld [vmem:[%s6548_s3 + $0xd0] ss:$8 sps:$4 sm:$0xff]   ;;  %v4415_v29 = vld [vmem:[%s6548_s3 + $0xc4] ss:$8 sps:$4 sm:$0xff]  }
   0xa   :  { %v65_v30 = vld [vmem:[%s6550_s0 + $0x18] sm:$0xff]  ;;  %v4417_v31 = vld [vmem:[%s6548_s3 + $0xc0] ss:$8 sps:$4 sm:$0xff]   ;;  %v4421_v34 = vld [vmem:[%s6548_s3 + $0xa4] ss:$8 sps:$4 sm:$0xff]  }
   0xb   :  { %435 = vmatpush1.bf16.msra.mxu0 %v4390_v7  ;;  %v4418_v32 = vld [vmem:[%s6548_s3 + $0xb4] ss:$8 sps:$4 sm:$0xff]   ;;  %v4420_v33 = vld [vmem:[%s6548_s3 + $0xb0] ss:$8 sps:$4 sm:$0xff]   ;;  %v4423_v35 = vld [vmem:[%s6548_s3 + $0xa0] ss:$8 sps:$4 sm:$0xff]  }
   0xc   :  { %436 = vmatprep.subr.bf16.mxu0 %v4391_v8  ;;  %119 = vperm.xlu1 %4375, %v63_v19   ;;  %v4424_v36 = vld [vmem:[%s6548_s3 + $0x94] ss:$8 sps:$4 sm:$0xff]   ;;  %v4426_v37 = vld [vmem:[%s6548_s3 + $0x90] ss:$8 sps:$4 sm:$0xff]   ;;  %v4427_v38 = vld [vmem:[%s6548_s3 + $0x84] ss:$8 sps:$4 sm:$0xff]  }
   0xd   :  { %74 = vperm.xlu0 %4374, %v63_v19   ;;  %v4429_v39 = vld [vmem:[%s6548_s3 + $0x80] ss:$8 sps:$4 sm:$0xff]   ;;  %v4433_v41 = vld [vmem:[%s6549_s1 + $0x14] ss:$8 sps:$4 sm:$0xff]   ;;  %v4435_v42 = vld [vmem:[%s6549_s1 + $0x10] ss:$8 sps:$4 sm:$0xff]  }
   0xe   :  { %v4430_v40 = vld [vmem:[%s6549_s1] ss:$8 sps:$4 sm:$0xff]   ;;  %v4436_v43 = vld [vmem:[%s6551_s6 + $0xe4] ss:$16 sps:$4 sm:$0xff]   ;;  %v4440_v45 = vld [vmem:[%s6551_s6 + $0xec] ss:$16 sps:$4 sm:$0xff]  }
   0xf   :  { %437 = vmatpush1.bf16.msra.mxu0 %v4393_v9  ;;  %v4438_v44 = vld [vmem:[%s6551_s6 + $0xe8] ss:$16 sps:$4 sm:$0xff]   ;;  %1041 = vmatprep.subr.bf16.mxu1 %v4436_v43  ;;  %v4441_v46 = vld [vmem:[%s6551_s6 + $0xe0] ss:$16 sps:$4 sm:$0xff]   ;;  %v4442_v47 = vld [vmem:[%s6551_s6 + $0xc4] ss:$16 sps:$4 sm:$0xff]  }
  0x10   :  { %438 = vmatprep.subr.bf16.mxu0 %v4394_v10  ;;  %123 = vperm.xlu1 %4375, %v64_v22   ;;  %v4446_v48 = vld [vmem:[%s6551_s6 + $0xcc] ss:$16 sps:$4 sm:$0xff]   ;;  %v4444_v49 = vld [vmem:[%s6551_s6 + $0xc8] ss:$16 sps:$4 sm:$0xff]   ;;  %v4447_v50 = vld [vmem:[%s6551_s6 + $0xc0] ss:$16 sps:$4 sm:$0xff]  }
  0x11   :  { %79 = vperm.xlu0 %4374, %v64_v22   ;;  %1042 = vmatpush1.bf16.msra.mxu1 %v4441_v46  ;;  %v4448_v51 = vld [vmem:[%s6551_s6 + $0xa4] ss:$16 sps:$4 sm:$0xff]   ;;  %v4452_v52 = vld [vmem:[%s6551_s6 + $0xac] ss:$16 sps:$4 sm:$0xff]   ;;  %v4450_v53 = vld [vmem:[%s6551_s6 + $0xa8] ss:$16 sps:$4 sm:$0xff]  }
  0x12   :  { %1043 = vmatprep.subr.bf16.mxu1 %v4442_v47  ;;  %v4453_v54 = vld [vmem:[%s6551_s6 + $0xa0] ss:$16 sps:$4 sm:$0xff]   ;;  %v4454_v55 = vld [vmem:[%s6551_s6 + $0x84] ss:$16 sps:$4 sm:$0xff]   ;;  %v4458_v56 = vld [vmem:[%s6551_s6 + $0x8c] ss:$16 sps:$4 sm:$0xff]  }
  0x13   :  { %439 = vmatpush1.bf16.msra.mxu0 %v4396_v11  ;;  %v4456_v57 = vld [vmem:[%s6551_s6 + $0x88] ss:$16 sps:$4 sm:$0xff]   ;;  %v4459_v58 = vld [vmem:[%s6551_s6 + $0x80] ss:$16 sps:$4 sm:$0xff]   ;;  %v4460_v59 = vld [vmem:[%s6551_s6 + $0x64] ss:$16 sps:$4 sm:$0xff]  }
  0x14   :  { %440 = vmatprep.subr.bf16.mxu0 %v4397_v12  ;;  %4377 = vset.pattern.permute.xlu1 %v4562_v27  ;;  %v4464_v60 = vld [vmem:[%s6551_s6 + $0x6c] ss:$16 sps:$4 sm:$0xff]   ;;  %v4462_v61 = vld [vmem:[%s6551_s6 + $0x68] ss:$16 sps:$4 sm:$0xff]   ;;  %v4465_v62 = vld [vmem:[%s6551_s6 + $0x60] ss:$16 sps:$4 sm:$0xff]  }
  0x15   :  { %4376 = vset.pattern.permute.xlu0 %v4562_v27  ;;  %169 = vperm.xlu1 %4377, %v63_v19   ;;  %v4466_v63 = vld [vmem:[%s6551_s6 + $0x44] ss:$16 sps:$4 sm:$0xff]   ;;  %v4470_v0 = vld [vmem:[%s6551_s6 + $0x4c] ss:$16 sps:$4 sm:$0xff]   ;;  %v4474_v5 = vld [vmem:[%s6551_s6 + $0x28] ss:$16 sps:$4 sm:$0xff]  }
  0x16   :  { %165 = vperm.xlu0 %4376, %v62_v18   ;;  %1044 = vmatpush1.bf16.msra.mxu1 %v4447_v50  ;;  %v4472_v3 = vld [vmem:[%s6551_s6 + $0x24] ss:$16 sps:$4 sm:$0xff]   ;;  %v4476_v4 = vld [vmem:[%s6551_s6 + $0x2c] ss:$16 sps:$4 sm:$0xff]   ;;  %v4477_v6 = vld [vmem:[%s6551_s6 + $0x20] ss:$16 sps:$4 sm:$0xff]  }
  0x17   :  { %441 = vmatpush1.bf16.msra.mxu0 %v4399_v13  ;;  %1045 = vmatprep.subr.bf16.mxu1 %v4448_v51  ;;  %v4478_v7 = vld [vmem:[%s6551_s6 + $0x4] ss:$16 sps:$4 sm:$0xff]   ;;  %v4482_v8 = vld [vmem:[%s6551_s6 + $0xc] ss:$16 sps:$4 sm:$0xff]   ;;  %v4480_v9 = vld [vmem:[%s6551_s6 + $0x8] ss:$16 sps:$4 sm:$0xff]  }
  0x18   :  { %442 = vmatprep.subr.bf16.mxu0 %v4400_v14  ;;  %v4483_v10 = vld [vmem:[%s6551_s6] ss:$16 sps:$4 sm:$0xff]   ;;  %v4484_v11 = vld [vmem:[%s6551_s6 + $0x1e4] ss:$16 sps:$4 sm:$0xff]   ;;  %v4488_v12 = vld [vmem:[%s6551_s6 + $0x1ec] ss:$16 sps:$4 sm:$0xff]  }
  0x19   :  { %4378 = vset.pattern.permute.xlu1 %v4561_v2  ;;  %v4471_v2 = vld [vmem:[%s6551_s6 + $0x40] ss:$16 sps:$4 sm:$0xff]   ;;  %v4486_v14 = vld [vmem:[%s6551_s6 + $0x1e8] ss:$16 sps:$4 sm:$0xff]   ;;  %v4490_v15 = vld [vmem:[%s6551_s6 + $0x1c4] ss:$16 sps:$4 sm:$0xff]  }
  0x1a   :  { %4379 = vset.pattern.permute.xlu0 %v4560_v1  ;;  %84 = vperm.xlu1 %4378, %v65_v30   ;;  %v4468_v1 = vld [vmem:[%s6551_s6 + $0x48] ss:$16 sps:$4 sm:$0xff]   ;;  %v4489_v13 = vld [vmem:[%s6551_s6 + $0x1e0] ss:$16 sps:$4 sm:$0xff]   ;;  %v4496_v19 = vld [vmem:[%s6551_s6 + $0x1a4] ss:$16 sps:$4 sm:$0xff]  }
  0x1b   :  { %443 = vmatpush1.bf16.msra.mxu0 %v4402_v16  ;;  %127 = vperm.xlu0 %4379, %v65_v30   ;;  %v4494_v16 = vld [vmem:[%s6551_s6 + $0x1cc] ss:$16 sps:$4 sm:$0xff]   ;;  %v4492_v18 = vld [vmem:[%s6551_s6 + $0x1c8] ss:$16 sps:$4 sm:$0xff]   ;;  %v66_v51 = vld [vmem:[%s6552_s2] sm:$0x77] }
  0x1c   :  { %444 = vmatprep.subr.bf16.mxu0 %v4403_v17  ;;  %1046 = vmatpush1.bf16.msra.mxu1 %v4453_v54  ;;  %v4495_v17 = vld [vmem:[%s6551_s6 + $0x1c0] ss:$16 sps:$4 sm:$0xff]  }
  0x1d   :  { %1047 = vmatprep.subr.bf16.mxu1 %v4454_v55 }
  0x1e   :  { %4380 = vset.pattern.permute.xlu1 %v4562_v27 }
  0x1f   :  { %445 = vmatpush1.bf16.msra.mxu0 %v4405_v20  ;;  %173 = vperm.xlu1 %4380, %v64_v22   ;;  %v4500_v20 = vld [vmem:[%s6551_s6 + $0x1ac] ss:$16 sps:$4 sm:$0xff]   ;;  %v4498_v22 = vld [vmem:[%s6551_s6 + $0x1a8] ss:$16 sps:$4 sm:$0xff]  }
  0x20   :  { %446 = vmatprep.subr.bf16.mxu0 %v4406_v21  ;;  %4381 = vset.pattern.permute.xlu0 %v4562_v27  ;;  %v4501_v21 = vld [vmem:[%s6551_s6 + $0x1a0] ss:$16 sps:$4 sm:$0xff]   ;;  %v4508_v27 = vld [vmem:[%s6551_s6 + $0x164] ss:$16 sps:$4 sm:$0xff]  }
  0x21   :  { %1048 = vmatpush1.bf16.msra.mxu1 %v4459_v58 }
  0x22   :  { %1049 = vmatprep.subr.bf16.mxu1 %v4460_v59 }
  0x23   :  { %447 = vmatpush2.bf16.msra.mxu0 %v4408_v23  ;;  %177 = vperm.xlu1 %4380, %v65_v30   ;;  %v4502_v23 = vld [vmem:[%s6551_s6 + $0x184] ss:$16 sps:$4 sm:$0xff]   ;;  %v4510_v30 = vld [vmem:[%s6551_s6 + $0x168] ss:$16 sps:$4 sm:$0xff]  }
  0x24   :  { %448 = vmatprep.subr.bf16.mxu0 %v4409_v24  ;;  %v4506_v24 = vld [vmem:[%s6551_s6 + $0x18c] ss:$16 sps:$4 sm:$0xff]  }
  0x25   :  { %1050 = vmatpush1.bf16.msra.mxu1 %v4465_v62 }
  0x26   :  { %1051 = vmatprep.subr.bf16.mxu1 %v4466_v63 }
  0x27   :  { %449 = vmatpush2.bf16.msra.mxu0 %v4411_v25  ;;  %v4507_v25 = vld [vmem:[%s6551_s6 + $0x180] ss:$16 sps:$4 sm:$0xff]  }
  0x28   :  { %450 = vmatprep.subr.bf16.mxu0 %v4412_v26  ;;  %v4504_v26 = vld [vmem:[%s6551_s6 + $0x188] ss:$16 sps:$4 sm:$0xff]  }
  0x29   :  { %1052 = vmatpush1.bf16.msra.mxu1 %v4471_v2 }
  0x2a   :  { %1053 = vmatprep.subr.bf16.mxu1 %v4472_v3 }
  0x2b   :  { %451 = vmatpush2.bf16.msra.mxu0 %v4414_v28  ;;  %v4512_v28 = vld [vmem:[%s6551_s6 + $0x16c] ss:$16 sps:$4 sm:$0xff]  }
  0x2c   :  { %452 = vmatprep.subr.bf16.mxu0 %v4415_v29  ;;  %v4513_v29 = vld [vmem:[%s6551_s6 + $0x160] ss:$16 sps:$4 sm:$0xff]  }
  0x2d   :  { %1054 = vmatpush1.bf16.msra.mxu1 %v4477_v6 }
  0x2e   :  { %1055 = vmatprep.subr.bf16.mxu1 %v4478_v7 }
  0x2f   :  { %453 = vmatpush2.bf16.msra.mxu0 %v4417_v31  ;;  %v4514_v31 = vld [vmem:[%s6551_s6 + $0x144] ss:$16 sps:$4 sm:$0xff]  }
  0x30   :  { %454 = vmatprep.subr.bf16.mxu0 %v4418_v32  ;;  %v4518_v32 = vld [vmem:[%s6551_s6 + $0x14c] ss:$16 sps:$4 sm:$0xff]  }
  0x31   :  { %1056 = vmatpush1.bf16.msra.mxu1 %v4483_v10 }
  0x32   :  { %1057 = vmatprep.subr.bf16.mxu1 %v4484_v11 }
  0x33   :  { %455 = vmatpush2.bf16.msra.mxu0 %v4420_v33  ;;  %v4519_v33 = vld [vmem:[%s6551_s6 + $0x140] ss:$16 sps:$4 sm:$0xff]  }
  0x34   :  { %456 = vmatprep.subr.bf16.mxu0 %v4421_v34  ;;  %v4516_v34 = vld [vmem:[%s6551_s6 + $0x148] ss:$16 sps:$4 sm:$0xff]  }
  0x35   :  { %1058 = vmatpush2.bf16.msra.mxu1 %v4489_v13 }
  0x36   :  { %1059 = vmatprep.subr.bf16.mxu1 %v4490_v15 }
  0x37   :  { %457 = vmatpush2.bf16.msra.mxu0 %v4423_v35  ;;  %v4520_v35 = vld [vmem:[%s6551_s6 + $0x124] ss:$16 sps:$4 sm:$0xff]  }
  0x38   :  { %458 = vmatprep.subr.bf16.mxu0 %v4424_v36  ;;  %v4524_v36 = vld [vmem:[%s6551_s6 + $0x12c] ss:$16 sps:$4 sm:$0xff]  }
  0x39   :  { %1060 = vmatpush2.bf16.msra.mxu1 %v4495_v17 }
  0x3a   :  { %1061 = vmatprep.subr.bf16.mxu1 %v4496_v19 }
  0x3b   :  { %459 = vmatpush2.bf16.msra.mxu0 %v4426_v37  ;;  %v4525_v37 = vld [vmem:[%s6551_s6 + $0x120] ss:$16 sps:$4 sm:$0xff]  }
  0x3c   :  { %460 = vmatprep.subr.bf16.mxu0 %v4427_v38  ;;  %v4522_v38 = vld [vmem:[%s6551_s6 + $0x128] ss:$16 sps:$4 sm:$0xff]  }
  0x3d   :  { %1062 = vmatpush2.bf16.msra.mxu1 %v4501_v21 }
  0x3e   :  { %1063 = vmatprep.subr.bf16.mxu1 %v4502_v23 }
  0x3f   :  { %461 = vmatpush2.bf16.msra.mxu0 %v4429_v39  ;;  %v4526_v39 = vld [vmem:[%s6551_s6 + $0x104] ss:$16 sps:$4 sm:$0xff]  }
  0x40   :  { %1094 = vmatprep.subr.bf16.mxu0 %v4440_v45 }
  0x41   :  { %1064 = vmatpush2.bf16.msra.mxu1 %v4507_v25 }
  0x42   :  { %463 = vmatmul.mubr.bf16.vlgmr.msra.gmra.mxu0 %v4430_v40  ;;  %1065 = vmatprep.subr.bf16.mxu1 %v4508_v27  ;;  %v4530_v40 = vld [vmem:[%s6551_s6 + $0x10c] ss:$16 sps:$4 sm:$0xff]  }
  0x43   :  { %472 = vmatprep.mubr.bf16.mxu0 %v4433_v41  ;;  %1095 = vmatpush1.bf16.msra.mxu0 %v4438_v44  ;;  %v4531_v41 = vld [vmem:[%s6551_s6 + $0x100] ss:$16 sps:$4 sm:$0xff]   ;;  %v41_v44 = vlaneseq }
  0x44   :  { %1096 = vmatprep.subr.bf16.mxu0 %v4446_v48 }
  0x45   :  { %1066 = vmatpush2.bf16.msra.mxu1 %v4513_v29  ;;  %v4946_v47 = vshrl.u32 %v41_v44, 7 }
  0x46   :  { %1067 = vmatprep.subr.bf16.mxu1 %v4514_v31 }
  0x47   :  { %1097 = vmatpush1.bf16.msra.mxu0 %v4444_v49  ;;  %v4949_v48 = vsub.s32 1, %v4946_v47  ;;  %v4952_v50 = vsub.s32 0, %v4946_v47  ;;  %v4961_v54 = vsub.s32 4, %v4946_v47  ;;  %v4964_v55 = vsub.s32 2, %v4946_v47 }
  0x48   :  { %1098 = vmatprep.subr.bf16.mxu0 %v4452_v52  ;;  %v43_v2 = vadd.s32 8, %v4946_v47  ;;  %v46_v10 = vand.u32 7, %v4946_v47 }
  0x49   :  { %1068 = vmatpush2.bf16.msra.mxu1 %v4519_v33  ;;  %v95_v59 = vrot.slane %v66_v51, %v4961_v54  ;;  %v183_v62 = vrot.slane %v66_v51, %v4964_v55 }
  0x4a   :  { %473 = vmatmul.mubr.bf16.gmra.mxu0 %v4435_v42  ;;  %1069 = vmatprep.subr.bf16.mxu1 %v4520_v35  ;;  %v4528_v42 = vld [vmem:[%s6551_s6 + $0x108] ss:$16 sps:$4 sm:$0xff]   ;;  %v47_v11 = vand.u32 7, %v43_v2  ;;  %vm4984_vm0 = vcmp.lt.s32.totalorder %v46_v10, 2  ;;  %v45_v35 = vadd.s32 24, %v4946_v47 }
  0x4b   :  { %1099 = vmatpush1.bf16.msra.mxu0 %v4450_v53  ;;  %v4958_v53 = vsub.s32 5, %v4946_v47  ;;  %v193_v6 = vrot.slane %v183_v62, %v4964_v55 }
  0x4c   :  { %1100 = vmatprep.subr.bf16.mxu0 %v4458_v56  ;;  %v133_v56 = vrot.slane %v66_v51, %v4949_v48  ;;  %vm4988_vm1 = vcmp.lt.s32.totalorder %v47_v11, 2  ;;  %v49_v62 = vand.u32 7, %v45_v35 }
  0x4d   :  { %1070 = vmatpush2.bf16.msra.mxu1 %v4525_v37  ;;  %v137_v58 = vrot.slane %v66_v51, %v4958_v53 }
  0x4e   :  { %1071 = vmatprep.subr.bf16.mxu1 %v4526_v39  ;;  %v4563_v39 = vmov 0.0   ;;  %vm53_vm3 = vcmp.lt.s32.totalorder %v49_v62, 2 }
  0x4f   :  { %1101 = vmatpush1.bf16.msra.mxu0 %v4456_v57  ;;  %v91_v57 = vrot.slane %v66_v51, %v4952_v50  ;;  %v147_v3 = vrot.slane %v137_v58, %v4949_v48 }
  0x50   :  { %1102 = vmatprep.subr.bf16.mxu0 %v4464_v60  ;;  %v4971_v60 = vsub.s32 6, %v4946_v47 }
  0x51   :  { %1072 = vmatpush2.bf16.msra.mxu1 %v4531_v41 }
  0x52   :  { %6580 = vst [vmem:[#allocation2_spill] sm:$0xff] %v4971_v60 }
  0x53   :  { %1103 = vmatpush1.bf16.msra.mxu0 %v4462_v61 }
  0x54   :  { %1104 = vmatprep.subr.bf16.mxu0 %v4470_v0  ;;  %v143_v0 = vrot.slane %v133_v56, %v4949_v48 }
  0x57   :  { %1105 = vmatpush1.bf16.msra.mxu0 %v4468_v1  ;;  %v101_v1 = vrot.slane %v91_v57, %v4952_v50 }
  0x58   :  { %1106 = vmatprep.subr.bf16.mxu0 %v4476_v4  ;;  %v105_v4 = vrot.slane %v95_v59, %v4952_v50 }
  0x5b   :  { %1107 = vmatpush1.bf16.msra.mxu0 %v4474_v5  ;;  %v187_v5 = vrot.slane %v66_v51, %v4971_v60 }
  0x5c   :  { %1108 = vmatprep.subr.bf16.mxu0 %v4482_v8 }
  0x5d   :  { %v197_v17 = vrot.slane %v187_v5, %v4964_v55 }
  0x5f   :  { %1109 = vmatpush1.bf16.msra.mxu0 %v4480_v9 }
  0x60   :  { %1110 = vmatprep.subr.bf16.mxu0 %v4488_v12 }
  0x63   :  { %1111 = vmatpush2.bf16.msra.mxu0 %v4486_v14 }
  0x64   :  { %1112 = vmatprep.subr.bf16.mxu0 %v4494_v16 }
  0x67   :  { %1113 = vmatpush2.bf16.msra.mxu0 %v4492_v18  ;;  %v44_v18 = vadd.s32 16, %v4946_v47 }
  0x68   :  { %1114 = vmatprep.subr.bf16.mxu0 %v4500_v20 }
  0x6b   :  { %1115 = vmatpush2.bf16.msra.mxu0 %v4498_v22 }
  0x6c   :  { %1116 = vmatprep.subr.bf16.mxu0 %v4506_v24 }
  0x6f   :  { %1117 = vmatpush2.bf16.msra.mxu0 %v4504_v26 }
  0x70   :  { %1118 = vmatprep.subr.bf16.mxu0 %v4512_v28 }
  0x73   :  { %1119 = vmatpush2.bf16.msra.mxu0 %v4510_v30 }
  0x74   :  { %1120 = vmatprep.subr.bf16.mxu0 %v4518_v32 }
  0x77   :  { %1121 = vmatpush2.bf16.msra.mxu0 %v4516_v34  ;;  %v48_v34 = vand.u32 7, %v44_v18 }
  0x78   :  { %1122 = vmatprep.subr.bf16.mxu0 %v4524_v36 }
  0x79   :  { %vm5001_vm2 = vcmp.lt.s32.totalorder %v48_v34, 2 }
  0x7b   :  { %1123 = vmatpush2.bf16.msra.mxu0 %v4522_v38 }
  0x7c   :  { %1124 = vmatprep.subr.bf16.mxu0 %v4530_v40  ;;  %v4995_v40 = vsel %vm4984_vm0, 1.0, %v4563_v39 }
  0x7f   :  { %1125 = vmatpush2.bf16.msra.mxu0 %v4528_v42 }
  0x83   :  { %v116_v43 = vpop.permute.xlu1 %115 }
  0x84   :  { %v70_v46 = vpop.permute.xlu0 %69  ;;  %v148_v7 = vmul.f32 %v143_v0, %v116_v43  ;;  %v149_v15 = vmul.f32 %v147_v3, %v116_v43 }
  0x85   :  { %v106_v8 = vmul.f32 %v101_v1, %v70_v46  ;;  %v107_v16 = vmul.f32 %v105_v4, %v70_v46 }
  0x87   :  { %v120_v45 = vpop.permute.xlu1 %119  ;;  %v156_v21 = vadd.f32 %v148_v7, %v106_v8  ;;  %v157_v30 = vadd.f32 %v149_v15, %v107_v16 }
  0x88   :  { %v75_v52 = vpop.permute.xlu0 %74  ;;  %v150_v12 = vmul.f32 %v143_v0, %v120_v45  ;;  %v151_v19 = vmul.f32 %v147_v3, %v120_v45 }
  0x89   :  { %v108_v13 = vmul.f32 %v101_v1, %v75_v52  ;;  %v109_v20 = vmul.f32 %v105_v4, %v75_v52  ;;  %v4999_v52 = vsel %vm4988_vm1, 1.0, %v4563_v39 }
  0x8b   :  { %v124_v49 = vpop.permute.xlu1 %123  ;;  %v158_v27 = vadd.f32 %v150_v12, %v108_v13  ;;  %v159_v38 = vadd.f32 %v151_v19, %v109_v20 }
  0x8c   :  { %v80_v63 = vpop.permute.xlu0 %79  ;;  %v152_v25 = vmul.f32 %v143_v0, %v124_v49  ;;  %v153_v36 = vmul.f32 %v147_v3, %v124_v49 }
  0x8d   :  { %v110_v28 = vmul.f32 %v101_v1, %v80_v63  ;;  %v111_v42 = vmul.f32 %v105_v4, %v80_v63 }
  0x8f   :  { %v160_v46 = vadd.f32 %v152_v25, %v110_v28  ;;  %v161_v5 = vadd.f32 %v153_v36, %v111_v42  ;;  %v5030_v28 = vsel %vm53_vm3, 1.0, %v4563_v39 }
  0x90   :  { %v170_v61 = vpop.permute.xlu1 %169 }
  0x91   :  { %v166_v14 = vpop.permute.xlu0 %165  ;;  %v200_v26 = vmul.f32 %v193_v6, %v170_v61  ;;  %v201_v37 = vmul.f32 %v197_v17, %v170_v61 }
  0x92   :  { %v198_v22 = vmul.f32 %v193_v6, %v166_v14  ;;  %v199_v32 = vmul.f32 %v197_v17, %v166_v14 }
  0x93   :  { %v208_v56 = vadd.f32 %v200_v26, %v158_v27  ;;  %v209_v2 = vadd.f32 %v201_v37, %v159_v38 }
  0x94   :  { %v206_v43 = vadd.f32 %v198_v22, %v156_v21  ;;  %v207_v57 = vadd.f32 %v199_v32, %v157_v30 }
  0x95   :  { %v85_v9 = vpop.permute.xlu1 %84 }
  0x96   :  { %v128_v29 = vpop.permute.xlu0 %127  ;;  %v112_v41 = vmul.f32 %v101_v1, %v85_v9  ;;  %v113_v63 = vmul.f32 %v105_v4, %v85_v9  ;;  %v5013_v4 = vsel %vm5001_vm2, 1.0, %v4563_v39 }
  0x97   :  { %v154_v44 = vmul.f32 %v143_v0, %v128_v29  ;;  %v155_v1 = vmul.f32 %v147_v3, %v128_v29 }
  0x99   :  { %v162_v8 = vadd.f32 %v154_v44, %v112_v41  ;;  %v163_v9 = vadd.f32 %v155_v1, %v113_v63 }
  0x9a   :  { %v174_v31 = vpop.permute.xlu1 %173 }
  0x9b   :  { %v202_v51 = vmul.f32 %v193_v6, %v174_v31  ;;  %v203_v7 = vmul.f32 %v197_v17, %v174_v31 }
  0x9d   :  { %v210_v15 = vadd.f32 %v202_v51, %v160_v46  ;;  %v211_v22 = vadd.f32 %v203_v7, %v161_v5 }
  0x9e   :  { %v178_v58 = vpop.permute.xlu1 %177 }
  0x9f   :  { %v204_v12 = vmul.f32 %v193_v6, %v178_v58  ;;  %v205_v18 = vmul.f32 %v197_v17, %v178_v58 }
  0xa1   :  { %v212_v25 = vadd.f32 %v204_v12, %v162_v8 }
 0x102   :  { %v464_v33 = vpop.f32.mrf.mxu0 }
 0x103   :  { %v483_v49 = vadd.f32 %v464_v33, %v206_v43  ;;  %v213_v33 = vadd.f32 %v205_v18, %v163_v9 }
 0x104   :  { %v466_v45 = vpop.f32.mrf.mxu0 }
 0x105   :  { %v484_v10 = vadd.f32 %v466_v45, %v207_v57  ;;  %v5009_v16 = vmul.f32 %v4995_v40, %v483_v49 }
 0x106   :  { %v468_v59 = vpop.f32.mrf.mxu0 }
 0x107   :  { %v485_v0 = vadd.f32 %v468_v59, %v208_v56  ;;  %v5019_v20 = vmul.f32 %v4995_v40, %v484_v10  ;;  %v521_v26 = vmul.f32 %v5009_v16, %v5009_v16 }
 0x108   :  { %v470_v11 = vpop.f32.mrf.mxu0 }
 0x109   :  { %v5006_v13 = vmul.f32 %v4999_v52, %v485_v0  ;;  %v486_v14 = vadd.f32 %v470_v11, %v209_v2  ;;  %v522_v34 = vmul.f32 %v5019_v20, %v5019_v20 }
 0x10a   :  { %v474_v3 = vpop.f32.mrf.mxu0 }
 0x10b   :  { %v5016_v19 = vmul.f32 %v4999_v52, %v486_v14  ;;  %v487_v6 = vadd.f32 %v474_v3, %v210_v15  ;;  %v523_v21 = vmul.f32 %v5006_v13, %v5006_v13  ;;  %v501_v30 = vadd.f32 %v5006_v13, %v5009_v16 }
 0x10c   :  { %v476_v23 = vpop.f32.mrf.mxu0 }
 0x10d   :  { %v5024_v24 = vmul.f32 %v5013_v4, %v487_v6  ;;  %v524_v17 = vmul.f32 %v5016_v19, %v5016_v19  ;;  %v488_v27 = vadd.f32 %v476_v23, %v211_v22  ;;  %v529_v35 = vadd.f32 %v523_v21, %v521_v26 }
 0x10e   :  { %v478_v29 = vpop.f32.mrf.mxu0  ;;  %v510_v38 = vadd.f32 %v5016_v19, %v5019_v20 }
 0x10f   :  { %v525_v31 = vmul.f32 %v5024_v24, %v5024_v24  ;;  %v489_v32 = vadd.f32 %v478_v29, %v212_v25  ;;  %v5039_v36 = vmul.f32 %v5013_v4, %v488_v27  ;;  %v502_v39 = vadd.f32 %v501_v30, %v5024_v24 }
 0x110   :  { %v480_v37 = vpop.f32.mrf.mxu0  ;;  %v538_v43 = vadd.f32 %v524_v17, %v522_v34 }
 0x111   :  { %v5045_v41 = vmul.f32 %v5030_v28, %v489_v32  ;;  %v490_v42 = vadd.f32 %v480_v37, %v213_v33  ;;  %v530_v44 = vadd.f32 %v529_v35, %v525_v31  ;;  %v526_v45 = vmul.f32 %v5039_v36, %v5039_v36 }
 0x112   :  { %v511_v46 = vadd.f32 %v510_v38, %v5039_v36 }
 0x113   :  { %v503_v51 = vadd.f32 %v502_v39, %v5045_v41  ;;  %v527_v56 = vmul.f32 %v5045_v41, %v5045_v41  ;;  %v5054_v49 = vmul.f32 %v5030_v28, %v490_v42  ;;  %v539_v57 = vadd.f32 %v538_v43, %v526_v45 }
 0x114   :  { %v4564_v45 = vmov 1966171168  }
 0x115   :  { %v504_v58 = vrot.slane %v503_v51, 4  ;;  %v531_v59 = vadd.f32 %v530_v44, %v527_v56  ;;  %v512_v61 = vadd.f32 %v511_v46, %v5054_v49  ;;  %v528_v62 = vmul.f32 %v5054_v49, %v5054_v49 }
 0x116   :  { %v563_v46 = vunpack.c.l.s4 %v4564_v45 }
 0x117   :  { %v505_v63 = vadd.f32 %v504_v58, %v503_v51  ;;  %v532_v1 = vrot.slane %v531_v59, 4  ;;  %v513_v0 = vrot.slane %v512_v61, 4  ;;  %v540_v2 = vadd.f32 %v539_v57, %v528_v62  ;;  %v499_v62 = vld [vmem:[%s6553_s4] sm:$0x3] }
 0x118   :  { %v564_v51 = vunpack.c.0.s8 %v563_v46 }
 0x119   :  { %v506_v5 = vrot.slane %v505_v63, 2  ;;  %v533_v7 = vadd.f32 %v532_v1, %v531_v59  ;;  %v514_v8 = vadd.f32 %v513_v0, %v512_v61  ;;  %v541_v10 = vrot.slane %v540_v2, 4 }
 0x11a   :  { %v5060_v57 = vsub.s32 %v564_v51, %v4946_v47 }
 0x11b   :  { %v507_v11 = vadd.f32 %v506_v5, %v505_v63  ;;  %v534_v12 = vrot.slane %v533_v7, 2  ;;  %v515_v14 = vrot.slane %v514_v8, 2  ;;  %v542_v15 = vadd.f32 %v541_v10, %v540_v2 }
 0x11d   :  { %v508_v3 = vrot.slane %v507_v11, 1  ;;  %v535_v9 = vadd.f32 %v534_v12, %v533_v7  ;;  %v516_v18 = vadd.f32 %v515_v14, %v514_v8  ;;  %v543_v6 = vrot.slane %v542_v15, 2 }
 0x11f   :  { %v509_v21 = vadd.f32 %v508_v3, %v507_v11  ;;  %v536_v22 = vrot.slane %v535_v9, 1  ;;  %v517_v23 = vrot.slane %v516_v18, 1  ;;  %v544_v25 = vadd.f32 %v543_v6, %v542_v15  ;;  %v500_v11 = vld [vmem:[%s6554_s5] sm:$0x3] }
 0x121   :  { %v519_v26 = vmul.f32 0.125, %v509_v21  ;;  %v537_v17 = vadd.f32 %v536_v22, %v535_v9  ;;  %v518_v27 = vadd.f32 %v517_v23, %v516_v18  ;;  %v545_v29 = vrot.slane %v544_v25, 1 }
 0x123   :  { %v547_v30 = vmul.f32 0.125, %v537_v17  ;;  %v549_v31 = vmul.f32 %v519_v26, %v519_v26  ;;  %v520_v32 = vmul.f32 0.125, %v518_v27  ;;  %v546_v33 = vadd.f32 %v545_v29, %v544_v25 }
 0x125   :  { %v551_v34 = vsub.f32 %v547_v30, %v549_v31  ;;  %v548_v35 = vmul.f32 0.125, %v546_v33  ;;  %v550_v37 = vmul.f32 %v520_v32, %v520_v32 }
 0x127   :  { %v553_v38 = vmax.f32 %v551_v34, 0.0  ;;  %v552_v39 = vsub.f32 %v548_v35, %v550_v37 }
 0x129   :  { %v555_v42 = vadd.f32 1e-05, %v553_v38  ;;  %v554_v43 = vmax.f32 %v552_v39, 0.0 }
 0x12b   :  { %v556_v44 = vadd.f32 1e-05, %v554_v43  ;;  %4532 = vrsqrt.f32 %v555_v42 }
 0x12d   :  { %4534 = vrsqrt.f32 %v556_v44 }
 0x138   :  { %v4533_v56 = vpop.eup %4532 }
 0x13a   :  { %v4535_v58 = vpop.eup %4534 }
 0x13b   :  { %v561_v59 = vcombine.low %v4533_v56, %v4535_v58 }
 0x13d   :  { %v568_v61 = vrot.slane %v561_v59, %v5060_v57  ;;  %v1499_v59 = vld [vmem:[%s6555_s9 + $0x1c0] sm:$0xff] }
 0x13f   :  { %v575_v63 = vrot.slane %v568_v61, %v5060_v57  ;;  %v1503_v61 = vld [vmem:[%s6555_s9 + $0x1e0] sm:$0xff] }
 0x141   :  { %v577_v1 = vmul.f32 %v575_v63, %v499_v62  ;;  %v1627_v62 = vld [vmem:[%s6555_s9 + $0x5c0] sm:$0xff]  ;;  %v4138_v63 = vcombine.high %v1499_v59, %v1503_v61 }
 0x143   :  { %v582_v0 = vrot.slane %v577_v1, %v4952_v50  ;;  %v586_v2 = vrot.slane %v577_v1, %v4949_v48  ;;  %v1631_v1 = vld [vmem:[%s6555_s9 + $0x5e0] sm:$0xff]  ;;  %2979 = vmatprep.subr.bf16.mxu1 %v4138_v63 }
 0x145   :  { %v589_v5 = vmul.f32 %v582_v0, %v519_v26  ;;  %v590_v7 = vmul.f32 %v586_v2, %v520_v32  ;;  %v611_v15 = vmul.f32 %v586_v2, %v5019_v20  ;;  %v613_v3 = vmul.f32 %v586_v2, %v5016_v19 }
 0x146   :  { %v610_v18 = vmul.f32 %v582_v0, %v5009_v16  ;;  %v612_v6 = vmul.f32 %v582_v0, %v5006_v13  ;;  %v617_v22 = vmul.f32 %v586_v2, %v5054_v49  ;;  %v615_v23 = vmul.f32 %v586_v2, %v5039_v36 }
 0x147   :  { %v593_v8 = vcombine.low %v589_v5, %v590_v7  ;;  %v614_v25 = vmul.f32 %v582_v0, %v5024_v24  ;;  %v616_v26 = vmul.f32 %v582_v0, %v5045_v41  ;;  %v4137_v0 = vcombine.low %v1499_v59, %v1503_v61  ;;  %v1491_v7 = vld [vmem:[%s6555_s9 + $0x180] sm:$0xff] }
 0x148   :  { %v4265_v2 = vcombine.low %v1627_v62, %v1631_v1  ;;  %v4266_v5 = vcombine.high %v1627_v62, %v1631_v1  ;;  %v1583_v59 = vld [vmem:[%s6555_s9 + $0x460] sm:$0xff] }
 0x149   :  { %v600_v10 = vrot.slane %v593_v8, %v5060_v57  ;;  %v1495_v8 = vld [vmem:[%s6555_s9 + $0x1a0] sm:$0xff] }
 0x14a   :  { %3032 = vmatprep.subr.bf16.mxu0 %v4266_v5  ;;  %v1443_v1 = vld [vmem:[%s6555_s9] sm:$0xff] }
 0x14b   :  { %v607_v12 = vrot.slane %v600_v10, %v5060_v57  ;;  %v1619_v10 = vld [vmem:[%s6555_s9 + $0x580] sm:$0xff] }
 0x14d   :  { %v609_v14 = vsub.f32 %v500_v11, %v607_v12  ;;  %v4130_v11 = vcombine.high %v1491_v7, %v1495_v8  ;;  %v1623_v12 = vld [vmem:[%s6555_s9 + $0x5a0] sm:$0xff] }
 0x14f   :  { %v626_v9 = vrot.slane %v609_v14, %v4949_v48  ;;  %v622_v21 = vrot.slane %v609_v14, %v4952_v50  ;;  %v4129_v14 = vcombine.low %v1491_v7, %v1495_v8  ;;  %v1575_v7 = vld [vmem:[%s6555_s9 + $0x420] sm:$0xff] }
 0x151   :  { %v630_v17 = vadd.f32 %v626_v9, %v611_v15  ;;  %v632_v20 = vadd.f32 %v626_v9, %v613_v3  ;;  %v629_v27 = vadd.f32 %v622_v21, %v610_v18  ;;  %v631_v19 = vadd.f32 %v622_v21, %v612_v6  ;;  %v1487_v18 = vld [vmem:[%s6555_s9 + $0x160] sm:$0xff] }
 0x152   :  { %v634_v29 = vadd.f32 %v626_v9, %v615_v23  ;;  %v636_v30 = vadd.f32 %v626_v9, %v617_v22  ;;  %v633_v31 = vadd.f32 %v622_v21, %v614_v25  ;;  %v635_v16 = vadd.f32 %v622_v21, %v616_v26  ;;  %v1483_v9 = vld [vmem:[%s6555_s9 + $0x140] sm:$0xff] }
 0x153   :  { %v638_v32 = vmax.f32 %v630_v17, 0.0  ;;  %v640_v13 = vmax.f32 %v632_v20, 0.0  ;;  %v637_v33 = vmax.f32 %v629_v27, 0.0  ;;  %v639_v34 = vmax.f32 %v631_v19, 0.0  ;;  %v1611_v6 = vld [vmem:[%s6555_s9 + $0x540] sm:$0xff] }
 0x154   :  { %v642_v35 = vmax.f32 %v634_v29, 0.0  ;;  %v644_v49 = vmax.f32 %v636_v30, 0.0  ;;  %v641_v37 = vmax.f32 %v633_v31, 0.0  ;;  %v643_v36 = vmax.f32 %v635_v16, 0.0  ;;  %v1615_v22 = vld [vmem:[%s6555_s9 + $0x560] sm:$0xff] }
 0x155   :  { %v646_v24 = vmul.f32 %v4995_v40, %v638_v32  ;;  %v648_v41 = vmul.f32 %v4999_v52, %v640_v13  ;;  %v645_v38 = vmul.f32 %v4995_v40, %v637_v33  ;;  %v647_v39 = vmul.f32 %v4999_v52, %v639_v34  ;;  %v1475_v17 = vld [vmem:[%s6555_s9 + $0x100] sm:$0xff] }
 0x156   :  { %v650_v42 = vmul.f32 %v5013_v4, %v642_v35  ;;  %v652_v43 = vmul.f32 %v5030_v28, %v644_v49  ;;  %v649_v44 = vmul.f32 %v5013_v4, %v641_v37  ;;  %v651_v45 = vmul.f32 %v5030_v28, %v643_v36  ;;  %v1479_v20 = vld [vmem:[%s6555_s9 + $0x120] sm:$0xff] }
 0x157   :  { %v654_v46 = vpack.c.bf16 %v648_v41, %v646_v24  ;;  %v653_v51 = vpack.c.bf16 %v647_v39, %v645_v38  ;;  %v4257_v15 = vcombine.low %v1619_v10, %v1623_v12  ;;  %v4258_v3 = vcombine.high %v1619_v10, %v1623_v12  ;;  %v1603_v27 = vld [vmem:[%s6555_s9 + $0x500] sm:$0xff] }
 0x158   :  { %v655_v56 = vpack.c.bf16 %v651_v45, %v649_v44  ;;  %v656_v58 = vpack.c.bf16 %v652_v43, %v650_v42  ;;  %v4122_v21 = vcombine.high %v1483_v9, %v1487_v18  ;;  %v4121_v23 = vcombine.low %v1483_v9, %v1487_v18  ;;  %v1607_v29 = vld [vmem:[%s6555_s9 + $0x520] sm:$0xff] }
 0x159   :  { %1073 = vmatprep.mubr.bf16.mxu1 %v654_v46  ;;  %1126 = vmatprep.mubr.bf16.mxu0 %v654_v46  ;;  %v4249_v25 = vcombine.low %v1611_v6, %v1615_v22  ;;  %v4250_v26 = vcombine.high %v1611_v6, %v1615_v22  ;;  %v4114_v19 = vcombine.high %v1475_v17, %v1479_v20  ;;  %v1467_v32 = vld [vmem:[%s6555_s9 + $0xc0] sm:$0xff] }
 0x15a   :  { %1074 = vmatmul.mubr.bf16.vlgmr.msra.gmra.mxu1 %v653_v51  ;;  %1127 = vmatmul.mubr.bf16.vlgmr.msra.gmra.mxu0 %v653_v51  ;;  %v4113_v30 = vcombine.low %v1475_v17, %v1479_v20  ;;  %v4241_v31 = vcombine.low %v1603_v27, %v1607_v29  ;;  %v4242_v16 = vcombine.high %v1603_v27, %v1607_v29  ;;  %v1471_v13 = vld [vmem:[%s6555_s9 + $0xe0] sm:$0xff] }
 0x15b   :  { %1083 = vmatprep.mubr.bf16.mxu1 %v656_v58  ;;  %1136 = vmatprep.mubr.bf16.mxu0 %v656_v58  ;;  %v1595_v33 = vld [vmem:[%s6555_s9 + $0x4c0] sm:$0xff]  ;;  %v4106_v34 = vcombine.high %v1467_v32, %v1471_v13  ;;  %v4105_v49 = vcombine.low %v1467_v32, %v1471_v13 }
 0x15c   :  { %2980 = vmatpush1.bf16.msra.mxu1 %v4137_v0  ;;  %3033 = vmatpush1.bf16.msra.mxu0 %v4265_v2  ;;  %v1599_v35 = vld [vmem:[%s6555_s9 + $0x4e0] sm:$0xff] }
 0x15d   :  { %2981 = vmatprep.subr.bf16.mxu1 %v4130_v11  ;;  %3034 = vmatprep.subr.bf16.mxu0 %v4258_v3  ;;  %v4233_v37 = vcombine.low %v1595_v33, %v1599_v35  ;;  %v4234_v36 = vcombine.high %v1595_v33, %v1599_v35  ;;  %v1459_v24 = vld [vmem:[%s6555_s9 + $0x80] sm:$0xff] }
 0x15e   :  { %v1463_v41 = vld [vmem:[%s6555_s9 + $0xa0] sm:$0xff] }
 0x15f   :  { %v1587_v38 = vld [vmem:[%s6555_s9 + $0x480] sm:$0xff]  ;;  %v4098_v39 = vcombine.high %v1459_v24, %v1463_v41  ;;  %v4097_v43 = vcombine.low %v1459_v24, %v1463_v41 }
 0x160   :  { %2982 = vmatpush1.bf16.msra.mxu1 %v4129_v14  ;;  %3035 = vmatpush1.bf16.msra.mxu0 %v4257_v15  ;;  %v1591_v42 = vld [vmem:[%s6555_s9 + $0x4a0] sm:$0xff] }
 0x161   :  { %2983 = vmatprep.subr.bf16.mxu1 %v4122_v21  ;;  %3036 = vmatprep.subr.bf16.mxu0 %v4250_v26  ;;  %v4225_v44 = vcombine.low %v1587_v38, %v1591_v42  ;;  %v4226_v45 = vcombine.high %v1587_v38, %v1591_v42  ;;  %v1451_v46 = vld [vmem:[%s6555_s9 + $0x40] sm:$0xff] }
 0x162   :  { %1084 = vmatmul.mubr.bf16.gmra.mxu1 %v655_v56  ;;  %1137 = vmatmul.mubr.bf16.gmra.mxu0 %v655_v56  ;;  %v1455_v51 = vld [vmem:[%s6555_s9 + $0x60] sm:$0xff] }
 0x163   :  { %v1579_v56 = vld [vmem:[%s6555_s9 + $0x440] sm:$0xff]  ;;  %v4090_v58 = vcombine.high %v1451_v46, %v1455_v51  ;;  %v4089_v61 = vcombine.low %v1451_v46, %v1455_v51 }
 0x164   :  { %2984 = vmatpush1.bf16.msra.mxu1 %v4121_v23  ;;  %3037 = vmatpush1.bf16.msra.mxu0 %v4249_v25  ;;  %v4217_v62 = vcombine.low %v1579_v56, %v1583_v59  ;;  %v4218_v63 = vcombine.high %v1579_v56, %v1583_v59  ;;  %v1447_v0 = vld [vmem:[%s6555_s9 + $0x20] sm:$0xff] }
 0x165   :  { %2985 = vmatprep.subr.bf16.mxu1 %v4114_v19  ;;  %3038 = vmatprep.subr.bf16.mxu0 %v4242_v16  ;;  %v1571_v2 = vld [vmem:[%s6555_s9 + $0x400] sm:$0xff]  ;;  %v4082_v5 = vcombine.high %v1443_v1, %v1447_v0  ;;  %v4081_v8 = vcombine.low %v1443_v1, %v1447_v0 }
 0x166   :  { %v4209_v10 = vcombine.low %v1571_v2, %v1575_v7  ;;  %v4210_v11 = vcombine.high %v1571_v2, %v1575_v7  ;;  %v1563_v12 = vld [vmem:[%s6555_s9 + $0x3c0] sm:$0xff] }
 0x167   :  { %v1567_v14 = vld [vmem:[%s6555_s9 + $0x3e0] sm:$0xff] }
 0x168   :  { %2986 = vmatpush1.bf16.msra.mxu1 %v4113_v30  ;;  %3039 = vmatpush1.bf16.msra.mxu0 %v4241_v31  ;;  %v1691_v15 = vld [vmem:[%s6555_s9 + $0x7c0] sm:$0xff]  ;;  %v4201_v9 = vcombine.low %v1563_v12, %v1567_v14  ;;  %v4202_v18 = vcombine.high %v1563_v12, %v1567_v14 }
 0x169   :  { %2987 = vmatprep.subr.bf16.mxu1 %v4106_v34  ;;  %3040 = vmatprep.subr.bf16.mxu0 %v4234_v36  ;;  %v1695_v3 = vld [vmem:[%s6555_s9 + $0x7e0] sm:$0xff] }
 0x16a   :  { %v4329_v6 = vcombine.low %v1691_v15, %v1695_v3  ;;  %v4330_v21 = vcombine.high %v1691_v15, %v1695_v3  ;;  %v1555_v22 = vld [vmem:[%s6555_s9 + $0x380] sm:$0xff] }
 0x16b   :  { %v1559_v23 = vld [vmem:[%s6555_s9 + $0x3a0] sm:$0xff] }
 0x16c   :  { %2988 = vmatpush1.bf16.msra.mxu1 %v4105_v49  ;;  %3041 = vmatpush1.bf16.msra.mxu0 %v4233_v37  ;;  %v1683_v25 = vld [vmem:[%s6555_s9 + $0x780] sm:$0xff]  ;;  %v4194_v26 = vcombine.high %v1555_v22, %v1559_v23  ;;  %v4193_v20 = vcombine.low %v1555_v22, %v1559_v23 }
 0x16d   :  { %2989 = vmatprep.subr.bf16.mxu1 %v4098_v39  ;;  %3042 = vmatprep.subr.bf16.mxu0 %v4226_v45  ;;  %v1687_v17 = vld [vmem:[%s6555_s9 + $0x7a0] sm:$0xff] }
 0x16e   :  { %v4321_v27 = vcombine.low %v1683_v25, %v1687_v17  ;;  %v4322_v19 = vcombine.high %v1683_v25, %v1687_v17  ;;  %v1547_v29 = vld [vmem:[%s6555_s9 + $0x340] sm:$0xff]  ;;  %v5287_v17 = vld [vmem:[%s6555_s9 + $0x1c8] sm:$0xff] }
 0x16f   :  { %v1551_v30 = vld [vmem:[%s6555_s9 + $0x360] sm:$0xff] }
 0x170   :  { %2990 = vmatpush1.bf16.msra.mxu1 %v4097_v43  ;;  %3043 = vmatpush1.bf16.msra.mxu0 %v4225_v44  ;;  %v1675_v31 = vld [vmem:[%s6555_s9 + $0x740] sm:$0xff]  ;;  %v4186_v16 = vcombine.high %v1547_v29, %v1551_v30  ;;  %v4185_v13 = vcombine.low %v1547_v29, %v1551_v30  ;;  %v5304_v29 = vld [vmem:[%s6555_s9 + $0x5e8] sm:$0xff] }
 0x171   :  { %2991 = vmatprep.subr.bf16.mxu1 %v4090_v58  ;;  %3044 = vmatprep.subr.bf16.mxu0 %v4218_v63  ;;  %v1679_v32 = vld [vmem:[%s6555_s9 + $0x760] sm:$0xff] }
 0x172   :  { %v4313_v33 = vcombine.low %v1675_v31, %v1679_v32  ;;  %v4314_v34 = vcombine.high %v1675_v31, %v1679_v32  ;;  %v1539_v35 = vld [vmem:[%s6555_s9 + $0x300] sm:$0xff] }
 0x173   :  { %v1543_v49 = vld [vmem:[%s6555_s9 + $0x320] sm:$0xff] }
 0x174   :  { %2992 = vmatpush1.bf16.msra.mxu1 %v4089_v61  ;;  %3045 = vmatpush1.bf16.msra.mxu0 %v4217_v62  ;;  %v1667_v37 = vld [vmem:[%s6555_s9 + $0x700] sm:$0xff]  ;;  %v4178_v36 = vcombine.high %v1539_v35, %v1543_v49  ;;  %v4177_v41 = vcombine.low %v1539_v35, %v1543_v49 }
 0x175   :  { %2993 = vmatprep.subr.bf16.mxu1 %v4082_v5  ;;  %3046 = vmatprep.subr.bf16.mxu0 %v4210_v11  ;;  %v1671_v24 = vld [vmem:[%s6555_s9 + $0x720] sm:$0xff] }
 0x176   :  { %v4305_v38 = vcombine.low %v1667_v37, %v1671_v24  ;;  %v4306_v39 = vcombine.high %v1667_v37, %v1671_v24  ;;  %v1531_v42 = vld [vmem:[%s6555_s9 + $0x2c0] sm:$0xff] }
 0x177   :  { %v1535_v43 = vld [vmem:[%s6555_s9 + $0x2e0] sm:$0xff] }
 0x178   :  { %2994 = vmatpush1.bf16.msra.mxu1 %v4081_v8  ;;  %3047 = vmatpush1.bf16.msra.mxu0 %v4209_v10  ;;  %v1659_v44 = vld [vmem:[%s6555_s9 + $0x6c0] sm:$0xff]  ;;  %v4170_v45 = vcombine.high %v1531_v42, %v1535_v43  ;;  %v4169_v51 = vcombine.low %v1531_v42, %v1535_v43 }
 0x179   :  { %2995 = vmatprep.subr.bf16.mxu1 %v4202_v18  ;;  %3048 = vmatprep.subr.bf16.mxu0 %v4330_v21  ;;  %v1663_v46 = vld [vmem:[%s6555_s9 + $0x6e0] sm:$0xff] }
 0x17a   :  { %v4297_v56 = vcombine.low %v1659_v44, %v1663_v46  ;;  %v4298_v58 = vcombine.high %v1659_v44, %v1663_v46  ;;  %v1523_v59 = vld [vmem:[%s6555_s9 + $0x280] sm:$0xff] }
 0x17b   :  { %v1527_v61 = vld [vmem:[%s6555_s9 + $0x2a0] sm:$0xff] }
 0x17c   :  { %2996 = vmatpush2.bf16.msra.mxu1 %v4201_v9  ;;  %3049 = vmatpush2.bf16.msra.mxu0 %v4329_v6  ;;  %v1651_v62 = vld [vmem:[%s6555_s9 + $0x680] sm:$0xff]  ;;  %v4162_v63 = vcombine.high %v1523_v59, %v1527_v61  ;;  %v4161_v0 = vcombine.low %v1523_v59, %v1527_v61 }
 0x17d   :  { %2997 = vmatprep.subr.bf16.mxu1 %v4194_v26  ;;  %3050 = vmatprep.subr.bf16.mxu0 %v4322_v19  ;;  %v1655_v1 = vld [vmem:[%s6555_s9 + $0x6a0] sm:$0xff] }
 0x17e   :  { %v4289_v2 = vcombine.low %v1651_v62, %v1655_v1  ;;  %v4290_v5 = vcombine.high %v1651_v62, %v1655_v1  ;;  %v1515_v7 = vld [vmem:[%s6555_s9 + $0x240] sm:$0xff] }
 0x17f   :  { %v1519_v8 = vld [vmem:[%s6555_s9 + $0x260] sm:$0xff] }
 0x180   :  { %2998 = vmatpush2.bf16.msra.mxu1 %v4193_v20  ;;  %3051 = vmatpush2.bf16.msra.mxu0 %v4321_v27  ;;  %v1643_v10 = vld [vmem:[%s6555_s9 + $0x640] sm:$0xff]  ;;  %v4154_v11 = vcombine.high %v1515_v7, %v1519_v8  ;;  %v4153_v14 = vcombine.low %v1515_v7, %v1519_v8  ;;  %v5292_v20 = vld [vmem:[%s6555_s9 + $0x1e8] sm:$0xff] }
 0x181   :  { %2999 = vmatprep.subr.bf16.mxu1 %v4186_v16  ;;  %3052 = vmatprep.subr.bf16.mxu0 %v4314_v34  ;;  %v1647_v12 = vld [vmem:[%s6555_s9 + $0x660] sm:$0xff]  ;;  %v5297_v27 = vld [vmem:[%s6555_s9 + $0x5c8] sm:$0xff]  ;;  %v4140_v19 = vcombine.high %v5287_v17, %v5292_v20 }
 0x182   :  { %v4281_v15 = vcombine.low %v1643_v10, %v1647_v12  ;;  %v4282_v3 = vcombine.high %v1643_v10, %v1647_v12  ;;  %v1507_v9 = vld [vmem:[%s6555_s9 + $0x200] sm:$0xff]  ;;  %v4268_v16 = vcombine.high %v5297_v27, %v5304_v29 }
 0x183   :  { %v1511_v18 = vld [vmem:[%s6555_s9 + $0x220] sm:$0xff] }
 0x184   :  { %3000 = vmatpush2.bf16.msra.mxu1 %v4185_v13  ;;  %3053 = vmatpush2.bf16.msra.mxu0 %v4313_v33  ;;  %v1635_v6 = vld [vmem:[%s6555_s9 + $0x600] sm:$0xff]  ;;  %v4146_v21 = vcombine.high %v1507_v9, %v1511_v18  ;;  %v4145_v23 = vcombine.low %v1507_v9, %v1511_v18 }
 0x185   :  { %3001 = vmatprep.subr.bf16.mxu1 %v4178_v36  ;;  %3054 = vmatprep.subr.bf16.mxu0 %v4306_v39  ;;  %v1639_v22 = vld [vmem:[%s6555_s9 + $0x620] sm:$0xff] }
 0x186   :  { %v4273_v25 = vcombine.low %v1635_v6, %v1639_v22  ;;  %v4274_v26 = vcombine.high %v1635_v6, %v1639_v22 }
 0x188   :  { %3002 = vmatpush2.bf16.msra.mxu1 %v4177_v41  ;;  %3055 = vmatpush2.bf16.msra.mxu0 %v4305_v38 }
 0x189   :  { %3003 = vmatprep.subr.bf16.mxu1 %v4170_v45  ;;  %3056 = vmatprep.subr.bf16.mxu0 %v4298_v58 }
 0x18c   :  { %3004 = vmatpush2.bf16.msra.mxu1 %v4169_v51  ;;  %3057 = vmatpush2.bf16.msra.mxu0 %v4297_v56 }
 0x18d   :  { %3005 = vmatprep.subr.bf16.mxu1 %v4162_v63  ;;  %3058 = vmatprep.subr.bf16.mxu0 %v4290_v5 }
 0x190   :  { %3006 = vmatpush2.bf16.msra.mxu1 %v4161_v0  ;;  %3059 = vmatpush2.bf16.msra.mxu0 %v4289_v2 }
 0x191   :  { %3007 = vmatprep.subr.bf16.mxu1 %v4154_v11  ;;  %3060 = vmatprep.subr.bf16.mxu0 %v4282_v3 }
 0x194   :  { %3008 = vmatpush2.bf16.msra.mxu1 %v4153_v14  ;;  %3061 = vmatpush2.bf16.msra.mxu0 %v4281_v15 }
 0x195   :  { %3009 = vmatprep.subr.bf16.mxu1 %v4146_v21  ;;  %3062 = vmatprep.subr.bf16.mxu0 %v4274_v26 }
 0x198   :  { %3010 = vmatpush2.bf16.msra.mxu1 %v4145_v23  ;;  %3063 = vmatpush2.bf16.msra.mxu0 %v4273_v25 }
 0x199   :  { %3085 = vmatprep.subr.bf16.mxu1 %v4140_v19  ;;  %3138 = vmatprep.subr.bf16.mxu0 %v4268_v16 }
 0x21a   :  { %v5312_v32 = vpop.f32.mrf.mxu1  ;;  %v5314_v13 = vpop.f32.mrf.mxu0 }
 0x21b   :  { %v1189_v38 = vmul.f32 %v5312_v32, %v5312_v32  ;;  %v1191_v42 = vmul.f32 %v5314_v13, %v5314_v13 }
 0x21c   :  { %v5316_v33 = vpop.f32.mrf.mxu1  ;;  %v5318_v34 = vpop.f32.mrf.mxu0 }
 0x21d   :  { %v1190_v43 = vmul.f32 %v5316_v33, %v5316_v33  ;;  %v1192_v44 = vmul.f32 %v5318_v34, %v5318_v34 }
 0x21e   :  { %v5320_v35 = vpop.f32.mrf.mxu1  ;;  %v5322_v49 = vpop.f32.mrf.mxu0 }
 0x21f   :  { %v1193_v37 = vmul.f32 %v5320_v35, %v5320_v35  ;;  %v1195_v36 = vmul.f32 %v5322_v49, %v5322_v49  ;;  %v1149_v56 = vadd.f32 %v5320_v35, %v5312_v32  ;;  %v1167_v59 = vadd.f32 %v5322_v49, %v5314_v13 }
 0x220   :  { %v5328_v24 = vpop.f32.mrf.mxu1  ;;  %v5330_v41 = vpop.f32.mrf.mxu0 }
 0x221   :  { %v1194_v39 = vmul.f32 %v5328_v24, %v5328_v24  ;;  %v1196_v45 = vmul.f32 %v5330_v41, %v5330_v41  ;;  %v1205_v58 = vadd.f32 %v1193_v37, %v1189_v38  ;;  %v1223_v62 = vadd.f32 %v1195_v36, %v1191_v42 }
 0x222   :  { %v5344_v46 = vpop.f32.mrf.mxu1  ;;  %v5346_v51 = vpop.f32.mrf.mxu0  ;;  %v1158_v63 = vadd.f32 %v5328_v24, %v5316_v33  ;;  %v1176_v1 = vadd.f32 %v5330_v41, %v5318_v34 }
 0x223   :  { %v1197_v61 = vmul.f32 %v5344_v46, %v5344_v46  ;;  %v1199_v0 = vmul.f32 %v5346_v51, %v5346_v51  ;;  %v1214_v7 = vadd.f32 %v1194_v39, %v1190_v43  ;;  %v1150_v8 = vadd.f32 %v1149_v56, %v5344_v46 }
 0x224   :  { %v5360_v2 = vpop.f32.mrf.mxu1  ;;  %v5362_v5 = vpop.f32.mrf.mxu0  ;;  %v1168_v10 = vadd.f32 %v1167_v59, %v5346_v51  ;;  %v1232_v12 = vadd.f32 %v1196_v45, %v1192_v44 }
 0x225   :  { %v1198_v11 = vmul.f32 %v5360_v2, %v5360_v2  ;;  %v1206_v14 = vadd.f32 %v1205_v58, %v1197_v61  ;;  %v1159_v15 = vadd.f32 %v1158_v63, %v5360_v2  ;;  %v1200_v3 = vmul.f32 %v5362_v5, %v5362_v5 }
 0x226   :  { %v5371_v9 = vpop.f32.mrf.mxu1  ;;  %v5373_v18 = vpop.f32.mrf.mxu0  ;;  %v1177_v6 = vadd.f32 %v1176_v1, %v5362_v5  ;;  %v1224_v25 = vadd.f32 %v1223_v62, %v1199_v0 }
 0x227   :  { %v1151_v21 = vadd.f32 %v1150_v8, %v5371_v9  ;;  %v1201_v22 = vmul.f32 %v5371_v9, %v5371_v9  ;;  %v1169_v23 = vadd.f32 %v1168_v10, %v5373_v18  ;;  %v1215_v26 = vadd.f32 %v1214_v7, %v1198_v11 }
 0x228   :  { %v1233_v19 = vadd.f32 %v1232_v12, %v1200_v3  ;;  %v1203_v16 = vmul.f32 %v5373_v18, %v5373_v18  ;;  %v5382_v37 = vpop.f32.mrf.mxu1  ;;  %v5384_v36 = vpop.f32.mrf.mxu0 }
 0x229   :  { %v1152_v38 = vrot.slane %v1151_v21, 4  ;;  %v1207_v39 = vadd.f32 %v1206_v14, %v1201_v22  ;;  %v1170_v42 = vrot.slane %v1169_v23, 4  ;;  %v1160_v43 = vadd.f32 %v1159_v15, %v5382_v37 }
 0x22a   :  { %v1225_v44 = vadd.f32 %v1224_v25, %v1203_v16  ;;  %v1202_v45 = vmul.f32 %v5382_v37, %v5382_v37  ;;  %v1178_v56 = vadd.f32 %v1177_v6, %v5384_v36  ;;  %v1204_v58 = vmul.f32 %v5384_v36, %v5384_v36 }
 0x22b   :  { %v1153_v59 = vadd.f32 %v1152_v38, %v1151_v21  ;;  %v1208_v61 = vrot.slane %v1207_v39, 4  ;;  %v1171_v62 = vadd.f32 %v1170_v42, %v1169_v23  ;;  %v1161_v63 = vrot.slane %v1160_v43, 4 }
 0x22c   :  { %v1226_v1 = vrot.slane %v1225_v44, 4  ;;  %v1216_v0 = vadd.f32 %v1215_v26, %v1202_v45  ;;  %v1179_v7 = vrot.slane %v1178_v56, 4  ;;  %v1234_v8 = vadd.f32 %v1233_v19, %v1204_v58 }
 0x22d   :  { %v1154_v10 = vrot.slane %v1153_v59, 2  ;;  %v1209_v11 = vadd.f32 %v1208_v61, %v1207_v39  ;;  %v1172_v12 = vrot.slane %v1171_v62, 2  ;;  %v1162_v14 = vadd.f32 %v1161_v63, %v1160_v43 }
 0x22e   :  { %v1227_v15 = vadd.f32 %v1226_v1, %v1225_v44  ;;  %v1217_v3 = vrot.slane %v1216_v0, 4  ;;  %v1180_v22 = vadd.f32 %v1179_v7, %v1178_v56  ;;  %v1235_v25 = vrot.slane %v1234_v8, 4 }
 0x22f   :  { %v1155_v6 = vadd.f32 %v1154_v10, %v1153_v59  ;;  %v1210_v16 = vrot.slane %v1209_v11, 2  ;;  %v1173_v31 = vadd.f32 %v1172_v12, %v1171_v62  ;;  %v1163_v30 = vrot.slane %v1162_v14, 2 }
 0x230   :  { %v1228_v21 = vrot.slane %v1227_v15, 2  ;;  %v1218_v38 = vadd.f32 %v1217_v3, %v1216_v0  ;;  %v1181_v23 = vrot.slane %v1180_v22, 2  ;;  %v1236_v42 = vadd.f32 %v1235_v25, %v1234_v8 }
 0x231   :  { %v1156_v60 = vrot.slane %v1155_v6, 1  ;;  %v1211_v26 = vadd.f32 %v1210_v16, %v1209_v11  ;;  %v1174_v45 = vrot.slane %v1173_v31, 1  ;;  %v1164_v19 = vadd.f32 %v1163_v30, %v1162_v14 }
 0x232   :  { %v1229_v58 = vadd.f32 %v1228_v21, %v1227_v15  ;;  %v1219_v39 = vrot.slane %v1218_v38, 2  ;;  %v1182_v61 = vadd.f32 %v1181_v23, %v1180_v22  ;;  %v1237_v43 = vrot.slane %v1236_v42, 2 }
 0x233   :  { %v1157_v44 = vadd.f32 %v1156_v60, %v1155_v6  ;;  %v1212_v63 = vrot.slane %v1211_v26, 1  ;;  %v1175_v56 = vadd.f32 %v1174_v45, %v1173_v31  ;;  %v1165_v1 = vrot.slane %v1164_v19, 1 }
 0x234   :  { %v1230_v59 = vrot.slane %v1229_v58, 1  ;;  %v1220_v7 = vadd.f32 %v1219_v39, %v1218_v38  ;;  %v1183_v62 = vrot.slane %v1182_v61, 1  ;;  %v1238_v10 = vadd.f32 %v1237_v43, %v1236_v42 }
 0x235   :  { %v1185_v12 = vmul.f32 0.125, %v1157_v44  ;;  %v1213_v0 = vadd.f32 %v1212_v63, %v1211_v26  ;;  %v1187_v3 = vmul.f32 0.125, %v1175_v56  ;;  %v1166_v8 = vadd.f32 %v1165_v1, %v1164_v19 }
 0x236   :  { %v1231_v25 = vadd.f32 %v1230_v59, %v1229_v58  ;;  %v1221_v11 = vrot.slane %v1220_v7, 1  ;;  %v1184_v16 = vadd.f32 %v1183_v62, %v1182_v61  ;;  %v1239_v30 = vrot.slane %v1238_v10, 1 }
 0x237   :  { %v1241_v14 = vmul.f32 0.125, %v1213_v0  ;;  %v1245_v15 = vmul.f32 %v1185_v12, %v1185_v12  ;;  %v1247_v22 = vmul.f32 %v1187_v3, %v1187_v3  ;;  %v1186_v21 = vmul.f32 0.125, %v1166_v8 }
 0x238   :  { %v1243_v60 = vmul.f32 0.125, %v1231_v25  ;;  %v1222_v6 = vadd.f32 %v1221_v11, %v1220_v7  ;;  %v1188_v31 = vmul.f32 0.125, %v1184_v16  ;;  %v1240_v23 = vadd.f32 %v1239_v30, %v1238_v10 }
 0x239   :  { %v1249_v45 = vsub.f32 %v1241_v14, %v1245_v15  ;;  %v1246_v38 = vmul.f32 %v1186_v21, %v1186_v21 }
 0x23a   :  { %v1251_v39 = vsub.f32 %v1243_v60, %v1247_v22  ;;  %v1242_v42 = vmul.f32 0.125, %v1222_v6  ;;  %v1244_v43 = vmul.f32 0.125, %v1240_v23  ;;  %v1248_v26 = vmul.f32 %v1188_v31, %v1188_v31  ;;  %v1147_v22 = vld [vmem:[%s6556_s7] sm:$0xf] }
 0x23b   :  { %v1253_v44 = vmax.f32 %v1249_v45, 0.0  ;;  %v5399_v6 = vsub.s32 3, %v4946_v47 }
 0x23c   :  { %v1255_v19 = vmax.f32 %v1251_v39, 0.0  ;;  %v1250_v58 = vsub.f32 %v1242_v42, %v1246_v38  ;;  %v1252_v63 = vsub.f32 %v1244_v43, %v1248_v26 }
 0x23d   :  { %v1257_v61 = vadd.f32 1e-05, %v1253_v44 }
 0x23e   :  { %v1259_v56 = vadd.f32 1e-05, %v1255_v19  ;;  %v1254_v1 = vmax.f32 %v1250_v58, 0.0  ;;  %v1256_v59 = vmax.f32 %v1252_v63, 0.0 }
 0x23f   :  { %4536 = vrsqrt.f32 %v1257_v61 }
 0x240   :  { %v1258_v62 = vadd.f32 1e-05, %v1254_v1  ;;  %v1260_v0 = vadd.f32 1e-05, %v1256_v59  ;;  %4538 = vrsqrt.f32 %v1259_v56  ;;  %v5410_v1 = vld [vmem:[%s6555_s9 + $0x188] sm:$0xff] }
 0x241   :  { %v5415_v59 = vld [vmem:[%s6555_s9 + $0x1a8] sm:$0xff] }
 0x242   :  { %4540 = vrsqrt.f32 %v1258_v62  ;;  %v4131_v62 = vcombine.low %v5410_v1, %v5415_v59 }
 0x243   :  { %4542 = vrsqrt.f32 %v1260_v0 }
 0x24c   :  { %v4537_v7 = vpop.eup %4536 }
 0x24d   :  { %v4539_v10 = vpop.eup %4538 }
 0x24f   :  { %v4541_v8 = vpop.eup %4540 }
 0x250   :  { %v4543_v25 = vpop.eup %4542  ;;  %v1269_v11 = vcombine.low %v4537_v7, %v4541_v8 }
 0x251   :  { %v1270_v16 = vcombine.low %v4539_v10, %v4543_v25  ;;  %v4132_v10 = vcombine.high %v5410_v1, %v5415_v59  ;;  %v1468_v1 = vld [vmem:[%s6555_s9 + $0xc8] sm:$0xff] }
 0x252   :  { %v1277_v30 = vrot.slane %v1269_v11, %v5060_v57  ;;  %v1472_v59 = vld [vmem:[%s6555_s9 + $0xe8] sm:$0xff] }
 0x253   :  { %v1284_v14 = vrot.slane %v1270_v16, %v5060_v57 }
 0x255   :  { %v1285_v15 = vcombine.low %v1277_v30, %v1284_v14 }
 0x257   :  { %v1292_v60 = vrot.slane %v1285_v15, %v5060_v57 }
 0x259   :  { %v1294_v23 = vmul.f32 %v1292_v60, %v1147_v22 }
 0x25b   :  { %v1299_v45 = vrot.slane %v1294_v23, %v4952_v50  ;;  %v1303_v38 = vrot.slane %v1294_v23, %v4949_v48  ;;  %v1307_v39 = vrot.slane %v1294_v23, %v4964_v55  ;;  %v1311_v42 = vrot.slane %v1294_v23, %v5399_v6 }
 0x25d   :  { %v1316_v43 = vmul.f32 %v1299_v45, %v1185_v12  ;;  %v1317_v26 = vmul.f32 %v1303_v38, %v1186_v21  ;;  %v1318_v44 = vmul.f32 %v1307_v39, %v1187_v3  ;;  %v1319_v19 = vmul.f32 %v1311_v42, %v1188_v31  ;;  %v5420_v12 = vld [vmem:[%s6555_s9 + $0x588] sm:$0xff]  ;;  %v1148_v31 = vld [vmem:[%s6557_s8] sm:$0xf] }
 0x25e   :  { %v5425_v3 = vld [vmem:[%s6555_s9 + $0x5a8] sm:$0xff]  ;;  %v1365_v7 = vmul.f32 %v1311_v42, %v5384_v36  ;;  %v1351_v25 = vmul.f32 %v1303_v38, %v5316_v33  ;;  %v1355_v11 = vmul.f32 %v1303_v38, %v5328_v24  ;;  %v1353_v16 = vmul.f32 %v1311_v42, %v5318_v34 }
 0x25f   :  { %v1324_v58 = vcombine.low %v1316_v43, %v1317_v26  ;;  %v1325_v63 = vcombine.low %v1318_v44, %v1319_v19  ;;  %v4260_v8 = vcombine.high %v5420_v12, %v5425_v3  ;;  %v1357_v30 = vmul.f32 %v1311_v42, %v5330_v41 }
 0x260   :  { %v1350_v15 = vmul.f32 %v1299_v45, %v5312_v32  ;;  %v1354_v22 = vmul.f32 %v1299_v45, %v5320_v35  ;;  %v1352_v36 = vmul.f32 %v1307_v39, %v5314_v13  ;;  %v1356_v60 = vmul.f32 %v1307_v39, %v5322_v49 }
 0x261   :  { %v1332_v61 = vrot.slane %v1324_v58, %v5060_v57  ;;  %v1339_v56 = vrot.slane %v1325_v63, %v5060_v57  ;;  %v1359_v23 = vmul.f32 %v1303_v38, %v5360_v2  ;;  %v1363_v43 = vmul.f32 %v1303_v38, %v5382_v37 }
 0x262   :  { %v1361_v33 = vmul.f32 %v1311_v42, %v5362_v5  ;;  %v1358_v35 = vmul.f32 %v1299_v45, %v5344_v46  ;;  %v1362_v13 = vmul.f32 %v1299_v45, %v5371_v9  ;;  %v1360_v49 = vmul.f32 %v1307_v39, %v5346_v51 }
 0x263   :  { %v1340_v21 = vcombine.low %v1332_v61, %v1339_v56  ;;  %v1364_v2 = vmul.f32 %v1307_v39, %v5373_v18 }
 0x265   :  { %v1347_v0 = vrot.slane %v1340_v21, %v5060_v57 }
 0x267   :  { %v1349_v14 = vsub.f32 %v1148_v31, %v1347_v0 }
 0x269   :  { %v1382_v24 = vrot.slane %v1349_v14, %v5399_v6  ;;  %v1374_v34 = vrot.slane %v1349_v14, %v4949_v48  ;;  %v1370_v41 = vrot.slane %v1349_v14, %v4952_v50  ;;  %v1378_v32 = vrot.slane %v1349_v14, %v4964_v55 }
 0x26b   :  { %v1402_v26 = vadd.f32 %v1382_v24, %v1365_v7  ;;  %v1388_v37 = vadd.f32 %v1374_v34, %v1351_v25  ;;  %v1392_v38 = vadd.f32 %v1374_v34, %v1355_v11  ;;  %v1390_v5 = vadd.f32 %v1382_v24, %v1353_v16 }
 0x26c   :  { %v1394_v42 = vadd.f32 %v1382_v24, %v1357_v30  ;;  %v1387_v44 = vadd.f32 %v1370_v41, %v1350_v15  ;;  %v1391_v19 = vadd.f32 %v1370_v41, %v1354_v22  ;;  %v1389_v58 = vadd.f32 %v1378_v32, %v1352_v36 }
 0x26d   :  { %v1418_v63 = vmax.f32 %v1402_v26, 0.0  ;;  %v1404_v61 = vmax.f32 %v1388_v37, 0.0  ;;  %v1408_v56 = vmax.f32 %v1392_v38, 0.0  ;;  %v1406_v21 = vmax.f32 %v1390_v5, 0.0 }
 0x26e   :  { %v1410_v31 = vmax.f32 %v1394_v42, 0.0  ;;  %v1403_v46 = vmax.f32 %v1387_v44, 0.0  ;;  %v1407_v0 = vmax.f32 %v1391_v19, 0.0  ;;  %v1393_v9 = vadd.f32 %v1378_v32, %v1356_v60 }
 0x26f   :  { %v1434_v51 = vmul.f32 %v5030_v28, %v1418_v63  ;;  %v1420_v18 = vmul.f32 %v4995_v40, %v1404_v61  ;;  %v1424_v45 = vmul.f32 %v4999_v52, %v1408_v56  ;;  %v1422_v39 = vmul.f32 %v4995_v40, %v1406_v21 }
 0x270   :  { %v1426_v7 = vmul.f32 %v4999_v52, %v1410_v31  ;;  %v1419_v25 = vmul.f32 %v4995_v40, %v1403_v46  ;;  %v1423_v11 = vmul.f32 %v4999_v52, %v1407_v0  ;;  %v1405_v16 = vmax.f32 %v1389_v58, 0.0 }
 0x271   :  { %v5464_v30 = vpack.c.bf16 %v1424_v45, %v1420_v18  ;;  %v1409_v14 = vmax.f32 %v1393_v9, 0.0  ;;  %v1396_v15 = vadd.f32 %v1374_v34, %v1359_v23  ;;  %v1400_v22 = vadd.f32 %v1374_v34, %v1363_v43  ;;  %v1484_v43 = vld [vmem:[%s6555_s9 + $0x148] sm:$0xff] }
 0x272   :  { %v5466_v36 = vpack.c.bf16 %v1426_v7, %v1422_v39  ;;  %v5468_v60 = vpack.c.bf16 %v1423_v11, %v1419_v25  ;;  %v1421_v26 = vmul.f32 %v4995_v40, %v1405_v16  ;;  %v1398_v37 = vadd.f32 %v1382_v24, %v1361_v33  ;;  %v1488_v40 = vld [vmem:[%s6555_s9 + $0x168] sm:$0xff] }
 0x273   :  { %3011 = vmatprep.mubr.bf16.mxu1 %v5464_v30  ;;  %v1425_v38 = vmul.f32 %v4999_v52, %v1409_v14  ;;  %v1412_v5 = vmax.f32 %v1396_v15, 0.0  ;;  %v1416_v42 = vmax.f32 %v1400_v22, 0.0  ;;  %v1395_v44 = vadd.f32 %v1370_v41, %v1358_v35  ;;  %v1476_v18 = vld [vmem:[%s6555_s9 + $0x108] sm:$0xff] }
 0x274   :  { %3064 = vmatprep.mubr.bf16.mxu0 %v5466_v36  ;;  %3012 = vmatmul.mubr.bf16.vlgmr.msra.gmra.mxu1 %v5468_v60  ;;  %v1414_v23 = vmax.f32 %v1398_v37, 0.0  ;;  %v1399_v33 = vadd.f32 %v1370_v41, %v1362_v13  ;;  %v1397_v24 = vadd.f32 %v1378_v32, %v1360_v49  ;;  %v1401_v34 = vadd.f32 %v1378_v32, %v1364_v2  ;;  %v1612_v41 = vld [vmem:[%s6555_s9 + $0x548] sm:$0xff] }
 0x275   :  { %v5481_v52 = vpack.c.bf16 %v1425_v38, %v1421_v26  ;;  %v6587_v35 = vcombine.low %v5287_v17, %v5292_v20  ;;  %v1428_v19 = vmul.f32 %v5013_v4, %v1412_v5  ;;  %v1432_v58 = vmul.f32 %v5030_v28, %v1416_v42  ;;  %v1616_v17 = vld [vmem:[%s6555_s9 + $0x568] sm:$0xff] }
 0x276   :  { %v1411_v63 = vmax.f32 %v1395_v44, 0.0  ;;  %v1430_v61 = vmul.f32 %v5013_v4, %v1414_v23  ;;  %v1415_v20 = vmax.f32 %v1399_v33, 0.0  ;;  %v1413_v32 = vmax.f32 %v1397_v24, 0.0  ;;  %v1480_v45 = vld [vmem:[%s6555_s9 + $0x128] sm:$0xff] }
 0x277   :  { %3086 = vmatpush1.bf16.msra.mxu1 %v6587_v35  ;;  %v1417_v13 = vmax.f32 %v1401_v34, 0.0  ;;  %3065 = vmatmul.mubr.bf16.vlgmr.msra.gmra.mxu0 %v5481_v52  ;;  %v5499_v49 = vpack.c.bf16 %v1432_v58, %v1428_v19  ;;  %v4259_v2 = vcombine.low %v5420_v12, %v5425_v3  ;;  %v4124_v56 = vcombine.high %v1484_v43, %v1488_v40  ;;  %v1608_v12 = vld [vmem:[%s6555_s9 + $0x528] sm:$0xff] }
 0x278   :  { %3087 = vmatprep.subr.bf16.mxu1 %v4132_v10  ;;  %v1427_v10 = vmul.f32 %v5013_v4, %v1411_v63  ;;  %v6588_v21 = vcombine.low %v5297_v27, %v5304_v29  ;;  %v5507_v31 = vpack.c.bf16 %v1434_v51, %v1430_v61  ;;  %v1431_v46 = vmul.f32 %v5030_v28, %v1415_v20  ;;  %v1604_v51 = vld [vmem:[%s6555_s9 + $0x508] sm:$0xff] }
 0x279   :  { %v1429_v0 = vmul.f32 %v5013_v4, %v1413_v32  ;;  %v1433_v9 = vmul.f32 %v5030_v28, %v1417_v13  ;;  %3021 = vmatprep.mubr.bf16.mxu1 %v5499_v49  ;;  %v4252_v27 = vcombine.high %v1612_v41, %v1616_v17  ;;  %v4123_v4 = vcombine.low %v1484_v43, %v1488_v40  ;;  %v1596_v7 = vld [vmem:[%s6555_s9 + $0x4c8] sm:$0xff] }
 0x27a   :  { %3139 = vmatpush1.bf16.msra.mxu0 %v6588_v21  ;;  %3074 = vmatprep.mubr.bf16.mxu0 %v5507_v31  ;;  %v5526_v28 = vpack.c.bf16 %v1431_v46, %v1427_v10  ;;  %v4116_v3 = vcombine.high %v1476_v18, %v1480_v45  ;;  %v4115_v39 = vcombine.low %v1476_v18, %v1480_v45  ;;  %v1600_v25 = vld [vmem:[%s6555_s9 + $0x4e8] sm:$0xff] }
 0x27b   :  { %3140 = vmatprep.subr.bf16.mxu0 %v4260_v8  ;;  %3088 = vmatpush1.bf16.msra.mxu1 %v4131_v62  ;;  %v5528_v29 = vpack.c.bf16 %v1433_v9, %v1429_v0  ;;  %v4251_v8 = vcombine.low %v1612_v41, %v1616_v17  ;;  %v4244_v62 = vcombine.high %v1604_v51, %v1608_v12  ;;  %v1460_v14 = vld [vmem:[%s6555_s9 + $0x88] sm:$0xff] }
 0x27c   :  { %3089 = vmatprep.subr.bf16.mxu1 %v4124_v56  ;;  %3022 = vmatmul.mubr.bf16.gmra.mxu1 %v5526_v28  ;;  %v4108_v11 = vcombine.high %v1468_v1, %v1472_v59  ;;  %v4243_v16 = vcombine.low %v1604_v51, %v1608_v12  ;;  %v1464_v15 = vld [vmem:[%s6555_s9 + $0xa8] sm:$0xff]  ;;  %v4236_v22 = vcombine.high %v1596_v7, %v1600_v25 }
 0x27d   :  { %3117 = vmatprep.mubr.bf16.mxu1 %v5464_v30  ;;  %v4107_v26 = vcombine.low %v1468_v1, %v1472_v59  ;;  %v1588_v37 = vld [vmem:[%s6555_s9 + $0x488] sm:$0xff]  ;;  %v4100_v5 = vcombine.high %v1460_v14, %v1464_v15  ;;  %v4235_v42 = vcombine.low %v1596_v7, %v1600_v25  ;;  %v4099_v40 = vcombine.low %v1460_v14, %v1464_v15 }
 0x27e   :  { %3141 = vmatpush1.bf16.msra.mxu0 %v4259_v2  ;;  %v1592_v38 = vld [vmem:[%s6555_s9 + $0x4a8] sm:$0xff] }
 0x27f   :  { %3142 = vmatprep.subr.bf16.mxu0 %v4252_v27  ;;  %3090 = vmatpush1.bf16.msra.mxu1 %v4123_v4  ;;  %v1452_v44 = vld [vmem:[%s6555_s9 + $0x48] sm:$0xff]  ;;  %v4228_v43 = vcombine.high %v1588_v37, %v1592_v38  ;;  %v4227_v35 = vcombine.low %v1588_v37, %v1592_v38 }
 0x280   :  { %3075 = vmatmul.mubr.bf16.gmra.mxu0 %v5528_v29  ;;  %3091 = vmatprep.subr.bf16.mxu1 %v4116_v3  ;;  %v1456_v23 = vld [vmem:[%s6555_s9 + $0x68] sm:$0xff] }
 0x281   :  { %3170 = vmatprep.mubr.bf16.mxu0 %v5466_v36  ;;  %v1580_v33 = vld [vmem:[%s6555_s9 + $0x448] sm:$0xff]  ;;  %v4092_v34 = vcombine.high %v1452_v44, %v1456_v23  ;;  %v4091_v61 = vcombine.low %v1452_v44, %v1456_v23 }
 0x282   :  { %3143 = vmatpush1.bf16.msra.mxu0 %v4251_v8  ;;  %v1584_v24 = vld [vmem:[%s6555_s9 + $0x468] sm:$0xff] }
 0x283   :  { %3144 = vmatprep.subr.bf16.mxu0 %v4244_v62  ;;  %3092 = vmatpush1.bf16.msra.mxu1 %v4115_v39  ;;  %v1444_v19 = vld [vmem:[%s6555_s9 + $0x8] sm:$0xff]  ;;  %v4220_v63 = vcombine.high %v1580_v33, %v1584_v24  ;;  %v4219_v32 = vcombine.low %v1580_v33, %v1584_v24 }
 0x284   :  { %3093 = vmatprep.subr.bf16.mxu1 %v4108_v11  ;;  %v1448_v58 = vld [vmem:[%s6555_s9 + $0x28] sm:$0xff] }
 0x285   :  { %v1572_v41 = vld [vmem:[%s6555_s9 + $0x408] sm:$0xff]  ;;  %v4084_v20 = vcombine.high %v1444_v19, %v1448_v58  ;;  %v4083_v10 = vcombine.low %v1444_v19, %v1448_v58 }
 0x286   :  { %3145 = vmatpush1.bf16.msra.mxu0 %v4243_v16  ;;  %v1576_v17 = vld [vmem:[%s6555_s9 + $0x428] sm:$0xff] }
 0x287   :  { %3146 = vmatprep.subr.bf16.mxu0 %v4236_v22  ;;  %3094 = vmatpush1.bf16.msra.mxu1 %v4107_v26  ;;  %v1564_v13 = vld [vmem:[%s6555_s9 + $0x3c8] sm:$0xff]  ;;  %v4212_v56 = vcombine.high %v1572_v41, %v1576_v17  ;;  %v4211_v9 = vcombine.low %v1572_v41, %v1576_v17 }
 0x288   :  { %3095 = vmatprep.subr.bf16.mxu1 %v4100_v5  ;;  %v1568_v2 = vld [vmem:[%s6555_s9 + $0x3e8] sm:$0xff] }
 0x289   :  { %v1692_v21 = vld [vmem:[%s6555_s9 + $0x7c8] sm:$0xff]  ;;  %v4204_v0 = vcombine.high %v1564_v13, %v1568_v2  ;;  %v4203_v4 = vcombine.low %v1564_v13, %v1568_v2 }
 0x28a   :  { %3147 = vmatpush1.bf16.msra.mxu0 %v4235_v42  ;;  %v1696_v46 = vld [vmem:[%s6555_s9 + $0x7e8] sm:$0xff] }
 0x28b   :  { %3148 = vmatprep.subr.bf16.mxu0 %v4228_v43  ;;  %3096 = vmatpush1.bf16.msra.mxu1 %v4099_v40  ;;  %v1556_v18 = vld [vmem:[%s6555_s9 + $0x388] sm:$0xff]  ;;  %v4332_v27 = vcombine.high %v1692_v21, %v1696_v46  ;;  %v4331_v8 = vcombine.low %v1692_v21, %v1696_v46 }
 0x28c   :  { %3097 = vmatprep.subr.bf16.mxu1 %v4092_v34  ;;  %v1560_v45 = vld [vmem:[%s6555_s9 + $0x3a8] sm:$0xff] }
 0x28d   :  { %v1684_v51 = vld [vmem:[%s6555_s9 + $0x788] sm:$0xff]  ;;  %v4196_v3 = vcombine.high %v1556_v18, %v1560_v45  ;;  %v4195_v39 = vcombine.low %v1556_v18, %v1560_v45 }
 0x28e   :  { %3149 = vmatpush1.bf16.msra.mxu0 %v4227_v35  ;;  %v1688_v12 = vld [vmem:[%s6555_s9 + $0x7a8] sm:$0xff] }
 0x28f   :  { %3150 = vmatprep.subr.bf16.mxu0 %v4220_v63  ;;  %3098 = vmatpush1.bf16.msra.mxu1 %v4091_v61  ;;  %v1548_v1 = vld [vmem:[%s6555_s9 + $0x348] sm:$0xff]  ;;  %v4324_v62 = vcombine.high %v1684_v51, %v1688_v12  ;;  %v4323_v16 = vcombine.low %v1684_v51, %v1688_v12 }
 0x290   :  { %3099 = vmatprep.subr.bf16.mxu1 %v4084_v20  ;;  %v1552_v59 = vld [vmem:[%s6555_s9 + $0x368] sm:$0xff] }
 0x291   :  { %v1676_v7 = vld [vmem:[%s6555_s9 + $0x748] sm:$0xff]  ;;  %v4188_v11 = vcombine.high %v1548_v1, %v1552_v59  ;;  %v4187_v26 = vcombine.low %v1548_v1, %v1552_v59  ;;  %v1501_v1 = vld [vmem:[%s6555_s9 + $0x1d0] sm:$0xff] }
 0x292   :  { %3151 = vmatpush1.bf16.msra.mxu0 %v4219_v32  ;;  %v1680_v25 = vld [vmem:[%s6555_s9 + $0x768] sm:$0xff]  ;;  %v1505_v59 = vld [vmem:[%s6555_s9 + $0x1f0] sm:$0xff] }
 0x293   :  { %3152 = vmatprep.subr.bf16.mxu0 %v4212_v56  ;;  %3100 = vmatpush1.bf16.msra.mxu1 %v4083_v10  ;;  %v1540_v14 = vld [vmem:[%s6555_s9 + $0x308] sm:$0xff]  ;;  %v4316_v22 = vcombine.high %v1676_v7, %v1680_v25  ;;  %v4315_v42 = vcombine.low %v1676_v7, %v1680_v25  ;;  %v1629_v7 = vld [vmem:[%s6555_s9 + $0x5d0] sm:$0xff] }
 0x294   :  { %3101 = vmatprep.subr.bf16.mxu1 %v4204_v0  ;;  %v1544_v15 = vld [vmem:[%s6555_s9 + $0x328] sm:$0xff]  ;;  %v1633_v25 = vld [vmem:[%s6555_s9 + $0x5f0] sm:$0xff] }
 0x295   :  { %v1668_v37 = vld [vmem:[%s6555_s9 + $0x708] sm:$0xff]  ;;  %v4180_v5 = vcombine.high %v1540_v14, %v1544_v15  ;;  %v4179_v40 = vcombine.low %v1540_v14, %v1544_v15  ;;  %v1493_v14 = vld [vmem:[%s6555_s9 + $0x190] sm:$0xff] }
 0x296   :  { %3153 = vmatpush1.bf16.msra.mxu0 %v4211_v9  ;;  %v1672_v38 = vld [vmem:[%s6555_s9 + $0x728] sm:$0xff]  ;;  %v1497_v15 = vld [vmem:[%s6555_s9 + $0x1b0] sm:$0xff] }
 0x297   :  { %3154 = vmatprep.subr.bf16.mxu0 %v4332_v27  ;;  %3102 = vmatpush2.bf16.msra.mxu1 %v4203_v4  ;;  %v1532_v44 = vld [vmem:[%s6555_s9 + $0x2c8] sm:$0xff]  ;;  %v4308_v43 = vcombine.high %v1668_v37, %v1672_v38  ;;  %v4307_v35 = vcombine.low %v1668_v37, %v1672_v38  ;;  %v1621_v37 = vld [vmem:[%s6555_s9 + $0x590] sm:$0xff] }
 0x298   :  { %3103 = vmatprep.subr.bf16.mxu1 %v4196_v3  ;;  %v1536_v23 = vld [vmem:[%s6555_s9 + $0x2e8] sm:$0xff]  ;;  %v1625_v38 = vld [vmem:[%s6555_s9 + $0x5b0] sm:$0xff] }
 0x299   :  { %v1660_v33 = vld [vmem:[%s6555_s9 + $0x6c8] sm:$0xff]  ;;  %v4172_v34 = vcombine.high %v1532_v44, %v1536_v23  ;;  %v4171_v61 = vcombine.low %v1532_v44, %v1536_v23  ;;  %v1485_v44 = vld [vmem:[%s6555_s9 + $0x150] sm:$0xff] }
 0x29a   :  { %3155 = vmatpush2.bf16.msra.mxu0 %v4331_v8  ;;  %v1664_v24 = vld [vmem:[%s6555_s9 + $0x6e8] sm:$0xff]  ;;  %v1489_v23 = vld [vmem:[%s6555_s9 + $0x170] sm:$0xff] }
 0x29b   :  { %3156 = vmatprep.subr.bf16.mxu0 %v4324_v62  ;;  %3104 = vmatpush2.bf16.msra.mxu1 %v4195_v39  ;;  %v1524_v19 = vld [vmem:[%s6555_s9 + $0x288] sm:$0xff]  ;;  %v4300_v63 = vcombine.high %v1660_v33, %v1664_v24  ;;  %v4299_v32 = vcombine.low %v1660_v33, %v1664_v24  ;;  %v1613_v33 = vld [vmem:[%s6555_s9 + $0x550] sm:$0xff] }
 0x29c   :  { %3105 = vmatprep.subr.bf16.mxu1 %v4188_v11  ;;  %v1528_v58 = vld [vmem:[%s6555_s9 + $0x2a8] sm:$0xff]  ;;  %v4142_v11 = vcombine.high %v1501_v1, %v1505_v59  ;;  %v1617_v24 = vld [vmem:[%s6555_s9 + $0x570] sm:$0xff] }
 0x29d   :  { %v1652_v41 = vld [vmem:[%s6555_s9 + $0x688] sm:$0xff]  ;;  %v4164_v20 = vcombine.high %v1524_v19, %v1528_v58  ;;  %v4163_v10 = vcombine.low %v1524_v19, %v1528_v58  ;;  %v1477_v19 = vld [vmem:[%s6555_s9 + $0x110] sm:$0xff] }
 0x29e   :  { %3157 = vmatpush2.bf16.msra.mxu0 %v4323_v16  ;;  %v1656_v17 = vld [vmem:[%s6555_s9 + $0x6a8] sm:$0xff]  ;;  %v1481_v58 = vld [vmem:[%s6555_s9 + $0x130] sm:$0xff] }
 0x29f   :  { %3158 = vmatprep.subr.bf16.mxu0 %v4316_v22  ;;  %3106 = vmatpush2.bf16.msra.mxu1 %v4187_v26  ;;  %v1516_v13 = vld [vmem:[%s6555_s9 + $0x248] sm:$0xff]  ;;  %v4292_v56 = vcombine.high %v1652_v41, %v1656_v17  ;;  %v4291_v9 = vcombine.low %v1652_v41, %v1656_v17  ;;  %v4270_v22 = vcombine.high %v1629_v7, %v1633_v25  ;;  %v1605_v41 = vld [vmem:[%s6555_s9 + $0x510] sm:$0xff] }
 0x2a0   :  { %3107 = vmatprep.subr.bf16.mxu1 %v4180_v5  ;;  %v1520_v2 = vld [vmem:[%s6555_s9 + $0x268] sm:$0xff]  ;;  %v4141_v26 = vcombine.low %v1501_v1, %v1505_v59  ;;  %v4134_v5 = vcombine.high %v1493_v14, %v1497_v15  ;;  %v1609_v17 = vld [vmem:[%s6555_s9 + $0x530] sm:$0xff] }
 0x2a1   :  { %v1644_v21 = vld [vmem:[%s6555_s9 + $0x648] sm:$0xff]  ;;  %v4156_v0 = vcombine.high %v1516_v13, %v1520_v2  ;;  %v4155_v4 = vcombine.low %v1516_v13, %v1520_v2  ;;  %v1469_v13 = vld [vmem:[%s6555_s9 + $0xd0] sm:$0xff] }
 0x2a2   :  { %3159 = vmatpush2.bf16.msra.mxu0 %v4315_v42  ;;  %v1648_v46 = vld [vmem:[%s6555_s9 + $0x668] sm:$0xff]  ;;  %v4269_v42 = vcombine.low %v1629_v7, %v1633_v25  ;;  %v1473_v2 = vld [vmem:[%s6555_s9 + $0xf0] sm:$0xff] }
 0x2a3   :  { %3160 = vmatprep.subr.bf16.mxu0 %v4308_v43  ;;  %3108 = vmatpush2.bf16.msra.mxu1 %v4179_v40  ;;  %v1508_v18 = vld [vmem:[%s6555_s9 + $0x208] sm:$0xff]  ;;  %v4284_v27 = vcombine.high %v1644_v21, %v1648_v46  ;;  %v4283_v8 = vcombine.low %v1644_v21, %v1648_v46  ;;  %v4262_v43 = vcombine.high %v1621_v37, %v1625_v38  ;;  %v1597_v21 = vld [vmem:[%s6555_s9 + $0x4d0] sm:$0xff] }
 0x2a4   :  { %3109 = vmatprep.subr.bf16.mxu1 %v4172_v34  ;;  %v1512_v45 = vld [vmem:[%s6555_s9 + $0x228] sm:$0xff]  ;;  %v4133_v40 = vcombine.low %v1493_v14, %v1497_v15  ;;  %v4126_v34 = vcombine.high %v1485_v44, %v1489_v23  ;;  %v1601_v46 = vld [vmem:[%s6555_s9 + $0x4f0] sm:$0xff] }
 0x2a5   :  { %v1636_v51 = vld [vmem:[%s6555_s9 + $0x608] sm:$0xff]  ;;  %v4148_v3 = vcombine.high %v1508_v18, %v1512_v45  ;;  %v4147_v39 = vcombine.low %v1508_v18, %v1512_v45  ;;  %v1461_v18 = vld [vmem:[%s6555_s9 + $0x90] sm:$0xff] }
 0x2a6   :  { %3161 = vmatpush2.bf16.msra.mxu0 %v4307_v35  ;;  %v1640_v12 = vld [vmem:[%s6555_s9 + $0x628] sm:$0xff]  ;;  %v4261_v35 = vcombine.low %v1621_v37, %v1625_v38  ;;  %v1465_v45 = vld [vmem:[%s6555_s9 + $0xb0] sm:$0xff] }
 0x2a7   :  { %3162 = vmatprep.subr.bf16.mxu0 %v4300_v63  ;;  %3110 = vmatpush2.bf16.msra.mxu1 %v4171_v61  ;;  %v4276_v62 = vcombine.high %v1636_v51, %v1640_v12  ;;  %v4275_v16 = vcombine.low %v1636_v51, %v1640_v12  ;;  %v4254_v63 = vcombine.high %v1613_v33, %v1617_v24  ;;  %v1589_v51 = vld [vmem:[%s6555_s9 + $0x490] sm:$0xff] }
 0x2a8   :  { %3111 = vmatprep.subr.bf16.mxu1 %v4164_v20  ;;  %v4125_v61 = vcombine.low %v1485_v44, %v1489_v23  ;;  %v4118_v20 = vcombine.high %v1477_v19, %v1481_v58  ;;  %v1593_v12 = vld [vmem:[%s6555_s9 + $0x4b0] sm:$0xff] }
 0x2a9   :  { %v1453_v1 = vld [vmem:[%s6555_s9 + $0x50] sm:$0xff] }
 0x2aa   :  { %3163 = vmatpush2.bf16.msra.mxu0 %v4299_v32  ;;  %v4253_v32 = vcombine.low %v1613_v33, %v1617_v24  ;;  %v1457_v59 = vld [vmem:[%s6555_s9 + $0x70] sm:$0xff] }
 0x2ab   :  { %3164 = vmatprep.subr.bf16.mxu0 %v4292_v56  ;;  %3112 = vmatpush2.bf16.msra.mxu1 %v4163_v10  ;;  %v4246_v56 = vcombine.high %v1605_v41, %v1609_v17  ;;  %v4117_v10 = vcombine.low %v1477_v19, %v1481_v58  ;;  %v1581_v7 = vld [vmem:[%s6555_s9 + $0x450] sm:$0xff] }
 0x2ac   :  { %3113 = vmatprep.subr.bf16.mxu1 %v4156_v0  ;;  %v4110_v0 = vcombine.high %v1469_v13, %v1473_v2  ;;  %v1585_v25 = vld [vmem:[%s6555_s9 + $0x470] sm:$0xff] }
 0x2ad   :  { %v1445_v14 = vld [vmem:[%s6555_s9 + $0x10] sm:$0xff] }
 0x2ae   :  { %3165 = vmatpush2.bf16.msra.mxu0 %v4291_v9  ;;  %v4245_v9 = vcombine.low %v1605_v41, %v1609_v17  ;;  %v1449_v15 = vld [vmem:[%s6555_s9 + $0x30] sm:$0xff] }
 0x2af   :  { %3166 = vmatprep.subr.bf16.mxu0 %v4284_v27  ;;  %3114 = vmatpush2.bf16.msra.mxu1 %v4155_v4  ;;  %v4238_v27 = vcombine.high %v1597_v21, %v1601_v46  ;;  %v4109_v4 = vcombine.low %v1469_v13, %v1473_v2  ;;  %v1573_v37 = vld [vmem:[%s6555_s9 + $0x410] sm:$0xff] }
 0x2b0   :  { %3115 = vmatprep.subr.bf16.mxu1 %v4148_v3  ;;  %v4102_v3 = vcombine.high %v1461_v18, %v1465_v45  ;;  %v1577_v38 = vld [vmem:[%s6555_s9 + $0x430] sm:$0xff] }
 0x2b1   :  { %v1565_v44 = vld [vmem:[%s6555_s9 + $0x3d0] sm:$0xff] }
 0x2b2   :  { %3167 = vmatpush2.bf16.msra.mxu0 %v4283_v8  ;;  %v4237_v8 = vcombine.low %v1597_v21, %v1601_v46  ;;  %v1569_v23 = vld [vmem:[%s6555_s9 + $0x3f0] sm:$0xff] }
 0x2b3   :  { %3168 = vmatprep.subr.bf16.mxu0 %v4276_v62  ;;  %3116 = vmatpush2.bf16.msra.mxu1 %v4147_v39  ;;  %v4230_v62 = vcombine.high %v1589_v51, %v1593_v12  ;;  %v4101_v39 = vcombine.low %v1461_v18, %v1465_v45  ;;  %v1693_v33 = vld [vmem:[%s6555_s9 + $0x7d0] sm:$0xff] }
 0x2b4   :  { %3191 = vmatprep.subr.bf16.mxu1 %v4142_v11  ;;  %v4094_v11 = vcombine.high %v1453_v1, %v1457_v59  ;;  %v1697_v24 = vld [vmem:[%s6555_s9 + $0x7f0] sm:$0xff] }
 0x2b5   :  { %v1557_v19 = vld [vmem:[%s6555_s9 + $0x390] sm:$0xff] }
 0x2b6   :  { %3169 = vmatpush2.bf16.msra.mxu0 %v4275_v16  ;;  %3118 = vmatmul.mubr.bf16.vlgmr.msra.gmra.mxu1 %v5468_v60  ;;  %v4229_v16 = vcombine.low %v1589_v51, %v1593_v12  ;;  %v1561_v58 = vld [vmem:[%s6555_s9 + $0x3b0] sm:$0xff] }
 0x2b7   :  { %3244 = vmatprep.subr.bf16.mxu0 %v4270_v22  ;;  %3127 = vmatprep.mubr.bf16.mxu1 %v5499_v49  ;;  %v4222_v22 = vcombine.high %v1581_v7, %v1585_v25  ;;  %v1685_v41 = vld [vmem:[%s6555_s9 + $0x790] sm:$0xff] }
 0x2b8   :  { %3192 = vmatpush1.bf16.msra.mxu1 %v4141_v26  ;;  %v4093_v26 = vcombine.low %v1453_v1, %v1457_v59  ;;  %v1689_v17 = vld [vmem:[%s6555_s9 + $0x7b0] sm:$0xff] }
 0x2b9   :  { %3171 = vmatmul.mubr.bf16.vlgmr.msra.gmra.mxu0 %v5481_v52  ;;  %3193 = vmatprep.subr.bf16.mxu1 %v4134_v5  ;;  %v4086_v5 = vcombine.high %v1445_v14, %v1449_v15  ;;  %v1549_v13 = vld [vmem:[%s6555_s9 + $0x350] sm:$0xff] }
 0x2ba   :  { %3180 = vmatprep.mubr.bf16.mxu0 %v5507_v31  ;;  %3245 = vmatpush1.bf16.msra.mxu0 %v4269_v42  ;;  %v4221_v42 = vcombine.low %v1581_v7, %v1585_v25  ;;  %v1553_v2 = vld [vmem:[%s6555_s9 + $0x370] sm:$0xff] }
 0x2bb   :  { %3246 = vmatprep.subr.bf16.mxu0 %v4262_v43  ;;  %v4214_v43 = vcombine.high %v1573_v37, %v1577_v38  ;;  %v1677_v21 = vld [vmem:[%s6555_s9 + $0x750] sm:$0xff] }
 0x2bc   :  { %3194 = vmatpush1.bf16.msra.mxu1 %v4133_v40  ;;  %v4085_v40 = vcombine.low %v1445_v14, %v1449_v15  ;;  %v1681_v46 = vld [vmem:[%s6555_s9 + $0x770] sm:$0xff] }
 0x2bd   :  { %3195 = vmatprep.subr.bf16.mxu1 %v4126_v34  ;;  %v4206_v34 = vcombine.high %v1565_v44, %v1569_v23  ;;  %v1541_v18 = vld [vmem:[%s6555_s9 + $0x310] sm:$0xff] }
 0x2be   :  { %3247 = vmatpush1.bf16.msra.mxu0 %v4261_v35  ;;  %3128 = vmatmul.mubr.bf16.gmra.mxu1 %v5526_v28  ;;  %v4213_v35 = vcombine.low %v1573_v37, %v1577_v38  ;;  %v1545_v45 = vld [vmem:[%s6555_s9 + $0x330] sm:$0xff] }
 0x2bf   :  { %3248 = vmatprep.subr.bf16.mxu0 %v4254_v63  ;;  %3223 = vmatprep.mubr.bf16.mxu1 %v5464_v30  ;;  %v4334_v63 = vcombine.high %v1693_v33, %v1697_v24  ;;  %v1669_v51 = vld [vmem:[%s6555_s9 + $0x710] sm:$0xff] }
 0x2c0   :  { %3196 = vmatpush1.bf16.msra.mxu1 %v4125_v61  ;;  %v4205_v61 = vcombine.low %v1565_v44, %v1569_v23  ;;  %v1673_v12 = vld [vmem:[%s6555_s9 + $0x730] sm:$0xff] }
 0x2c1   :  { %3181 = vmatmul.mubr.bf16.gmra.mxu0 %v5528_v29  ;;  %3197 = vmatprep.subr.bf16.mxu1 %v4118_v20  ;;  %v4198_v20 = vcombine.high %v1557_v19, %v1561_v58  ;;  %v1533_v1 = vld [vmem:[%s6555_s9 + $0x2d0] sm:$0xff] }
 0x2c2   :  { %3249 = vmatpush1.bf16.msra.mxu0 %v4253_v32  ;;  %3276 = vmatprep.mubr.bf16.mxu0 %v5466_v36  ;;  %v4333_v32 = vcombine.low %v1693_v33, %v1697_v24  ;;  %v1537_v59 = vld [vmem:[%s6555_s9 + $0x2f0] sm:$0xff] }
 0x2c3   :  { %3250 = vmatprep.subr.bf16.mxu0 %v4246_v56  ;;  %v4326_v56 = vcombine.high %v1685_v41, %v1689_v17  ;;  %v1661_v7 = vld [vmem:[%s6555_s9 + $0x6d0] sm:$0xff] }
 0x2c4   :  { %3198 = vmatpush1.bf16.msra.mxu1 %v4117_v10  ;;  %v4197_v10 = vcombine.low %v1557_v19, %v1561_v58  ;;  %v1665_v25 = vld [vmem:[%s6555_s9 + $0x6f0] sm:$0xff] }
 0x2c5   :  { %3199 = vmatprep.subr.bf16.mxu1 %v4110_v0  ;;  %v4190_v0 = vcombine.high %v1549_v13, %v1553_v2  ;;  %v1525_v14 = vld [vmem:[%s6555_s9 + $0x290] sm:$0xff] }
 0x2c6   :  { %3251 = vmatpush1.bf16.msra.mxu0 %v4245_v9  ;;  %v4325_v9 = vcombine.low %v1685_v41, %v1689_v17  ;;  %v1529_v15 = vld [vmem:[%s6555_s9 + $0x2b0] sm:$0xff] }
 0x2c7   :  { %3252 = vmatprep.subr.bf16.mxu0 %v4238_v27  ;;  %v4318_v27 = vcombine.high %v1677_v21, %v1681_v46  ;;  %v1653_v37 = vld [vmem:[%s6555_s9 + $0x690] sm:$0xff] }
 0x2c8   :  { %3200 = vmatpush1.bf16.msra.mxu1 %v4109_v4  ;;  %v4189_v4 = vcombine.low %v1549_v13, %v1553_v2  ;;  %v1657_v38 = vld [vmem:[%s6555_s9 + $0x6b0] sm:$0xff]  ;;  %v1502_v13 = vld [vmem:[%s6555_s9 + $0x1d8] sm:$0xff] }
 0x2c9   :  { %3201 = vmatprep.subr.bf16.mxu1 %v4102_v3  ;;  %v4182_v3 = vcombine.high %v1541_v18, %v1545_v45  ;;  %v1517_v44 = vld [vmem:[%s6555_s9 + $0x250] sm:$0xff]  ;;  %v1506_v2 = vld [vmem:[%s6555_s9 + $0x1f8] sm:$0xff] }
 0x2ca   :  { %3253 = vmatpush1.bf16.msra.mxu0 %v4237_v8  ;;  %v4317_v8 = vcombine.low %v1677_v21, %v1681_v46  ;;  %v1521_v23 = vld [vmem:[%s6555_s9 + $0x270] sm:$0xff]  ;;  %v1630_v21 = vld [vmem:[%s6555_s9 + $0x5d8] sm:$0xff] }
 0x2cb   :  { %3254 = vmatprep.subr.bf16.mxu0 %v4230_v62  ;;  %v4310_v62 = vcombine.high %v1669_v51, %v1673_v12  ;;  %v1645_v33 = vld [vmem:[%s6555_s9 + $0x650] sm:$0xff]  ;;  %v1634_v46 = vld [vmem:[%s6555_s9 + $0x5f8] sm:$0xff] }
 0x2cc   :  { %3202 = vmatpush1.bf16.msra.mxu1 %v4101_v39  ;;  %v4181_v39 = vcombine.low %v1541_v18, %v1545_v45  ;;  %v1649_v24 = vld [vmem:[%s6555_s9 + $0x670] sm:$0xff]  ;;  %v1494_v18 = vld [vmem:[%s6555_s9 + $0x198] sm:$0xff] }
 0x2cd   :  { %3203 = vmatprep.subr.bf16.mxu1 %v4094_v11  ;;  %v4174_v11 = vcombine.high %v1533_v1, %v1537_v59  ;;  %v1509_v19 = vld [vmem:[%s6555_s9 + $0x210] sm:$0xff]  ;;  %v1498_v45 = vld [vmem:[%s6555_s9 + $0x1b8] sm:$0xff] }
 0x2ce   :  { %3255 = vmatpush1.bf16.msra.mxu0 %v4229_v16  ;;  %v4309_v16 = vcombine.low %v1669_v51, %v1673_v12  ;;  %v1513_v58 = vld [vmem:[%s6555_s9 + $0x230] sm:$0xff]  ;;  %v1622_v51 = vld [vmem:[%s6555_s9 + $0x598] sm:$0xff] }
 0x2cf   :  { %3256 = vmatprep.subr.bf16.mxu0 %v4222_v22  ;;  %v4302_v22 = vcombine.high %v1661_v7, %v1665_v25  ;;  %v1637_v41 = vld [vmem:[%s6555_s9 + $0x610] sm:$0xff]  ;;  %v1626_v12 = vld [vmem:[%s6555_s9 + $0x5b8] sm:$0xff] }
 0x2d0   :  { %3204 = vmatpush1.bf16.msra.mxu1 %v4093_v26  ;;  %v4173_v26 = vcombine.low %v1533_v1, %v1537_v59  ;;  %v1641_v17 = vld [vmem:[%s6555_s9 + $0x630] sm:$0xff]  ;;  %v1486_v1 = vld [vmem:[%s6555_s9 + $0x158] sm:$0xff] }
 0x2d1   :  { %3205 = vmatprep.subr.bf16.mxu1 %v4086_v5  ;;  %v4166_v5 = vcombine.high %v1525_v14, %v1529_v15  ;;  %v1490_v59 = vld [vmem:[%s6555_s9 + $0x178] sm:$0xff] }
 0x2d2   :  { %3257 = vmatpush1.bf16.msra.mxu0 %v4221_v42  ;;  %v4301_v42 = vcombine.low %v1661_v7, %v1665_v25  ;;  %v1614_v7 = vld [vmem:[%s6555_s9 + $0x558] sm:$0xff] }
 0x2d3   :  { %3258 = vmatprep.subr.bf16.mxu0 %v4214_v43  ;;  %v4294_v43 = vcombine.high %v1653_v37, %v1657_v38  ;;  %v1618_v25 = vld [vmem:[%s6555_s9 + $0x578] sm:$0xff] }
 0x2d4   :  { %3206 = vmatpush1.bf16.msra.mxu1 %v4085_v40  ;;  %v4165_v40 = vcombine.low %v1525_v14, %v1529_v15  ;;  %v1478_v14 = vld [vmem:[%s6555_s9 + $0x118] sm:$0xff] }
 0x2d5   :  { %3207 = vmatprep.subr.bf16.mxu1 %v4206_v34  ;;  %v4158_v34 = vcombine.high %v1517_v44, %v1521_v23  ;;  %v1482_v15 = vld [vmem:[%s6555_s9 + $0x138] sm:$0xff] }
 0x2d6   :  { %3259 = vmatpush1.bf16.msra.mxu0 %v4213_v35  ;;  %v4293_v35 = vcombine.low %v1653_v37, %v1657_v38  ;;  %v1606_v37 = vld [vmem:[%s6555_s9 + $0x518] sm:$0xff] }
 0x2d7   :  { %3260 = vmatprep.subr.bf16.mxu0 %v4334_v63  ;;  %v4286_v63 = vcombine.high %v1645_v33, %v1649_v24  ;;  %v1610_v38 = vld [vmem:[%s6555_s9 + $0x538] sm:$0xff] }
 0x2d8   :  { %3208 = vmatpush2.bf16.msra.mxu1 %v4205_v61  ;;  %v4157_v61 = vcombine.low %v1517_v44, %v1521_v23  ;;  %v1470_v44 = vld [vmem:[%s6555_s9 + $0xd8] sm:$0xff] }
 0x2d9   :  { %3209 = vmatprep.subr.bf16.mxu1 %v4198_v20  ;;  %v4150_v20 = vcombine.high %v1509_v19, %v1513_v58  ;;  %v1474_v23 = vld [vmem:[%s6555_s9 + $0xf8] sm:$0xff] }
 0x2da   :  { %3261 = vmatpush2.bf16.msra.mxu0 %v4333_v32  ;;  %v4285_v32 = vcombine.low %v1645_v33, %v1649_v24  ;;  %v1598_v33 = vld [vmem:[%s6555_s9 + $0x4d8] sm:$0xff] }
 0x2db   :  { %3262 = vmatprep.subr.bf16.mxu0 %v4326_v56  ;;  %v4278_v56 = vcombine.high %v1637_v41, %v1641_v17  ;;  %v1602_v24 = vld [vmem:[%s6555_s9 + $0x4f8] sm:$0xff] }
 0x2dc   :  { %3210 = vmatpush2.bf16.msra.mxu1 %v4197_v10  ;;  %v4149_v10 = vcombine.low %v1509_v19, %v1513_v58  ;;  %v1466_v19 = vld [vmem:[%s6555_s9 + $0xb8] sm:$0xff]  ;;  %v5981_v58 = vcombine.high %v1598_v33, %v1602_v24 }
 0x2dd   :  { %3211 = vmatprep.subr.bf16.mxu1 %v4190_v0  ;;  %v4144_v0 = vcombine.high %v1502_v13, %v1506_v2 }
 0x2de   :  { %3263 = vmatpush2.bf16.msra.mxu0 %v4325_v9  ;;  %v4277_v9 = vcombine.low %v1637_v41, %v1641_v17  ;;  %v5990_v17 = vcombine.low %v1598_v33, %v1602_v24  ;;  %v1550_v24 = vld [vmem:[%s6555_s9 + $0x358] sm:$0xff] }
 0x2df   :  { %3264 = vmatprep.subr.bf16.mxu0 %v4318_v27  ;;  %v5902_v27 = vcombine.high %v1630_v21, %v1634_v46 }
 0x2e0   :  { %3212 = vmatpush2.bf16.msra.mxu1 %v4189_v4  ;;  %v4143_v4 = vcombine.low %v1502_v13, %v1506_v2 }
 0x2e1   :  { %3213 = vmatprep.subr.bf16.mxu1 %v4182_v3  ;;  %v4136_v3 = vcombine.high %v1494_v18, %v1498_v45 }
 0x2e2   :  { %3265 = vmatpush2.bf16.msra.mxu0 %v4317_v8  ;;  %v5910_v8 = vcombine.low %v1630_v21, %v1634_v46 }
 0x2e3   :  { %3266 = vmatprep.subr.bf16.mxu0 %v4310_v62  ;;  %v5920_v62 = vcombine.high %v1622_v51, %v1626_v12 }
 0x2e4   :  { %3214 = vmatpush2.bf16.msra.mxu1 %v4181_v39  ;;  %v4135_v39 = vcombine.low %v1494_v18, %v1498_v45 }
 0x2e5   :  { %3215 = vmatprep.subr.bf16.mxu1 %v4174_v11  ;;  %v4128_v11 = vcombine.high %v1486_v1, %v1490_v59 }
 0x2e6   :  { %3267 = vmatpush2.bf16.msra.mxu0 %v4309_v16  ;;  %v5932_v16 = vcombine.low %v1622_v51, %v1626_v12  ;;  %v1578_v51 = vld [vmem:[%s6555_s9 + $0x438] sm:$0xff] }
 0x2e7   :  { %3268 = vmatprep.subr.bf16.mxu0 %v4302_v22  ;;  %v5941_v22 = vcombine.high %v1614_v7, %v1618_v25 }
 0x2e8   :  { %3216 = vmatpush2.bf16.msra.mxu1 %v4173_v26  ;;  %v4127_v26 = vcombine.low %v1486_v1, %v1490_v59  ;;  %v1566_v1 = vld [vmem:[%s6555_s9 + $0x3d8] sm:$0xff] }
 0x2e9   :  { %3217 = vmatprep.subr.bf16.mxu1 %v4166_v5  ;;  %v4120_v5 = vcombine.high %v1478_v14, %v1482_v15  ;;  %v1570_v59 = vld [vmem:[%s6555_s9 + $0x3f8] sm:$0xff] }
 0x2ea   :  { %3269 = vmatpush2.bf16.msra.mxu0 %v4301_v42  ;;  %v5950_v42 = vcombine.low %v1614_v7, %v1618_v25  ;;  %v1694_v25 = vld [vmem:[%s6555_s9 + $0x7d8] sm:$0xff] }
 0x2eb   :  { %3270 = vmatprep.subr.bf16.mxu0 %v4294_v43  ;;  %v5960_v43 = vcombine.high %v1606_v37, %v1610_v38 }
 0x2ec   :  { %3218 = vmatpush2.bf16.msra.mxu1 %v4165_v40  ;;  %v4119_v40 = vcombine.low %v1478_v14, %v1482_v15  ;;  %v4208_v14 = vcombine.high %v1566_v1, %v1570_v59 }
 0x2ed   :  { %3219 = vmatprep.subr.bf16.mxu1 %v4158_v34  ;;  %v4112_v34 = vcombine.high %v1470_v44, %v1474_v23 }
 0x2ee   :  { %3271 = vmatpush2.bf16.msra.mxu0 %v4293_v35  ;;  %v5972_v35 = vcombine.low %v1606_v37, %v1610_v38  ;;  %v1562_v37 = vld [vmem:[%s6555_s9 + $0x3b8] sm:$0xff] }
 0x2ef   :  { %3272 = vmatprep.subr.bf16.mxu0 %v4286_v63  ;;  %v4111_v63 = vcombine.low %v1470_v44, %v1474_v23  ;;  %v1686_v44 = vld [vmem:[%s6555_s9 + $0x798] sm:$0xff] }
 0x2f0   :  { %3220 = vmatpush2.bf16.msra.mxu1 %v4157_v61  ;;  %v1594_v61 = vld [vmem:[%s6555_s9 + $0x4b8] sm:$0xff] }
 0x2f1   :  { %3221 = vmatprep.subr.bf16.mxu1 %v4150_v20  ;;  %v1454_v20 = vld [vmem:[%s6555_s9 + $0x58] sm:$0xff] }
 0x2f2   :  { %3273 = vmatpush2.bf16.msra.mxu0 %v4285_v32  ;;  %v1458_v32 = vld [vmem:[%s6555_s9 + $0x78] sm:$0xff] }
 0x2f3   :  { %3274 = vmatprep.subr.bf16.mxu0 %v4278_v56  ;;  %v1582_v56 = vld [vmem:[%s6555_s9 + $0x458] sm:$0xff]  ;;  %v4096_v21 = vcombine.high %v1454_v20, %v1458_v32  ;;  %v4095_v45 = vcombine.low %v1454_v20, %v1458_v32 }
 0x2f4   :  { %3222 = vmatpush2.bf16.msra.mxu1 %v4149_v10  ;;  %v1586_v10 = vld [vmem:[%s6555_s9 + $0x478] sm:$0xff] }
 0x2f5   :  { %3297 = vmatprep.subr.bf16.mxu1 %v4144_v0  ;;  %v1446_v0 = vld [vmem:[%s6555_s9 + $0x18] sm:$0xff]  ;;  %v6017_v18 = vcombine.high %v1582_v56, %v1586_v10 }
 0x2f6   :  { %3275 = vmatpush2.bf16.msra.mxu0 %v4277_v9  ;;  %v1450_v9 = vld [vmem:[%s6555_s9 + $0x38] sm:$0xff] }
 0x2f7   :  { %3224 = vmatmul.mubr.bf16.vlgmr.msra.gmra.mxu1 %v5468_v60  ;;  %3350 = vmatprep.subr.bf16.mxu0 %v5902_v27  ;;  %v4088_v12 = vcombine.high %v1446_v0, %v1450_v9  ;;  %v4087_v7 = vcombine.low %v1446_v0, %v1450_v9  ;;  %v1690_v23 = vld [vmem:[%s6555_s9 + $0x7b8] sm:$0xff] }
 0x2f8   :  { %3233 = vmatprep.mubr.bf16.mxu1 %v5499_v49  ;;  %3298 = vmatpush1.bf16.msra.mxu1 %v4143_v4  ;;  %v1574_v4 = vld [vmem:[%s6555_s9 + $0x418] sm:$0xff] }
 0x2f9   :  { %3277 = vmatmul.mubr.bf16.vlgmr.msra.gmra.mxu0 %v5481_v52  ;;  %3299 = vmatprep.subr.bf16.mxu1 %v4136_v3  ;;  %v6026_v3 = vcombine.low %v1582_v56, %v1586_v10  ;;  %v6044_v15 = vcombine.low %v1574_v4, %v1578_v51  ;;  %v1542_v20 = vld [vmem:[%s6555_s9 + $0x318] sm:$0xff] }
 0x2fa   :  { %3286 = vmatprep.mubr.bf16.mxu0 %v5507_v31  ;;  %3351 = vmatpush1.bf16.msra.mxu0 %v5910_v8  ;;  %v1546_v32 = vld [vmem:[%s6555_s9 + $0x338] sm:$0xff] }
 0x2fb   :  { %3352 = vmatprep.subr.bf16.mxu0 %v5920_v62  ;;  %v1670_v10 = vld [vmem:[%s6555_s9 + $0x718] sm:$0xff]  ;;  %v4184_v0 = vcombine.high %v1542_v20, %v1546_v32 }
 0x2fc   :  { %3300 = vmatpush1.bf16.msra.mxu1 %v4135_v39  ;;  %v6035_v39 = vcombine.high %v1574_v4, %v1578_v51  ;;  %v1538_v4 = vld [vmem:[%s6555_s9 + $0x2f8] sm:$0xff] }
 0x2fd   :  { %3301 = vmatprep.subr.bf16.mxu1 %v4128_v11  ;;  %v1698_v11 = vld [vmem:[%s6555_s9 + $0x7f8] sm:$0xff] }
 0x2fe   :  { %3353 = vmatpush1.bf16.msra.mxu0 %v5932_v16  ;;  %v6053_v38 = vcombine.high %v1694_v25, %v1698_v11  ;;  %v6062_v33 = vcombine.low %v1694_v25, %v1698_v11  ;;  %v1526_v11 = vld [vmem:[%s6555_s9 + $0x298] sm:$0xff] }
 0x2ff   :  { %3234 = vmatmul.mubr.bf16.gmra.mxu1 %v5526_v28  ;;  %3354 = vmatprep.subr.bf16.mxu0 %v5941_v22 }
 0x300   :  { %3302 = vmatpush1.bf16.msra.mxu1 %v4127_v26  ;;  %3329 = vmatprep.mubr.bf16.mxu1 %v5464_v30  ;;  %v1462_v30 = vld [vmem:[%s6555_s9 + $0x98] sm:$0xff] }
 0x301   :  { %3287 = vmatmul.mubr.bf16.gmra.mxu0 %v5528_v29  ;;  %3303 = vmatprep.subr.bf16.mxu1 %v4120_v5  ;;  %v4104_v41 = vcombine.high %v1462_v30, %v1466_v19  ;;  %v4103_v2 = vcombine.low %v1462_v30, %v1466_v19  ;;  %v1558_v26 = vld [vmem:[%s6555_s9 + $0x398] sm:$0xff]  ;;  %v4207_v5 = vcombine.low %v1566_v1, %v1570_v59 }
 0x302   :  { %3355 = vmatpush1.bf16.msra.mxu0 %v5950_v42  ;;  %3382 = vmatprep.mubr.bf16.mxu0 %v5466_v36  ;;  %v1590_v36 = vld [vmem:[%s6555_s9 + $0x498] sm:$0xff]  ;;  %v6071_v30 = vcombine.high %v1686_v44, %v1690_v23  ;;  %v4199_v19 = vcombine.low %v1558_v26, %v1562_v37 }
 0x303   :  { %3356 = vmatprep.subr.bf16.mxu0 %v5960_v43  ;;  %v5999_v13 = vcombine.high %v1590_v36, %v1594_v61  ;;  %v6008_v46 = vcombine.low %v1590_v36, %v1594_v61  ;;  %v1682_v36 = vld [vmem:[%s6555_s9 + $0x778] sm:$0xff] }
 0x304   :  { %3304 = vmatpush1.bf16.msra.mxu1 %v4119_v40  ;;  %v4200_v40 = vcombine.high %v1558_v26, %v1562_v37  ;;  %v1662_v1 = vld [vmem:[%s6555_s9 + $0x6d8] sm:$0xff] }
 0x305   :  { %3305 = vmatprep.subr.bf16.mxu1 %v4112_v34  ;;  %v1554_v34 = vld [vmem:[%s6555_s9 + $0x378] sm:$0xff] }
 0x306   :  { %3357 = vmatpush1.bf16.msra.mxu0 %v5972_v35  ;;  %v4192_v61 = vcombine.high %v1550_v24, %v1554_v34  ;;  %v4191_v56 = vcombine.low %v1550_v24, %v1554_v34  ;;  %v1666_v59 = vld [vmem:[%s6555_s9 + $0x6f8] sm:$0xff] }
 0x307   :  { %3358 = vmatprep.subr.bf16.mxu0 %v5981_v58  ;;  %v6125_v26 = vcombine.high %v1662_v1, %v1666_v59  ;;  %v1518_v24 = vld [vmem:[%s6555_s9 + $0x258] sm:$0xff] }
 0x308   :  { %3306 = vmatpush1.bf16.msra.mxu1 %v4111_v63  ;;  %v1678_v63 = vld [vmem:[%s6555_s9 + $0x758] sm:$0xff] }
 0x309   :  { %3307 = vmatprep.subr.bf16.mxu1 %v4104_v41  ;;  %v6080_v41 = vcombine.low %v1686_v44, %v1690_v23  ;;  %v6098_v9 = vcombine.low %v1678_v63, %v1682_v36  ;;  %v1658_v44 = vld [vmem:[%s6555_s9 + $0x6b8] sm:$0xff] }
 0x30a   :  { %3359 = vmatpush1.bf16.msra.mxu0 %v5990_v17  ;;  %v1522_v34 = vld [vmem:[%s6555_s9 + $0x278] sm:$0xff] }
 0x30b   :  { %3360 = vmatprep.subr.bf16.mxu0 %v5999_v13 }
 0x30c   :  { %3308 = vmatpush1.bf16.msra.mxu1 %v4103_v2  ;;  %v6089_v2 = vcombine.high %v1678_v63, %v1682_v36  ;;  %v1646_v36 = vld [vmem:[%s6555_s9 + $0x658] sm:$0xff] }
 0x30d   :  { %3309 = vmatprep.subr.bf16.mxu1 %v4096_v21  ;;  %v1674_v21 = vld [vmem:[%s6555_s9 + $0x738] sm:$0xff] }
 0x30e   :  { %3361 = vmatpush1.bf16.msra.mxu0 %v6008_v46  ;;  %v6107_v51 = vcombine.high %v1670_v10, %v1674_v21  ;;  %v6116_v25 = vcombine.low %v1670_v10, %v1674_v21  ;;  %v1514_v10 = vld [vmem:[%s6555_s9 + $0x238] sm:$0xff] }
 0x30f   :  { %3362 = vmatprep.subr.bf16.mxu0 %v6017_v18 }
 0x310   :  { %3310 = vmatpush1.bf16.msra.mxu1 %v4095_v45  ;;  %v1534_v45 = vld [vmem:[%s6555_s9 + $0x2d8] sm:$0xff] }
 0x311   :  { %3311 = vmatprep.subr.bf16.mxu1 %v4088_v12  ;;  %v4183_v12 = vcombine.low %v1542_v20, %v1546_v32  ;;  %v4175_v37 = vcombine.low %v1534_v45, %v1538_v4  ;;  %v4160_v20 = vcombine.high %v1518_v24, %v1522_v34 }
 0x312   :  { %3363 = vmatpush1.bf16.msra.mxu0 %v6026_v3 }
 0x313   :  { %3364 = vmatprep.subr.bf16.mxu0 %v6035_v39 }
 0x314   :  { %3312 = vmatpush1.bf16.msra.mxu1 %v4087_v7  ;;  %v4176_v7 = vcombine.high %v1534_v45, %v1538_v4  ;;  %v1638_v45 = vld [vmem:[%s6555_s9 + $0x618] sm:$0xff] }
 0x315   :  { %3313 = vmatprep.subr.bf16.mxu1 %v4208_v14  ;;  %v1530_v14 = vld [vmem:[%s6555_s9 + $0x2b8] sm:$0xff] }
 0x316   :  { %3365 = vmatpush1.bf16.msra.mxu0 %v6044_v15  ;;  %v4168_v23 = vcombine.high %v1526_v11, %v1530_v14  ;;  %v4167_v63 = vcombine.low %v1526_v11, %v1530_v14  ;;  %v1642_v4 = vld [vmem:[%s6555_s9 + $0x638] sm:$0xff] }
 0x317   :  { %3366 = vmatprep.subr.bf16.mxu0 %v6053_v38  ;;  %v4279_v11 = vcombine.low %v1638_v45, %v1642_v4 }
 0x318   :  { %3314 = vmatpush2.bf16.msra.mxu1 %v4207_v5  ;;  %v1654_v5 = vld [vmem:[%s6555_s9 + $0x698] sm:$0xff] }
 0x319   :  { %3315 = vmatprep.subr.bf16.mxu1 %v4200_v40  ;;  %v6134_v40 = vcombine.low %v1662_v1, %v1666_v59  ;;  %v4295_v32 = vcombine.low %v1654_v5, %v1658_v44  ;;  %v4280_v59 = vcombine.high %v1638_v45, %v1642_v4 }
 0x31a   :  { %3367 = vmatpush2.bf16.msra.mxu0 %v6062_v33 }
 0x31b   :  { %3368 = vmatprep.subr.bf16.mxu0 %v6071_v30 }
 0x31c   :  { %3316 = vmatpush2.bf16.msra.mxu1 %v4199_v19  ;;  %v4296_v19 = vcombine.high %v1654_v5, %v1658_v44 }
 0x31d   :  { %3317 = vmatprep.subr.bf16.mxu1 %v4192_v61  ;;  %v1650_v61 = vld [vmem:[%s6555_s9 + $0x678] sm:$0xff] }
 0x31e   :  { %3369 = vmatpush2.bf16.msra.mxu0 %v6080_v41  ;;  %v4288_v21 = vcombine.high %v1646_v36, %v1650_v61  ;;  %v4287_v1 = vcombine.low %v1646_v36, %v1650_v61 }
 0x31f   :  { %3370 = vmatprep.subr.bf16.mxu0 %v6089_v2 }
 0x320   :  { %3318 = vmatpush2.bf16.msra.mxu1 %v4191_v56  ;;  %v1510_v56 = vld [vmem:[%s6555_s9 + $0x218] sm:$0xff] }
 0x321   :  { %3319 = vmatprep.subr.bf16.mxu1 %v4184_v0  ;;  %v4159_v0 = vcombine.low %v1518_v24, %v1522_v34 }
 0x322   :  { %3371 = vmatpush2.bf16.msra.mxu0 %v6098_v9 }
 0x323   :  { %3372 = vmatprep.subr.bf16.mxu0 %v6107_v51 }
 0x324   :  { %3320 = vmatpush2.bf16.msra.mxu1 %v4183_v12  ;;  %v4152_v12 = vcombine.high %v1510_v56, %v1514_v10 }
 0x325   :  { %3321 = vmatprep.subr.bf16.mxu1 %v4176_v7  ;;  %v4151_v7 = vcombine.low %v1510_v56, %v1514_v10 }
 0x326   :  { %3373 = vmatpush2.bf16.msra.mxu0 %v6116_v25 }
 0x327   :  { %3374 = vmatprep.subr.bf16.mxu0 %v6125_v26 }
 0x328   :  { %3322 = vmatpush2.bf16.msra.mxu1 %v4175_v37 }
 0x329   :  { %3323 = vmatprep.subr.bf16.mxu1 %v4168_v23 }
 0x32a   :  { %3375 = vmatpush2.bf16.msra.mxu0 %v6134_v40 }
 0x32b   :  { %3376 = vmatprep.subr.bf16.mxu0 %v4296_v19 }
 0x32c   :  { %3324 = vmatpush2.bf16.msra.mxu1 %v4167_v63 }
 0x32d   :  { %3325 = vmatprep.subr.bf16.mxu1 %v4160_v20 }
 0x32e   :  { %3377 = vmatpush2.bf16.msra.mxu0 %v4295_v32 }
 0x32f   :  { %3378 = vmatprep.subr.bf16.mxu0 %v4288_v21 }
 0x330   :  { %3326 = vmatpush2.bf16.msra.mxu1 %v4159_v0 }
 0x331   :  { %3327 = vmatprep.subr.bf16.mxu1 %v4152_v12 }
 0x332   :  { %3379 = vmatpush2.bf16.msra.mxu0 %v4287_v1 }
 0x333   :  { %3380 = vmatprep.subr.bf16.mxu0 %v4280_v59 }
 0x334   :  { %3328 = vmatpush2.bf16.msra.mxu1 %v4151_v7 }
 0x335   :  { %4337 = vmatprep.subr.bf16.mxu1 %v5902_v27 }
 0x336   :  { %3381 = vmatpush2.bf16.msra.mxu0 %v4279_v11 }
 0x337   :  { %3330 = vmatmul.mubr.bf16.vlgmr.msra.gmra.mxu1 %v5468_v60  ;;  %v3013_v60 = vpop.f32.mrf.mxu1 }
 0x338   :  { %3339 = vmatprep.mubr.bf16.mxu1 %v5499_v49  ;;  %4353 = vmatpush1.bf16.msra.mxu1 %v5910_v8  ;;  %v3066_v49 = vpop.f32.mrf.mxu0 }
 0x339   :  { %3383 = vmatmul.mubr.bf16.vlgmr.msra.gmra.mxu0 %v5481_v52  ;;  %4338 = vmatprep.subr.bf16.mxu1 %v5920_v62  ;;  %v3015_v52 = vpop.f32.mrf.mxu1  ;;  %v6212_v36 = vadd.f32 %v3066_v49, %v3013_v60 }
 0x33b   :  { %v3485_v12 = vmul.f32 %v6212_v36, %v6212_v36 }
 0x33c   :  { %4354 = vmatpush1.bf16.msra.mxu1 %v5932_v16 }
 0x33d   :  { %4339 = vmatprep.subr.bf16.mxu1 %v5941_v22 }
 0x33f   :  { %3340 = vmatmul.mubr.bf16.gmra.mxu1 %v5526_v28  ;;  %v3068_v28 = vpop.f32.mrf.mxu0 }
 0x340   :  { %4355 = vmatpush1.bf16.msra.mxu1 %v5950_v42  ;;  %3392 = vmatprep.mubr.bf16.mxu1 %v5507_v31  ;;  %v3017_v31 = vpop.f32.mrf.mxu1  ;;  %v6216_v20 = vadd.f32 %v3068_v28, %v3015_v52 }
 0x341   :  { %4340 = vmatprep.subr.bf16.mxu1 %v5960_v43  ;;  %v3070_v8 = vpop.f32.mrf.mxu0 }
 0x342   :  { %v3019_v27 = vpop.f32.mrf.mxu1  ;;  %v6206_v34 = vadd.f32 %v3070_v8, %v3017_v31 }
 0x343   :  { %v3072_v16 = vpop.f32.mrf.mxu0 }
 0x344   :  { %4356 = vmatpush1.bf16.msra.mxu1 %v5972_v35  ;;  %v3023_v62 = vpop.f32.mrf.mxu1  ;;  %v6210_v63 = vadd.f32 %v3072_v16, %v3019_v27  ;;  %v3493_v10 = vmul.f32 %v6206_v34, %v6206_v34  ;;  %v3486_v27 = vmul.f32 %v6216_v20, %v6216_v20 }
 0x345   :  { %4341 = vmatprep.subr.bf16.mxu1 %v5981_v58  ;;  %v3076_v42 = vpop.f32.mrf.mxu0 }
 0x346   :  { %v3025_v22 = vpop.f32.mrf.mxu1  ;;  %v6214_v61 = vadd.f32 %v3076_v42, %v3023_v62  ;;  %v3414_v45 = vadd.f32 %v6210_v63, %v6216_v20  ;;  %v3517_v60 = vadd.f32 %v3493_v10, %v3485_v12  ;;  %v3494_v52 = vmul.f32 %v6210_v63, %v6210_v63 }
 0x347   :  { %v3078_v35 = vpop.f32.mrf.mxu0 }
 0x348   :  { %4357 = vmatpush1.bf16.msra.mxu1 %v5990_v17  ;;  %v3027_v43 = vpop.f32.mrf.mxu1  ;;  %6589 = vst [vmem:[#allocation3_spill] sm:$0xff] %v6214_v61 }
 0x349   :  { %4342 = vmatprep.subr.bf16.mxu1 %v5999_v13  ;;  %v3080_v17 = vpop.f32.mrf.mxu0 }
 0x34a   :  { %v3029_v58 = vpop.f32.mrf.mxu1 }
 0x34c   :  { %4358 = vmatpush1.bf16.msra.mxu1 %v6008_v46  ;;  %v3082_v46 = vpop.f32.mrf.mxu0 }
 0x34d   :  { %4343 = vmatprep.subr.bf16.mxu1 %v6017_v18  ;;  %v6228_v4 = vadd.f32 %v3082_v46, %v3029_v58  ;;  %v3526_v46 = vadd.f32 %v3494_v52, %v3486_v27 }
 0x34f   :  { %6592 = vst [vmem:[#allocation6_spill] sm:$0xff] %v6228_v4 }
 0x350   :  { %4359 = vmatpush1.bf16.msra.mxu1 %v6026_v3 }
 0x351   :  { %4344 = vmatprep.subr.bf16.mxu1 %v6035_v39 }
 0x354   :  { %4360 = vmatpush1.bf16.msra.mxu1 %v6044_v15 }
 0x355   :  { %4345 = vmatprep.subr.bf16.mxu1 %v6053_v38 }
 0x358   :  { %4361 = vmatpush2.bf16.msra.mxu1 %v6062_v33 }
 0x359   :  { %4346 = vmatprep.subr.bf16.mxu1 %v6071_v30 }
 0x35c   :  { %4362 = vmatpush2.bf16.msra.mxu1 %v6080_v41 }
 0x35d   :  { %4347 = vmatprep.subr.bf16.mxu1 %v6089_v2 }
 0x360   :  { %4363 = vmatpush2.bf16.msra.mxu1 %v6098_v9 }
 0x361   :  { %4348 = vmatprep.subr.bf16.mxu1 %v6107_v51 }
 0x364   :  { %4364 = vmatpush2.bf16.msra.mxu1 %v6116_v25 }
 0x365   :  { %4349 = vmatprep.subr.bf16.mxu1 %v6125_v26 }
 0x368   :  { %4365 = vmatpush2.bf16.msra.mxu1 %v6134_v40 }
 0x369   :  { %4350 = vmatprep.subr.bf16.mxu1 %v4296_v19 }
 0x36c   :  { %4366 = vmatpush2.bf16.msra.mxu1 %v4295_v32  ;;  %v6218_v32 = vadd.f32 %v3078_v35, %v3025_v22 }
 0x36d   :  { %4351 = vmatprep.subr.bf16.mxu1 %v4288_v21  ;;  %v6224_v21 = vadd.f32 %v3080_v17, %v3027_v43 }
 0x36e   :  { %6590 = vst [vmem:[#allocation4_spill] sm:$0xff] %v6218_v32  ;;  %v3415_v7 = vadd.f32 %v3414_v45, %v6218_v32  ;;  %v3502_v22 = vmul.f32 %v6218_v32, %v6218_v32  ;;  %v3510_v45 = vmul.f32 %v6228_v4, %v6228_v4 }
 0x36f   :  { %6591 = vst [vmem:[#allocation5_spill] sm:$0xff] %v6224_v21  ;;  %v3509_v31 = vmul.f32 %v6224_v21, %v6224_v21 }
 0x370   :  { %4367 = vmatpush2.bf16.msra.mxu1 %v4287_v1  ;;  %v3405_v1 = vadd.f32 %v6206_v34, %v6212_v36  ;;  %v3416_v8 = vadd.f32 %v3415_v7, %v6228_v4 }
 0x371   :  { %4352 = vmatprep.subr.bf16.mxu1 %v4280_v59  ;;  %v3501_v59 = vmul.f32 %v6214_v61, %v6214_v61 }
 0x372   :  { %v3406_v49 = vadd.f32 %v3405_v1, %v6214_v61 }
 0x373   :  { %v3518_v16 = vadd.f32 %v3517_v60, %v3501_v59 }
 0x374   :  { %4368 = vmatpush2.bf16.msra.mxu1 %v4279_v11  ;;  %v3407_v42 = vadd.f32 %v3406_v49, %v6224_v21 }
 0x375   :  { %v3519_v10 = vadd.f32 %v3518_v16, %v3509_v31 }
 0x376   :  { %v3119_v13 = vpop.f32.mrf.mxu1 }
 0x377   :  { %3393 = vmatmul.mubr.bf16.vlgmr.msra.gmra.mxu1 %v5528_v29 }
 0x378   :  { %v3121_v18 = vpop.f32.mrf.mxu1 }
 0x379   :  { %v3172_v3 = vpop.f32.mrf.mxu0 }
 0x37a   :  { %v3123_v29 = vpop.f32.mrf.mxu1  ;;  %v6258_v12 = vadd.f32 %v3172_v3, %v3119_v13 }
 0x37b   :  { %v3174_v39 = vpop.f32.mrf.mxu0 }
 0x37c   :  { %v3125_v15 = vpop.f32.mrf.mxu1  ;;  %v6250_v43 = vadd.f32 %v3174_v39, %v3121_v18  ;;  %v3527_v18 = vadd.f32 %v3526_v46, %v3502_v22 }
 0x37d   :  { %v3176_v38 = vpop.f32.mrf.mxu0 }
 0x37e   :  { %v3129_v33 = vpop.f32.mrf.mxu1  ;;  %v6252_v35 = vadd.f32 %v3176_v38, %v3123_v29  ;;  %v3408_v29 = vrot.slane %v3407_v42, 4  ;;  %v3488_v39 = vmul.f32 %v6250_v43, %v6250_v43  ;;  %v3528_v7 = vadd.f32 %v3527_v18, %v3510_v45 }
 0x37f   :  { %v3178_v30 = vpop.f32.mrf.mxu0 }
 0x380   :  { %v3131_v41 = vpop.f32.mrf.mxu1  ;;  %v6245_v62 = vadd.f32 %v3178_v30, %v3125_v15  ;;  %v3417_v30 = vrot.slane %v3416_v8, 4 }
 0x381   :  { %v3182_v2 = vpop.f32.mrf.mxu0 }
 0x382   :  { %v3133_v9 = vpop.f32.mrf.mxu1  ;;  %v3496_v1 = vmul.f32 %v6245_v62, %v6245_v62  ;;  %v6262_v59 = vadd.f32 %v3182_v2, %v3129_v33  ;;  %v3520_v2 = vrot.slane %v3519_v10, 4  ;;  %v3432_v60 = vadd.f32 %v6245_v62, %v6250_v43 }
 0x383   :  { %v3184_v51 = vpop.f32.mrf.mxu0 }
 0x384   :  { %v3135_v25 = vpop.f32.mrf.mxu1  ;;  %v6254_v58 = vadd.f32 %v3184_v51, %v3131_v41  ;;  %6594 = vst [vmem:[#allocation8_spill] sm:$0xff] %v6262_v59  ;;  %v3423_v41 = vadd.f32 %v6252_v35, %v6258_v12  ;;  %v3495_v51 = vmul.f32 %v6252_v35, %v6252_v35  ;;  %v3544_v49 = vadd.f32 %v3496_v1, %v3488_v39 }
 0x385   :  { %v3186_v14 = vpop.f32.mrf.mxu0 }
 0x386   :  { %6593 = vst [vmem:[#allocation7_spill] sm:$0xff] %v6254_v58  ;;  %v3504_v13 = vmul.f32 %v6254_v58, %v6254_v58  ;;  %v6274_v3 = vadd.f32 %v3186_v14, %v3133_v9  ;;  %v3424_v31 = vadd.f32 %v3423_v41, %v6262_v59  ;;  %v3503_v9 = vmul.f32 %v6262_v59, %v6262_v59 }
 0x387   :  { %v3188_v37 = vpop.f32.mrf.mxu0  ;;  %v3433_v14 = vadd.f32 %v3432_v60, %v6254_v58 }
 0x388   :  { %v6266_v38 = vadd.f32 %v3188_v37, %v3135_v25  ;;  %6596 = vst [vmem:[#allocation10_spill] sm:$0xff] %v6274_v3  ;;  %v3418_v25 = vadd.f32 %v3417_v30, %v3416_v8  ;;  %v3487_v37 = vmul.f32 %v6258_v12, %v6258_v12  ;;  %v3409_v8 = vadd.f32 %v3408_v29, %v3407_v42 }
 0x389   :  { %v3545_v45 = vadd.f32 %v3544_v49, %v3504_v13  ;;  %v3425_v30 = vadd.f32 %v3424_v31, %v6274_v3  ;;  %v3511_v1 = vmul.f32 %v6274_v3, %v6274_v3  ;;  %v3529_v29 = vrot.slane %v3528_v7, 4 }
 0x38a   :  { %6595 = vst [vmem:[#allocation9_spill] sm:$0xff] %v6266_v38  ;;  %v3512_v16 = vmul.f32 %v6266_v38, %v6266_v38  ;;  %v3535_v46 = vadd.f32 %v3495_v51, %v3487_v37  ;;  %v3434_v18 = vadd.f32 %v3433_v14, %v6266_v38  ;;  %v3419_v42 = vrot.slane %v3418_v25, 2 }
 0x38c   :  { %v3536_v60 = vadd.f32 %v3535_v46, %v3503_v9  ;;  %v3546_v37 = vadd.f32 %v3545_v45, %v3512_v16  ;;  %v3420_v4 = vadd.f32 %v3419_v42, %v3418_v25 }
 0x38e   :  { %v3547_v14 = vrot.slane %v3546_v37, 4 }
 0x3b7   :  { %v6194_v26 = vpop.f32.mrf.mxu1 }
 0x3b9   :  { %v6196_v5 = vpop.f32.mrf.mxu1  ;;  %v6198_v44 = vpop.f32.mrf.mxu0 }
 0x3ba   :  { %v6309_v49 = vadd.f32 %v6198_v44, %v6194_v26 }
 0x3bb   :  { %v6200_v23 = vpop.f32.mrf.mxu1  ;;  %v6202_v40 = vpop.f32.mrf.mxu0 }
 0x3bc   :  { %v6297_v39 = vadd.f32 %v6202_v40, %v6196_v5  ;;  %v3426_v40 = vrot.slane %v3425_v30, 4  ;;  %v3489_v16 = vmul.f32 %v6309_v49, %v6309_v49 }
 0x3bd   :  { %v6204_v24 = vpop.f32.mrf.mxu1  ;;  %v6208_v19 = vpop.f32.mrf.mxu0 }
 0x3be   :  { %v6301_v41 = vadd.f32 %v6208_v19, %v6200_v23 }
 0x3bf   :  { %v6220_v56 = vpop.f32.mrf.mxu1  ;;  %v3284_v0 = vpop.f32.mrf.mxu0 }
 0x3c0   :  { %v6289_v22 = vadd.f32 %v3284_v0, %v6204_v24  ;;  %6598 = vst [vmem:[#allocation12_spill] sm:$0xff] %v6301_v41  ;;  %v3521_v0 = vadd.f32 %v3520_v2, %v3519_v10  ;;  %v3537_v10 = vadd.f32 %v3536_v60, %v3511_v1  ;;  %v3490_v2 = vmul.f32 %v6297_v39, %v6297_v39 }
 0x3c1   :  { %v3237_v11 = vpop.f32.mrf.mxu1  ;;  %v3288_v28 = vpop.f32.mrf.mxu0  ;;  %v3441_v26 = vadd.f32 %v6301_v41, %v6309_v49  ;;  %v3497_v44 = vmul.f32 %v6301_v41, %v6301_v41 }
 0x3c2   :  { %6597 = vst [vmem:[#allocation11_spill] sm:$0xff] %v6289_v22  ;;  %v3498_v5 = vmul.f32 %v6289_v22, %v6289_v22  ;;  %v3450_v23 = vadd.f32 %v6289_v22, %v6297_v39  ;;  %v6316_v19 = vadd.f32 %v3288_v28, %v6220_v56 }
 0x3c3   :  { %v3239_v17 = vpop.f32.mrf.mxu1  ;;  %v3290_v15 = vpop.f32.mrf.mxu0 }
 0x3c4   :  { %v6303_v51 = vadd.f32 %v3290_v15, %v3237_v11  ;;  %6600 = vst [vmem:[#allocation14_spill] sm:$0xff] %v6316_v19  ;;  %v3435_v15 = vrot.slane %v3434_v18, 4  ;;  %v3562_v46 = vadd.f32 %v3498_v5, %v3490_v2  ;;  %v3442_v45 = vadd.f32 %v3441_v26, %v6316_v19 }
 0x3c5   :  { %v3241_v33 = vpop.f32.mrf.mxu1  ;;  %v3292_v52 = vpop.f32.mrf.mxu0  ;;  %v3505_v1 = vmul.f32 %v6316_v19, %v6316_v19  ;;  %v3522_v26 = vrot.slane %v3521_v0, 2 }
 0x3c6   :  { %6599 = vst [vmem:[#allocation13_spill] sm:$0xff] %v6303_v51  ;;  %v3451_v31 = vadd.f32 %v3450_v23, %v6303_v51  ;;  %v3506_v9 = vmul.f32 %v6303_v51, %v6303_v51  ;;  %v6329_v56 = vadd.f32 %v3292_v52, %v3239_v17  ;;  %v3410_v17 = vrot.slane %v3409_v8, 2 }
 0x3c7   :  { %v3294_v24 = vpop.f32.mrf.mxu0  ;;  %v3427_v52 = vadd.f32 %v3426_v40, %v3425_v30  ;;  %v3538_v23 = vrot.slane %v3537_v10, 4  ;;  %v3436_v38 = vadd.f32 %v3435_v15, %v3434_v18  ;;  %v3548_v51 = vadd.f32 %v3547_v14, %v3546_v37 }
 0x3c8   :  { %v6318_v11 = vadd.f32 %v3294_v24, %v3241_v33  ;;  %6602 = vst [vmem:[#allocation16_spill] sm:$0xff] %v6329_v56  ;;  %v3530_v33 = vadd.f32 %v3529_v29, %v3528_v7  ;;  %v3553_v7 = vadd.f32 %v3497_v44, %v3489_v16  ;;  %v3563_v29 = vadd.f32 %v3562_v46, %v3506_v9 }
 0x3c9   :  { %v3443_v3 = vadd.f32 %v3442_v45, %v6329_v56  ;;  %v3513_v5 = vmul.f32 %v6329_v56, %v6329_v56  ;;  %v3411_v59 = vadd.f32 %v3410_v17, %v3409_v8  ;;  %v3428_v30 = vrot.slane %v3427_v52, 2 }
 0x3ca   :  { %6601 = vst [vmem:[#allocation15_spill] sm:$0xff] %v6318_v11  ;;  %v3452_v24 = vadd.f32 %v3451_v31, %v6318_v11  ;;  %v3514_v60 = vmul.f32 %v6318_v11, %v6318_v11  ;;  %v3531_v21 = vrot.slane %v3530_v33, 2  ;;  %v3554_v19 = vadd.f32 %v3553_v7, %v3505_v1 }
 0x3cb   :  { %v3539_v40 = vadd.f32 %v3538_v23, %v3537_v10  ;;  %v3437_v18 = vrot.slane %v3436_v38, 2  ;;  %v3444_v15 = vrot.slane %v3443_v3, 4  ;;  %v3523_v16 = vadd.f32 %v3522_v26, %v3521_v0 }
 0x3cc   :  { %v3453_v58 = vrot.slane %v3452_v24, 4  ;;  %v3564_v11 = vadd.f32 %v3563_v29, %v3514_v60  ;;  %v3555_v44 = vadd.f32 %v3554_v19, %v3513_v5  ;;  %v3421_v46 = vrot.slane %v3420_v4, 1 }
 0x3cd   :  { %v3532_v45 = vadd.f32 %v3531_v21, %v3530_v33  ;;  %v3549_v56 = vrot.slane %v3548_v51, 2  ;;  %v3412_v42 = vrot.slane %v3411_v59, 1  ;;  %v3429_v37 = vadd.f32 %v3428_v30, %v3427_v52 }
 0x3ce   :  { %v3454_v61 = vadd.f32 %v3453_v58, %v3452_v24  ;;  %v3565_v25 = vrot.slane %v3564_v11, 4  ;;  %v3540_v14 = vrot.slane %v3539_v40, 2  ;;  %v3438_v1 = vadd.f32 %v3437_v18, %v3436_v38 }
 0x3cf   :  { %v3445_v7 = vadd.f32 %v3444_v15, %v3443_v3  ;;  %v3556_v60 = vrot.slane %v3555_v44, 4  ;;  %v3524_v17 = vrot.slane %v3523_v16, 1  ;;  %v3422_v10 = vadd.f32 %v3421_v46, %v3420_v4 }
 0x3d0   :  { %v3533_v23 = vrot.slane %v3532_v45, 1  ;;  %v3550_v29 = vadd.f32 %v3549_v56, %v3548_v51  ;;  %v3455_v5 = vrot.slane %v3454_v61, 2  ;;  %v3566_v0 = vadd.f32 %v3565_v25, %v3564_v11 }
 0x3d1   :  { %v3413_v26 = vadd.f32 %v3412_v42, %v3411_v59  ;;  %v3430_v21 = vrot.slane %v3429_v37, 1  ;;  %v3541_v33 = vadd.f32 %v3540_v14, %v3539_v40  ;;  %v3439_v22 = vrot.slane %v3438_v1, 1 }
 0x3d2   :  { %v3446_v58 = vrot.slane %v3445_v7, 2  ;;  %v3557_v24 = vadd.f32 %v3556_v60, %v3555_v44  ;;  %v3525_v52 = vadd.f32 %v3524_v17, %v3523_v16  ;;  %v6344_v30 = vmul.f32 0.125, %v3422_v10 }
 0x3d3   :  { %v3534_v38 = vadd.f32 %v3533_v23, %v3532_v45  ;;  %v3551_v3 = vrot.slane %v3550_v29, 1  ;;  %v3456_v15 = vadd.f32 %v3455_v5, %v3454_v61  ;;  %v3567_v4 = vrot.slane %v3566_v0, 2 }
 0x3d4   :  { %v6349_v56 = vmul.f32 0.125, %v3413_v26  ;;  %v3431_v59 = vadd.f32 %v3430_v21, %v3429_v37  ;;  %v3542_v11 = vrot.slane %v3541_v33, 1  ;;  %v3440_v40 = vadd.f32 %v3439_v22, %v3438_v1 }
 0x3d5   :  { %v3447_v46 = vadd.f32 %v3446_v58, %v3445_v7  ;;  %v3558_v25 = vrot.slane %v3557_v24, 2  ;;  %v6356_v42 = vmul.f32 0.125, %v3525_v52  ;;  %v6358_v61 = vmul.f32 0.125, %v3534_v38 }
 0x3d6   :  { %v3552_v14 = vadd.f32 %v3551_v3, %v3550_v29  ;;  %v3457_v37 = vrot.slane %v3456_v15, 1  ;;  %v3568_v60 = vadd.f32 %v3567_v4, %v3566_v0  ;;  %v3543_v1 = vadd.f32 %v3542_v11, %v3541_v33 }
 0x3d7   :  { %v6371_v7 = vmul.f32 0.125, %v3440_v40  ;;  %v3448_v10 = vrot.slane %v3447_v46, 1  ;;  %v3559_v23 = vadd.f32 %v3558_v25, %v3557_v24 }
 0x3d8   :  { %v3569_v21 = vrot.slane %v3568_v60, 1 }
 0x3d9   :  { %v3449_v4 = vadd.f32 %v3448_v10, %v3447_v46 }
 0x3f7   :  { %v6281_v27 = vpop.f32.mrf.mxu1 }
 0x3f9   :  { %v6305_v13 = vpop.f32.mrf.mxu1  ;;  %v3384_v31 = vpop.f32.mrf.mxu0 }
 0x3fa   :  { %v6352_v44 = vadd.f32 %v3384_v31, %v6281_v27  ;;  %v6369_v31 = vmul.f32 0.125, %v3431_v59 }
 0x3fb   :  { %v6331_v28 = vpop.f32.mrf.mxu1  ;;  %v3386_v32 = vpop.f32.mrf.mxu0 }
 0x3fc   :  { %v6365_v22 = vadd.f32 %v3386_v32, %v6305_v13  ;;  %v3491_v29 = vmul.f32 %v6352_v44, %v6352_v44 }
 0x3fd   :  { %v3337_v2 = vpop.f32.mrf.mxu1  ;;  %v3388_v19 = vpop.f32.mrf.mxu0 }
 0x3fe   :  { %v6347_v51 = vadd.f32 %v3388_v19, %v6331_v28  ;;  %v6362_v28 = vmul.f32 %v6344_v30, %v6344_v30  ;;  %v3592_v19 = vmul.f32 0.125, %v3552_v14  ;;  %v3492_v33 = vmul.f32 %v6365_v22, %v6365_v22 }
 0x3ff   :  { %v3341_v9 = vpop.f32.mrf.mxu1  ;;  %v3390_v18 = vpop.f32.mrf.mxu0 }
 0x400   :  { %v6354_v16 = vadd.f32 %v3390_v18, %v3337_v2  ;;  %v3499_v27 = vmul.f32 %v6347_v51, %v6347_v51  ;;  %v3459_v5 = vadd.f32 %v6347_v51, %v6352_v44 }
 0x401   :  { %v3343_v8 = vpop.f32.mrf.mxu1 }
 0x402   :  { %v3500_v32 = vmul.f32 %v6354_v16, %v6354_v16  ;;  %v3571_v58 = vadd.f32 %v3499_v27, %v3491_v29  ;;  %v3468_v52 = vadd.f32 %v6354_v16, %v6365_v22  ;;  %v3600_v27 = vmul.f32 %v6371_v7, %v6371_v7 }
 0x403   :  { %v3345_v41 = vpop.f32.mrf.mxu1 }
 0x404   :  { %v3580_v59 = vadd.f32 %v3500_v32, %v3492_v33 }
 0x405   :  { %v3347_v45 = vpop.f32.mrf.mxu1 }
 0x437   :  { %v3394_v2 = vpop.f32.mrf.mxu1 }
 0x438   :  { %v6373_v17 = vadd.f32 %v3394_v2, %v3341_v9  ;;  %v3458_v9 = vadd.f32 %v3457_v37, %v3456_v15 }
 0x439   :  { %v3396_v13 = vpop.f32.mrf.mxu1 }
 0x43a   :  { %v3507_v0 = vmul.f32 %v6373_v17, %v6373_v17  ;;  %v6383_v26 = vadd.f32 %v3396_v13, %v3343_v8  ;;  %v3460_v38 = vadd.f32 %v3459_v5, %v6373_v17  ;;  %v3560_v8 = vrot.slane %v3559_v23, 1 }
 0x43b   :  { %v3398_v24 = vpop.f32.mrf.mxu1  ;;  %v6402_v2 = vmul.f32 0.125, %v3458_v9  ;;  %v3591_v5 = vmul.f32 0.125, %v3543_v1 }
 0x43c   :  { %6603 = vst [vmem:[#allocation17_spill] sm:$0xff] %v6383_v26  ;;  %v3508_v3 = vmul.f32 %v6383_v26, %v6383_v26  ;;  %v6392_v18 = vadd.f32 %v3398_v24, %v3345_v41  ;;  %v3572_v15 = vadd.f32 %v3571_v58, %v3507_v0  ;;  %v3469_v40 = vadd.f32 %v3468_v52, %v6383_v26 }
 0x43d   :  { %v3400_v11 = vpop.f32.mrf.mxu1  ;;  %v3570_v41 = vadd.f32 %v3569_v21, %v3568_v60  ;;  %v3599_v0 = vmul.f32 %v6369_v31, %v6369_v31  ;;  %v3561_v33 = vadd.f32 %v3560_v8, %v3559_v23  ;;  %v3597_v60 = vmul.f32 %v6349_v56, %v6349_v56 }
 0x43e   :  { %6604 = vst [vmem:[#allocation18_spill] sm:$0xff] %v6392_v18  ;;  %v3461_v25 = vadd.f32 %v3460_v38, %v6392_v18  ;;  %v3515_v14 = vmul.f32 %v6392_v18, %v6392_v18  ;;  %v6398_v37 = vadd.f32 %v3400_v11, %v3347_v45  ;;  %v3581_v46 = vadd.f32 %v3580_v59, %v3508_v3 }
 0x43f   :  { %v6409_v45 = vmul.f32 0.125, %v3449_v4  ;;  %v3608_v21 = vsub.f32 %v3592_v19, %v3600_v27  ;;  %v3594_v38 = vmul.f32 0.125, %v3570_v41  ;;  %v3602_v3 = vmul.f32 %v6402_v2, %v6402_v2 }
 0x440   :  { %6605 = vst [vmem:[#allocation19_spill] sm:$0xff] %v6398_v37  ;;  %v3462_v10 = vrot.slane %v3461_v25, 4  ;;  %v3573_v29 = vadd.f32 %v3572_v15, %v3515_v14  ;;  %v3470_v32 = vadd.f32 %v3469_v40, %v6398_v37  ;;  %v3516_v13 = vmul.f32 %v6398_v37, %v6398_v37 }
 0x441   :  { %v3606_v4 = vsub.f32 %v6358_v61, %v6362_v28  ;;  %v3607_v23 = vsub.f32 %v3591_v5, %v3599_v0  ;;  %v3593_v8 = vmul.f32 0.125, %v3561_v33  ;;  %v3601_v40 = vmul.f32 %v6409_v45, %v6409_v45 }
 0x442   :  { %v3463_v58 = vadd.f32 %v3462_v10, %v3461_v25  ;;  %v3574_v24 = vrot.slane %v3573_v29, 4  ;;  %v3471_v9 = vrot.slane %v3470_v32, 4  ;;  %v3582_v52 = vadd.f32 %v3581_v46, %v3516_v13 }
 0x443   :  { %v3605_v27 = vsub.f32 %v6356_v42, %v3597_v60  ;;  %v3616_v41 = vmax.f32 %v3608_v21, 0.0  ;;  %v3610_v10 = vsub.f32 %v3594_v38, %v3602_v3  ;;  %v3615_v37 = vmax.f32 %v3607_v23, 0.0 }
 0x444   :  { %v3464_v59 = vrot.slane %v3463_v58, 2  ;;  %v3575_v1 = vadd.f32 %v3574_v24, %v3573_v29  ;;  %v3472_v15 = vadd.f32 %v3471_v9, %v3470_v32  ;;  %v3583_v11 = vrot.slane %v3582_v52, 4 }
 0x445   :  { %v3614_v9 = vmax.f32 %v3606_v4, 0.0  ;;  %v3609_v61 = vsub.f32 %v3593_v8, %v3601_v40  ;;  %v3613_v18 = vmax.f32 %v3605_v27, 0.0  ;;  %v3623_v38 = vadd.f32 1e-05, %v3615_v37 }
 0x446   :  { %v3465_v25 = vadd.f32 %v3464_v59, %v3463_v58  ;;  %v3576_v14 = vrot.slane %v3575_v1, 2  ;;  %v3473_v46 = vrot.slane %v3472_v15, 2  ;;  %v3584_v19 = vadd.f32 %v3583_v11, %v3582_v52 }
 0x447   :  { %v3624_v58 = vadd.f32 1e-05, %v3616_v41  ;;  %v3618_v59 = vmax.f32 %v3610_v10, 0.0  ;;  %v3622_v21 = vadd.f32 1e-05, %v3614_v9  ;;  %v3617_v3 = vmax.f32 %v3609_v61, 0.0 }
 0x448   :  { %v3466_v13 = vrot.slane %v3465_v25, 1  ;;  %v3577_v29 = vadd.f32 %v3576_v14, %v3575_v1  ;;  %v3474_v32 = vadd.f32 %v3473_v46, %v3472_v15  ;;  %v3585_v24 = vrot.slane %v3584_v19, 2 }
 0x449   :  { %v3621_v23 = vadd.f32 1e-05, %v3613_v18  ;;  %4544 = vrsqrt.f32 %v3624_v58  ;;  %v3626_v8 = vadd.f32 1e-05, %v3618_v59  ;;  %v3625_v46 = vadd.f32 1e-05, %v3617_v3 }
 0x44a   :  { %v3467_v28 = vadd.f32 %v3466_v13, %v3465_v25  ;;  %v3578_v5 = vrot.slane %v3577_v29, 1  ;;  %v3475_v0 = vrot.slane %v3474_v32, 1  ;;  %v3586_v33 = vadd.f32 %v3585_v24, %v3584_v19 }
 0x44b   :  { %4546 = vrsqrt.f32 %v3622_v21 }
 0x44c   :  { %v6420_v26 = vmul.f32 0.125, %v3467_v28  ;;  %v3579_v52 = vadd.f32 %v3578_v5, %v3577_v29  ;;  %v3476_v42 = vadd.f32 %v3475_v0, %v3474_v32  ;;  %v3587_v60 = vrot.slane %v3586_v33, 1 }
 0x44d   :  { %4548 = vrsqrt.f32 %v3623_v38 }
 0x44e   :  { %v3595_v1 = vmul.f32 0.125, %v3579_v52  ;;  %v3603_v15 = vmul.f32 %v6420_v26, %v6420_v26  ;;  %v3484_v11 = vmul.f32 0.125, %v3476_v42  ;;  %v3588_v4 = vadd.f32 %v3587_v60, %v3586_v33 }
 0x44f   :  { %4550 = vrsqrt.f32 %v3621_v23  ;;  %v3727_v23 = vsub.s32 7, %v4946_v47 }
 0x450   :  { %v3611_v40 = vsub.f32 %v3595_v1, %v3603_v15  ;;  %v3596_v25 = vmul.f32 0.125, %v3588_v4  ;;  %v3604_v14 = vmul.f32 %v3484_v11, %v3484_v11  ;;  %4552 = vrsqrt.f32 %v3626_v8  ;;  %v3403_v15 = vld [vmem:[%s6558_s10] sm:$0xff] }
 0x451   :  { %4554 = vrsqrt.f32 %v3625_v46 }
 0x452   :  { %v3619_v19 = vmax.f32 %v3611_v40, 0.0  ;;  %v3612_v27 = vsub.f32 %v3596_v25, %v3604_v14 }
 0x454   :  { %v3627_v37 = vadd.f32 1e-05, %v3619_v19  ;;  %v3620_v41 = vmax.f32 %v3612_v27, 0.0 }
 0x456   :  { %v3628_v10 = vadd.f32 1e-05, %v3620_v41  ;;  %4556 = vrsqrt.f32 %v3627_v37  ;;  %v4545_v13 = vpop.eup %4544  ;;  %v6606_v37 = vld [vmem:[#allocation2_spill] sm:$0xff] }
 0x458   :  { %4558 = vrsqrt.f32 %v3628_v10  ;;  %v4547_v18 = vpop.eup %4546 }
 0x45a   :  { %v4549_v29 = vpop.eup %4548 }
 0x45b   :  { %v3646_v24 = vcombine.low %v4549_v29, %v4545_v13 }
 0x45c   :  { %v4551_v32 = vpop.eup %4550 }
 0x45d   :  { %v4553_v9 = vpop.eup %4552  ;;  %v3645_v61 = vcombine.low %v4551_v32, %v4547_v18  ;;  %v3662_v0 = vrot.slane %v3646_v24, %v5060_v57 }
 0x45e   :  { %v4555_v28 = vpop.eup %4554 }
 0x45f   :  { %v3647_v33 = vcombine.low %v4555_v28, %v4553_v9  ;;  %v3655_v59 = vrot.slane %v3645_v61, %v5060_v57 }
 0x461   :  { %v3677_v42 = vcombine.low %v3655_v59, %v3662_v0  ;;  %v3669_v60 = vrot.slane %v3647_v33, %v5060_v57 }
 0x463   :  { %v4557_v5 = vpop.eup %4556  ;;  %v3685_v3 = vrot.slane %v3677_v42, %v5060_v57 }
 0x465   :  { %v4559_v58 = vpop.eup %4558 }
 0x466   :  { %v3648_v52 = vcombine.low %v4557_v5, %v4559_v58 }
 0x468   :  { %v3676_v21 = vrot.slane %v3648_v52, %v5060_v57 }
 0x46a   :  { %v3678_v38 = vcombine.low %v3669_v60, %v3676_v21 }
 0x46c   :  { %v3692_v1 = vrot.slane %v3678_v38, %v5060_v57 }
 0x46e   :  { %v3693_v4 = vcombine.low %v3685_v3, %v3692_v1 }
 0x470   :  { %v3695_v8 = vmul.f32 %v3693_v4, %v3403_v15  ;;  %v6608_v4 = vld [vmem:[#allocation11_spill] sm:$0xff] }
 0x472   :  { %v3700_v40 = vrot.slane %v3695_v8, %v4952_v50  ;;  %v3704_v25 = vrot.slane %v3695_v8, %v4949_v48  ;;  %v3708_v14 = vrot.slane %v3695_v8, %v4964_v55  ;;  %v3712_v46 = vrot.slane %v3695_v8, %v5399_v6 }
 0x473   :  { %v3716_v19 = vrot.slane %v3695_v8, %v4961_v54  ;;  %v3720_v27 = vrot.slane %v3695_v8, %v4958_v53  ;;  %v3724_v41 = vrot.slane %v3695_v8, %v6606_v37  ;;  %v3728_v10 = vrot.slane %v3695_v8, %v3727_v23  ;;  %v6609_v8 = vld [vmem:[#allocation3_spill] sm:$0xff] }
 0x474   :  { %v3737_v13 = vmul.f32 %v3700_v40, %v6349_v56  ;;  %v3738_v18 = vmul.f32 %v3704_v25, %v6344_v30  ;;  %v3739_v29 = vmul.f32 %v3708_v14, %v6369_v31  ;;  %v3740_v32 = vmul.f32 %v3712_v46, %v6371_v7 }
 0x475   :  { %v3741_v24 = vmul.f32 %v3716_v19, %v6409_v45  ;;  %v3742_v9 = vmul.f32 %v3720_v27, %v6402_v2  ;;  %v3743_v61 = vmul.f32 %v3724_v41, %v6420_v26  ;;  %v3744_v28 = vmul.f32 %v3728_v10, %v3484_v11 }
 0x476   :  { %v3753_v5 = vcombine.low %v3737_v13, %v3738_v18  ;;  %v3754_v0 = vcombine.low %v3739_v29, %v3740_v32  ;;  %v3804_v7 = vmul.f32 %v3700_v40, %v6212_v36  ;;  %v3805_v45 = vmul.f32 %v3704_v25, %v6216_v20  ;;  %v6610_v13 = vld [vmem:[#allocation4_spill] sm:$0xff] }
 0x477   :  { %v3755_v33 = vcombine.low %v3741_v24, %v3742_v9  ;;  %v3756_v58 = vcombine.low %v3743_v61, %v3744_v28  ;;  %v3806_v26 = vmul.f32 %v3708_v14, %v6258_v12  ;;  %v3807_v11 = vmul.f32 %v3712_v46, %v6250_v43  ;;  %v6613_v24 = vld [vmem:[#allocation14_spill] sm:$0xff]  ;;  %v6614_v61 = vld [vmem:[#allocation13_spill] sm:$0xff] }
 0x478   :  { %v3763_v59 = vrot.slane %v3753_v5, %v5060_v57  ;;  %v3770_v56 = vrot.slane %v3754_v0, %v5060_v57  ;;  %v3808_v52 = vmul.f32 %v3716_v19, %v6309_v49  ;;  %v3809_v60 = vmul.f32 %v3720_v27, %v6297_v39  ;;  %v6607_v49 = vld [vmem:[#allocation12_spill] sm:$0xff]  ;;  %v6615_v0 = vld [vmem:[#allocation17_spill] sm:$0xff] }
 0x479   :  { %v3777_v30 = vrot.slane %v3755_v33, %v5060_v57  ;;  %v3784_v31 = vrot.slane %v3756_v58, %v5060_v57  ;;  %v3810_v21 = vmul.f32 %v3724_v41, %v6352_v44  ;;  %v3811_v38 = vmul.f32 %v3728_v10, %v6365_v22  ;;  %v3404_v44 = vld [vmem:[%s6559_s11] sm:$0xff] }
 0x47a   :  { %v3785_v2 = vcombine.low %v3763_v59, %v3770_v56  ;;  %v3812_v36 = vmul.f32 %v3700_v40, %v6206_v34  ;;  %v3813_v20 = vmul.f32 %v3704_v25, %v6210_v63  ;;  %v3814_v1 = vmul.f32 %v3708_v14, %v6252_v35  ;;  %v6617_v59 = vld [vmem:[#allocation6_spill] sm:$0xff] }
 0x47b   :  { %v3786_v42 = vcombine.low %v3777_v30, %v3784_v31  ;;  %v3815_v43 = vmul.f32 %v3712_v46, %v6245_v62  ;;  %v3816_v15 = vmul.f32 %v3716_v19, %v6607_v49  ;;  %v3817_v39 = vmul.f32 %v3720_v27, %v6608_v4  ;;  %v6612_v62 = vld [vmem:[#allocation7_spill] sm:$0xff]  ;;  %v6618_v30 = vld [vmem:[#allocation10_spill] sm:$0xff] }
 0x47c   :  { %v3793_v3 = vrot.slane %v3785_v2, %v5060_v57  ;;  %v3818_v22 = vmul.f32 %v3724_v41, %v6347_v51  ;;  %v3819_v34 = vmul.f32 %v3728_v10, %v6354_v16  ;;  %v3820_v63 = vmul.f32 %v3700_v40, %v6609_v8  ;;  %v6616_v51 = vld [vmem:[#allocation5_spill] sm:$0xff]  ;;  %v6621_v49 = vld [vmem:[#allocation15_spill] sm:$0xff]  ;;  %v6622_v8 = vld [vmem:[#allocation18_spill] sm:$0xff] }
 0x47d   :  { %v3800_v12 = vrot.slane %v3786_v42, %v5060_v57  ;;  %v3821_v35 = vmul.f32 %v3704_v25, %v6610_v13  ;;  %v6611_v57 = vld [vmem:[#allocation8_spill] sm:$0xff]  ;;  %v3823_v32 = vmul.f32 %v3712_v46, %v6612_v62  ;;  %v3824_v9 = vmul.f32 %v3716_v19, %v6613_v24  ;;  %v6619_v2 = vld [vmem:[#allocation9_spill] sm:$0xff] }
 0x47e   :  { %v3822_v29 = vmul.f32 %v3708_v14, %v6611_v57  ;;  %v3825_v28 = vmul.f32 %v3720_v27, %v6614_v61  ;;  %v3826_v5 = vmul.f32 %v3724_v41, %v6373_v17  ;;  %v3827_v33 = vmul.f32 %v3728_v10, %v6615_v0  ;;  %v6623_v57 = vld [vmem:[#allocation19_spill] sm:$0xff] }
 0x47f   :  { %v3801_v18 = vcombine.low %v3793_v3, %v3800_v12  ;;  %v3828_v58 = vmul.f32 %v3700_v40, %v6616_v51  ;;  %v3829_v56 = vmul.f32 %v3704_v25, %v6617_v59  ;;  %v3830_v31 = vmul.f32 %v3708_v14, %v6618_v30  ;;  %v6620_v3 = vld [vmem:[#allocation16_spill] sm:$0xff] }
 0x480   :  { %v3831_v42 = vmul.f32 %v3712_v46, %v6619_v2  ;;  %v3832_v12 = vmul.f32 %v3716_v19, %v6620_v3  ;;  %v3833_v4 = vmul.f32 %v3720_v27, %v6621_v49  ;;  %v3834_v13 = vmul.f32 %v3724_v41, %v6622_v8 }
 0x481   :  { %v3803_v16 = vsub.f32 %v3404_v44, %v3801_v18  ;;  %v3835_v62 = vmul.f32 %v3728_v10, %v6623_v57 }
 0x483   :  { %v3840_v17 = vrot.slane %v3803_v16, %v4952_v50  ;;  %v3844_v24 = vrot.slane %v3803_v16, %v4949_v48  ;;  %v3848_v40 = vrot.slane %v3803_v16, %v4964_v55  ;;  %v3852_v25 = vrot.slane %v3803_v16, %v5399_v6 }
 0x484   :  { %v3856_v14 = vrot.slane %v3803_v16, %v4961_v54  ;;  %v3860_v46 = vrot.slane %v3803_v16, %v4958_v53  ;;  %v3864_v19 = vrot.slane %v3803_v16, %v6606_v37  ;;  %v3868_v27 = vrot.slane %v3803_v16, %v3727_v23 }
 0x485   :  { %v6500_v41 = vadd.f32 %v3840_v17, %v3804_v7  ;;  %v6502_v10 = vadd.f32 %v3844_v24, %v3805_v45  ;;  %v6504_v50 = vadd.f32 %v3848_v40, %v3806_v26  ;;  %v6506_v48 = vadd.f32 %v3852_v25, %v3807_v11 }
 0x486   :  { %v6508_v55 = vadd.f32 %v3856_v14, %v3808_v52  ;;  %v6510_v6 = vadd.f32 %v3860_v46, %v3809_v60  ;;  %v6512_v54 = vadd.f32 %v3864_v19, %v3810_v21  ;;  %v6514_v53 = vadd.f32 %v3868_v27, %v3811_v38 }
 0x487   :  { %v3885_v37 = vadd.f32 %v3840_v17, %v3812_v36  ;;  %v3886_v44 = vadd.f32 %v3844_v24, %v3813_v20  ;;  %v3887_v47 = vadd.f32 %v3848_v40, %v3814_v1  ;;  %v3888_v23 = vadd.f32 %v3852_v25, %v3815_v43 }
 0x488   :  { %v3889_v7 = vadd.f32 %v3856_v14, %v3816_v15  ;;  %v3890_v18 = vadd.f32 %v3860_v46, %v3817_v39  ;;  %v3891_v45 = vadd.f32 %v3864_v19, %v3818_v22  ;;  %v3892_v61 = vadd.f32 %v3868_v27, %v3819_v34 }
 0x489   :  { %v3893_v26 = vadd.f32 %v3840_v17, %v3820_v63  ;;  %v3894_v0 = vadd.f32 %v3844_v24, %v3821_v35  ;;  %v3895_v11 = vadd.f32 %v3848_v40, %v3822_v29  ;;  %v3896_v51 = vadd.f32 %v3852_v25, %v3823_v32 }
 0x48a   :  { %v3897_v52 = vadd.f32 %v3856_v14, %v3824_v9  ;;  %v3898_v16 = vadd.f32 %v3860_v46, %v3825_v28  ;;  %v3899_v60 = vadd.f32 %v3864_v19, %v3826_v5  ;;  %v3900_v59 = vadd.f32 %v3868_v27, %v3827_v33 }
 0x48b   :  { %v3901_v21 = vadd.f32 %v3840_v17, %v3828_v58  ;;  %v3902_v30 = vadd.f32 %v3844_v24, %v3829_v56  ;;  %v3903_v38 = vadd.f32 %v3848_v40, %v3830_v31  ;;  %v3904_v2 = vadd.f32 %v3852_v25, %v3831_v42 }
 0x48c   :  { %v3905_v36 = vadd.f32 %v3856_v14, %v3832_v12  ;;  %v3906_v20 = vadd.f32 %v3860_v46, %v3833_v4  ;;  %v3907_v1 = vadd.f32 %v3864_v19, %v3834_v13  ;;  %v3908_v43 = vadd.f32 %v3868_v27, %v3835_v62 }
 0x48d   :  { %v3909_v15 = vmax.f32 %v6500_v41, 0.0  ;;  %v3910_v39 = vmax.f32 %v6502_v10, 0.0  ;;  %v3911_v22 = vmax.f32 %v6504_v50, 0.0  ;;  %v3912_v34 = vmax.f32 %v6506_v48, 0.0 }
 0x48e   :  { %v3913_v63 = vmax.f32 %v6508_v55, 0.0  ;;  %v3914_v35 = vmax.f32 %v6510_v6, 0.0  ;;  %v3915_v29 = vmax.f32 %v6512_v54, 0.0  ;;  %v3916_v32 = vmax.f32 %v6514_v53, 0.0 }
 0x48f   :  { %v3917_v9 = vmax.f32 %v3885_v37, 0.0  ;;  %v3918_v28 = vmax.f32 %v3886_v44, 0.0  ;;  %v3919_v5 = vmax.f32 %v3887_v47, 0.0  ;;  %v3920_v33 = vmax.f32 %v3888_v23, 0.0 }
 0x490   :  { %v3921_v58 = vmax.f32 %v3889_v7, 0.0  ;;  %v3922_v56 = vmax.f32 %v3890_v18, 0.0  ;;  %v3923_v31 = vmax.f32 %v3891_v45, 0.0  ;;  %v3924_v42 = vmax.f32 %v3892_v61, 0.0 }
 0x491   :  { %v3925_v3 = vmax.f32 %v3893_v26, 0.0  ;;  %v3926_v12 = vmax.f32 %v3894_v0, 0.0  ;;  %v3927_v49 = vmax.f32 %v3895_v11, 0.0  ;;  %v3928_v4 = vmax.f32 %v3896_v51, 0.0 }
 0x492   :  { %v3929_v8 = vmax.f32 %v3897_v52, 0.0  ;;  %v3930_v13 = vmax.f32 %v3898_v16, 0.0  ;;  %v3931_v57 = vmax.f32 %v3899_v60, 0.0  ;;  %v3932_v62 = vmax.f32 %v3900_v59, 0.0 }
 0x493   :  { %v3933_v17 = vmax.f32 %v3901_v21, 0.0  ;;  %v3934_v24 = vmax.f32 %v3902_v30, 0.0  ;;  %v3935_v40 = vmax.f32 %v3903_v38, 0.0  ;;  %v3936_v25 = vmax.f32 %v3904_v2, 0.0 }
 0x494   :  { %v3937_v14 = vmax.f32 %v3905_v36, 0.0  ;;  %v3938_v46 = vmax.f32 %v3906_v20, 0.0  ;;  %v3939_v19 = vmax.f32 %v3907_v1, 0.0  ;;  %v3940_v27 = vmax.f32 %v3908_v43, 0.0 }
 0x495   :  { %v3941_v41 = vmax.f32 %v3909_v15, %v3917_v9  ;;  %v3942_v10 = vmax.f32 %v3910_v39, %v3918_v28  ;;  %v3943_v50 = vmax.f32 %v3911_v22, %v3919_v5  ;;  %v3944_v48 = vmax.f32 %v3912_v34, %v3920_v33 }
 0x496   :  { %v3945_v55 = vmax.f32 %v3913_v63, %v3921_v58  ;;  %v3946_v6 = vmax.f32 %v3914_v35, %v3922_v56  ;;  %v3947_v54 = vmax.f32 %v3915_v29, %v3923_v31  ;;  %v3948_v53 = vmax.f32 %v3916_v32, %v3924_v42 }
 0x497   :  { %v3949_v37 = vmax.f32 %v3941_v41, %v3925_v3  ;;  %v3950_v44 = vmax.f32 %v3942_v10, %v3926_v12  ;;  %v3951_v47 = vmax.f32 %v3943_v50, %v3927_v49  ;;  %v3952_v23 = vmax.f32 %v3944_v48, %v3928_v4 }
 0x498   :  { %v3953_v7 = vmax.f32 %v3945_v55, %v3929_v8  ;;  %v3954_v18 = vmax.f32 %v3946_v6, %v3930_v13  ;;  %v3955_v45 = vmax.f32 %v3947_v54, %v3931_v57  ;;  %v3956_v61 = vmax.f32 %v3948_v53, %v3932_v62 }
 0x499   :  { %v3957_v26 = vmax.f32 %v3949_v37, %v3933_v17  ;;  %v3958_v0 = vmax.f32 %v3950_v44, %v3934_v24  ;;  %v3959_v11 = vmax.f32 %v3951_v47, %v3935_v40  ;;  %v3960_v51 = vmax.f32 %v3952_v23, %v3936_v25 }
 0x49a   :  { %v3961_v52 = vmax.f32 %v3953_v7, %v3937_v14  ;;  %v3962_v16 = vmax.f32 %v3954_v18, %v3938_v46  ;;  %v3963_v60 = vmax.f32 %v3955_v45, %v3939_v19  ;;  %v3964_v59 = vmax.f32 %v3956_v61, %v3940_v27 }
 0x49b   :  { %3965 = vst [vmem:[%s6560_s12] sm:$0xff] %v3957_v26  ;;  %3966 = vst [vmem:[%s6560_s12 + $0x8] sm:$0xff] %v3958_v0 }
 0x49c   :  { %3967 = vst [vmem:[%s6560_s12 + $0x10] sm:$0xff] %v3959_v11  ;;  %3968 = vst [vmem:[%s6560_s12 + $0x18] sm:$0xff] %v3960_v51 }
 0x49d   :  { %3969 = vst [vmem:[%s6560_s12 + $0x20] sm:$0xff] %v3961_v52  ;;  %3970 = vst [vmem:[%s6560_s12 + $0x28] sm:$0xff] %v3962_v16 }
 0x49e   :  { %3971 = vst [vmem:[%s6560_s12 + $0x30] sm:$0xff] %v3963_v60  ;;  %3972 = vst [vmem:[%s6560_s12 + $0x38] sm:$0xff] %v3964_v59 }

</bundles_post_ra>
